<compile_context>
chip_gen: v6e
topology: v6e:2x2x1
jax: 0.10.0
libtpu: 0.0.40
codegen_flags: <defaults>
</compile_context>

<pallas_src>
import functools
from typing import NamedTuple

import jax
import jax.numpy as jnp
from jax.experimental import pallas as pl
from jax.experimental.pallas import tpu as pltpu


class _Cfg(NamedTuple):
    N: int
    Cin: int
    H: int
    W: int
    Hp: int
    TR: int
    S: int
    Cmid: int
    num_classes: int
    Cout_p: int
    K1: int
    vmem_limit: int


def _fused_seg_kernel(x_ref, w1_ref, b1_ref, w2_ref, b2_ref, o_ref,
                      mid_ref, col_ref, *, H, W, TR, S, Cmid, Cout_p):
    """One (batch, row-strip) step of conv3x3 -> ReLU -> conv3x3.

    x_ref:   (1, 1, (TR+2)*W, K1)  im2col'd conv1 input for this strip (bf16).
    w1_ref:  (K1, Cmid)            conv1 weights, im2col layout (bf16).
    b1_ref:  (1, Cmid)             conv1 bias (f32).
    w2_ref:  (9*Cmid, Cout_p)      conv2 weights, im2col layout (bf16).
    b2_ref:  (1, Cout_p)           conv2 bias (f32, padded to 8 classes).
    o_ref:   (1, TR, W, Cout_p)    output strip (f32).
    mid_ref: (TR+2, W+2, Cmid)     VMEM scratch: ReLU(conv1) strip + halo ring (bf16).
    col_ref: (TR*W, 9*Cmid)        VMEM scratch: conv2 im2col slab (bf16).
    """
    s = pl.program_id(1)

    # ---- conv1 + bias + ReLU: ONE matmul (K=32), f32 accumulation on the MXU.
    h = jnp.dot(x_ref[0, 0], w1_ref[...], preferred_element_type=jnp.float32)
    h = jnp.maximum(h + b1_ref[...], 0.0)

    # Zero only the two halo columns (conv2 'same' left/right zero padding),
    # not the whole buffer; then write the interior.
    zcol = jnp.zeros((TR + 2, 1, Cmid), dtype=mid_ref.dtype)
    mid_ref[:, 0:1, :] = zcol
    mid_ref[:, W + 1:W + 2, :] = zcol
    mid_ref[:, 1:1 + W, :] = h.astype(mid_ref.dtype).reshape(TR + 2, W, Cmid)

    # Halo rows that fall outside the image must act as conv2's zero padding,
    # not ReLU(conv1(zero-padded input)).  Only boundary strips pay for this.
    @pl.when(s == 0)
    def _():
        mid_ref[0:1, :, :] = jnp.zeros((1, W + 2, Cmid), dtype=mid_ref.dtype)

    zs = H - (S - 1) * TR + 1  # first local mid row with global row >= H (static)

    @pl.when(s == S - 1)
    def _():
        mid_ref[zs:TR + 2, :, :] = jnp.zeros(
            (TR + 2 - zs, W + 2, Cmid), dtype=mid_ref.dtype)

    # ---- conv2: build the (TR*W, 576) im2col slab, then ONE K=576 matmul.
    for kh in range(3):
        for kw in range(3):
            j = (kh * 3 + kw) * Cmid
            col_ref[:, j:j + Cmid] = (
                mid_ref[kh:kh + TR, kw:kw + W, :].reshape(TR * W, Cmid))

    y = jnp.dot(col_ref[...], w2_ref[...], preferred_element_type=jnp.float32)
    y = y + b2_ref[...]
    o_ref[0, :, :, :] = y.reshape(TR, W, Cout_p)


def _forward_impl(x_nchw, w1, b1, w2, b2, cfg: _Cfg):
    N, Cin, H, W = cfg.N, cfg.Cin, cfg.H, cfg.W
    Hp, TR, S = cfg.Hp, cfg.TR, cfg.S
    Cmid, nc, Cout_p, K1 = cfg.Cmid, cfg.num_classes, cfg.Cout_p, cfg.K1

    # ---- wrapper-side im2col for conv1: last dim = 9*Cin, padded to K1 ----
    x = jnp.transpose(x_nchw, (0, 2, 3, 1)).astype(jnp.float32)            # NHWC
    # rows: +2 on top (conv1 pad + conv2 halo), bottom up to row Hp+1; cols: +1.
    xp = jnp.pad(x, ((0, 0), (2, Hp - H + 2), (1, 1), (0, 0)))
    taps = [xp[:, kh:kh + Hp + 2, kw:kw + W, :]
            for kh in range(3) for kw in range(3)]
    x_col = jnp.concatenate(taps, axis=-1)                                 # (N, Hp+2, W, 27)
    x_col = jnp.pad(x_col, ((0, 0), (0, 0), (0, 0), (0, K1 - 9 * Cin)))
    x_col = x_col.astype(jnp.bfloat16)
    # Per-strip windows incl. the 1-row conv2 halo on each side, so kernel input
    # blocks are strip sized (pipeline input DMA with compute, v7x-VMEM safe).
    ridx = jnp.arange(S)[:, None] * TR + jnp.arange(TR + 2)[None, :]       # (S, TR+2)
    x_strips = x_col[:, ridx].reshape(N, S, (TR + 2) * W, K1)

    # ---- weights in im2col layout, bf16 for the MXU; biases stay f32 ----
    w1c = jnp.transpose(w1, (2, 3, 1, 0)).reshape(9 * Cin, Cmid)
    w1c = jnp.pad(w1c, ((0, K1 - 9 * Cin), (0, 0))).astype(jnp.bfloat16)   # (32, 64)
    b1r = b1.reshape(1, Cmid).astype(jnp.float32)
    w2c = jnp.transpose(w2, (2, 3, 1, 0)).reshape(9 * Cmid, nc)
    w2c = jnp.pad(w2c, ((0, 0), (0, Cout_p - nc))).astype(jnp.bfloat16)    # (576, 8)
    b2r = jnp.pad(b2.reshape(1, nc).astype(jnp.float32),
                  ((0, 0), (0, Cout_p - nc)))

    kernel = functools.partial(_fused_seg_kernel, H=H, W=W, TR=TR, S=S,
                               Cmid=Cmid, Cout_p=Cout_p)
    R = (TR + 2) * W
    out = pl.pallas_call(
        kernel,
        out_shape=jax.ShapeDtypeStruct((N, Hp, W, Cout_p), jnp.float32),
        grid=(N, S),
        in_specs=[
            pl.BlockSpec((1, 1, R, K1), lambda n, s: (n, s, 0, 0)),
            pl.BlockSpec((K1, Cmid), lambda n, s: (0, 0)),
            pl.BlockSpec((1, Cmid), lambda n, s: (0, 0)),
            pl.BlockSpec((9 * Cmid, Cout_p), lambda n, s: (0, 0)),
            pl.BlockSpec((1, Cout_p), lambda n, s: (0, 0)),
        ],
        out_specs=pl.BlockSpec((1, TR, W, Cout_p), lambda n, s: (n, s, 0, 0)),
        scratch_shapes=[
            pltpu.VMEM((TR + 2, W + 2, Cmid), jnp.bfloat16),   # ReLU(conv1) strip
            pltpu.VMEM((TR * W, 9 * Cmid), jnp.bfloat16),      # conv2 im2col slab
        ],
        compiler_params=pltpu.CompilerParams(
            dimension_semantics=("parallel", "parallel"),
            vmem_limit_bytes=cfg.vmem_limit),
    )(x_strips, w1c, b1r, w2c, b2r)

    # Drop strip/class padding; NHWC -> NCHW (module returns NCHW).
    return jnp.transpose(out[:, :H, :, :nc], (0, 3, 1, 2))


_forward_jit = jax.jit(_forward_impl, static_argnums=(5,))


def _make_cfg(x_shape, Cmid, num_classes):
    N, Cin, H, W = (int(d) for d in x_shape)
    Cout_p = 8 * pl.cdiv(num_classes, 8)   # lane-padded only to 8, not 128
    K1 = 32                                # 9*Cin = 27 padded to a sublane multiple

    # Generation-aware VMEM budget (v5e/v6e 128 MiB, v7x 64 MiB physical).
    try:
        vmem_cap = int(pltpu.get_tpu_info().vmem_capacity_bytes)
    except Exception:
        vmem_cap = 64 * 1024 * 1024
    vmem_limit = int(min(vmem_cap * 3 // 4, 100 * 1024 * 1024))
    budget = max(vmem_limit // 2 - (1 << 20), 1 << 20)
    # ~bytes per strip row: double-buffered input + mid + conv2 slab +
    # double-buffered output strip, including lane padding (conservative).
    per_row = W * 4096
    TR = max(8, min(256, (budget // per_row) // 8 * 8))
    # TODO(synk): add a W-tile grid axis for very large W where even TR=8
    # would exceed the v7x VMEM budget.
    H8 = 8 * pl.cdiv(H, 8)
    TR = min(TR, H8)
    S = pl.cdiv(H, TR)
    Hp = S * TR
    return _Cfg(N, Cin, H, W, Hp, TR, S, Cmid, num_classes, Cout_p, K1, vmem_limit)


def simple_segmentation_forward(x_nchw, w1, b1, w2, b2):
    """Matches SimpleSegmentationModel.forward: conv2(relu(conv1(x))). NCHW in/out."""
    cfg = _make_cfg(x_nchw.shape, int(w1.shape[0]), int(w2.shape[0]))
    return _forward_jit(x_nchw, w1, b1, w2, b2, cfg)


def init_params(key, num_classes):
    """Deterministic init mimicking PyTorch Conv2d defaults (uniform +-1/sqrt(fan_in))."""
    k1, k2, k3, k4 = jax.random.split(key, 4)
    fan1 = 3 * 3 * 3
    bnd1 = 1.0 / jnp.sqrt(fan1)
    w1 = jax.random.uniform(k1, (64, 3, 3, 3), jnp.float32, -bnd1, bnd1)   # OIHW
    b1 = jax.random.uniform(k2, (64,), jnp.float32, -bnd1, bnd1)
    fan2 = 64 * 3 * 3
    bnd2 = 1.0 / jnp.sqrt(fan2)
    w2 = jax.random.uniform(k3, (num_classes, 64, 3, 3), jnp.float32, -bnd2, bnd2)
    b2 = jax.random.uniform(k4, (num_classes,), jnp.float32, -bnd2, bnd2)
    return w1, b1, w2, b2


def _reference_forward(x_nchw, w1, b1, w2, b2):
    """Pure-JAX reference (lax.conv, f32) for a correctness check."""
    dn = ("NCHW", "OIHW", "NCHW")
    h = jax.lax.conv_general_dilated(x_nchw, w1, (1, 1), "SAME", dimension_numbers=dn)
    h = jax.nn.relu(h + b1[None, :, None, None])
    y = jax.lax.conv_general_dilated(h, w2, (1, 1), "SAME", dimension_numbers=dn)
    return y + b2[None, :, None, None]


if __name__ == "__main__":
    num_classes = 4
    N, C, H, W = 2, 3, 16, 16  # module fixes Cin=3

    key = jax.random.PRNGKey(0)
    kx, kp = jax.random.split(key)
    x = jax.random.normal(kx, (N, C, H, W), jnp.float32)
    w1, b1, w2, b2 = init_params(kp, num_classes)

    out = simple_segmentation_forward(x, w1, b1, w2, b2)
    out = jax.block_until_ready(out)

    assert out.shape == (N, num_classes, H, W), out.shape

    ref = _reference_forward(x, w1, b1, w2, b2)
    max_err = float(jnp.max(jnp.abs(out - ref)))
    # bf16 matmul operands (f32 accumulation) -> loosened tolerance vs pure-f32.
    assert jnp.allclose(out, ref, atol=3e-2, rtol=3e-2), max_err

    print("KERNEL_OK")
</pallas_src>

<mosaic_0001>
module attributes {stable_mosaic.version = 11 : i64} {
  func.func @_fused_seg_kernel(%arg0: i32, %arg1: i32, %arg2: memref<1x1x288x32xbf16, #tpu.memory_space<vmem>>, %arg3: memref<32x64xbf16, #tpu.memory_space<vmem>>, %arg4: memref<1x64xf32, #tpu.memory_space<vmem>>, %arg5: memref<576x8xbf16, #tpu.memory_space<vmem>>, %arg6: memref<1x8xf32, #tpu.memory_space<vmem>>, %arg7: memref<1x16x16x8xf32, #tpu.memory_space<vmem>>, %arg8: memref<18x18x64xbf16, #tpu.memory_space<vmem>>, %arg9: memref<256x576xbf16, #tpu.memory_space<vmem>>) attributes {dimension_semantics = [#tpu.dimension_semantics<parallel>, #tpu.dimension_semantics<parallel>], iteration_bounds = array<i64: 2, 1>, scalar_prefetch = 0 : i64, scratch_operands = 2 : i64, tpu.core_type = #tpu.core_type<tc>, window_params = [{transform_indices = @transform_0, window_bounds = array<i64: 1, 1, 288, 32>}, {pipeline_mode = #tpu.pipeline_mode<synchronous>, transform_indices = @transform_1, window_bounds = array<i64: 32, 64>}, {pipeline_mode = #tpu.pipeline_mode<synchronous>, transform_indices = @transform_2, window_bounds = array<i64: 1, 64>}, {pipeline_mode = #tpu.pipeline_mode<synchronous>, transform_indices = @transform_3, window_bounds = array<i64: 576, 8>}, {pipeline_mode = #tpu.pipeline_mode<synchronous>, transform_indices = @transform_4, window_bounds = array<i64: 1, 8>}, {transform_indices = @transform_5, window_bounds = array<i64: 1, 16, 16, 8>}]} {
    %c0 = arith.constant 0 : index
    %c0_0 = arith.constant 0 : index
    %c0_1 = arith.constant 0 : index
    %c0_2 = arith.constant 0 : index
    %0 = vector.load %arg2[%c0, %c0_0, %c0_1, %c0_2] : memref<1x1x288x32xbf16, #tpu.memory_space<vmem>>, vector<1x1x288x32xbf16>
    %1 = vector.shape_cast %0 : vector<1x1x288x32xbf16> to vector<288x32xbf16>
    %c0_3 = arith.constant 0 : index
    %c0_4 = arith.constant 0 : index
    %2 = vector.load %arg3[%c0_3, %c0_4] : memref<32x64xbf16, #tpu.memory_space<vmem>>, vector<32x64xbf16>
    %cst = arith.constant dense<0.000000e+00> : vector<288x64xf32>
    %3 = tpu.matmul %1, %2, %cst {dimension_numbers = #tpu.dot_dimension_numbers<[1], [0], [0], [1], [0, 0, 1, 1], [], []>} : vector<288x32xbf16>, vector<32x64xbf16>, vector<288x64xf32> -> vector<288x64xf32>
    %c0_5 = arith.constant 0 : index
    %c0_6 = arith.constant 0 : index
    %4 = vector.load %arg4[%c0_5, %c0_6] : memref<1x64xf32, #tpu.memory_space<vmem>>, vector<1x64xf32>
    %5 = vector.broadcast %4 : vector<1x64xf32> to vector<288x64xf32>
    %6 = arith.addf %3, %5 : vector<288x64xf32>
    %cst_7 = arith.constant 0.000000e+00 : f32
    %7 = vector.broadcast %cst_7 : f32 to vector<288x64xf32>
    %8 = arith.maximumf %6, %7 : vector<288x64xf32>
    %cst_8 = arith.constant 0.000000e+00 : bf16
    %9 = vector.broadcast %cst_8 : bf16 to vector<18x1x64xbf16>
    %c0_9 = arith.constant 0 : index
    %c0_10 = arith.constant 0 : index
    %c0_11 = arith.constant 0 : index
    %10 = vector.load %arg8[%c0_9, %c0_10, %c0_11] : memref<18x18x64xbf16, #tpu.memory_space<vmem>>, vector<18x1x64xbf16>
    tpu.vector_store %arg8[%c0_9, %c0_10, %c0_11], %9 {strides = array<i32>} : memref<18x18x64xbf16, #tpu.memory_space<vmem>>, vector<18x1x64xbf16>,
    %c0_12 = arith.constant 0 : index
    %c17 = arith.constant 17 : index
    %c0_13 = arith.constant 0 : index
    %11 = vector.load %arg8[%c0_12, %c17, %c0_13] : memref<18x18x64xbf16, #tpu.memory_space<vmem>>, vector<18x1x64xbf16>
    tpu.vector_store %arg8[%c0_12, %c17, %c0_13], %9 {strides = array<i32>} : memref<18x18x64xbf16, #tpu.memory_space<vmem>>, vector<18x1x64xbf16>,
    %12 = arith.truncf %8 : vector<288x64xf32> to vector<288x64xbf16>
    %13 = vector.shape_cast %12 : vector<288x64xbf16> to vector<18x16x64xbf16>
    %c0_14 = arith.constant 0 : index
    %c1 = arith.constant 1 : index
    %c0_15 = arith.constant 0 : index
    %14 = vector.load %arg8[%c0_14, %c1, %c0_15] : memref<18x18x64xbf16, #tpu.memory_space<vmem>>, vector<18x16x64xbf16>
    tpu.vector_store %arg8[%c0_14, %c1, %c0_15], %13 {strides = array<i32>} : memref<18x18x64xbf16, #tpu.memory_space<vmem>>, vector<18x16x64xbf16>,
    %c0_i32 = arith.constant 0 : i32
    %15 = arith.cmpi eq, %arg1, %c0_i32 : i32
    %16 = arith.extui %15 : i1 to i32
    %c0_i32_16 = arith.constant 0 : i32
    %17 = arith.cmpi ne, %16, %c0_i32_16 : i32
    scf.if %17 {
      %cst_66 = arith.constant 0.000000e+00 : bf16
      %58 = vector.broadcast %cst_66 : bf16 to vector<1x18x64xbf16>
      %c0_67 = arith.constant 0 : index
      %c0_68 = arith.constant 0 : index
      %c0_69 = arith.constant 0 : index
      %59 = vector.load %arg8[%c0_67, %c0_68, %c0_69] : memref<18x18x64xbf16, #tpu.memory_space<vmem>>, vector<1x18x64xbf16>
      tpu.vector_store %arg8[%c0_67, %c0_68, %c0_69], %58 {strides = array<i32>} : memref<18x18x64xbf16, #tpu.memory_space<vmem>>, vector<1x18x64xbf16>,
    } else {
    }
    %c0_i32_17 = arith.constant 0 : i32
    %18 = arith.cmpi eq, %arg1, %c0_i32_17 : i32
    %19 = arith.extui %18 : i1 to i32
    %c0_i32_18 = arith.constant 0 : i32
    %20 = arith.cmpi ne, %19, %c0_i32_18 : i32
    scf.if %20 {
      %cst_66 = arith.constant 0.000000e+00 : bf16
      %58 = vector.broadcast %cst_66 : bf16 to vector<1x18x64xbf16>
      %c17_67 = arith.constant 17 : index
      %c0_68 = arith.constant 0 : index
      %c0_69 = arith.constant 0 : index
      %59 = vector.load %arg8[%c17_67, %c0_68, %c0_69] : memref<18x18x64xbf16, #tpu.memory_space<vmem>>, vector<1x18x64xbf16>
      tpu.vector_store %arg8[%c17_67, %c0_68, %c0_69], %58 {strides = array<i32>} : memref<18x18x64xbf16, #tpu.memory_space<vmem>>, vector<1x18x64xbf16>,
    } else {
    }
    %c0_19 = arith.constant 0 : index
    %c0_20 = arith.constant 0 : index
    %c0_21 = arith.constant 0 : index
    %21 = vector.load %arg8[%c0_19, %c0_20, %c0_21] : memref<18x18x64xbf16, #tpu.memory_space<vmem>>, vector<16x16x64xbf16>
    %22 = vector.shape_cast %21 : vector<16x16x64xbf16> to vector<256x64xbf16>
    %c0_22 = arith.constant 0 : index
    %c0_23 = arith.constant 0 : index
    %23 = vector.load %arg9[%c0_22, %c0_23] : memref<256x576xbf16, #tpu.memory_space<vmem>>, vector<256x64xbf16>
    tpu.vector_store %arg9[%c0_22, %c0_23], %22 {strides = array<i32>} : memref<256x576xbf16, #tpu.memory_space<vmem>>, vector<256x64xbf16>,
    %c0_24 = arith.constant 0 : index
    %c1_25 = arith.constant 1 : index
    %c0_26 = arith.constant 0 : index
    %24 = vector.load %arg8[%c0_24, %c1_25, %c0_26] : memref<18x18x64xbf16, #tpu.memory_space<vmem>>, vector<16x16x64xbf16>
    %25 = vector.shape_cast %24 : vector<16x16x64xbf16> to vector<256x64xbf16>
    %c0_27 = arith.constant 0 : index
    %c64 = arith.constant 64 : index
    %26 = vector.load %arg9[%c0_27, %c64] : memref<256x576xbf16, #tpu.memory_space<vmem>>, vector<256x64xbf16>
    tpu.vector_store %arg9[%c0_27, %c64], %25 {strides = array<i32>} : memref<256x576xbf16, #tpu.memory_space<vmem>>, vector<256x64xbf16>,
    %c0_28 = arith.constant 0 : index
    %c2 = arith.constant 2 : index
    %c0_29 = arith.constant 0 : index
    %27 = vector.load %arg8[%c0_28, %c2, %c0_29] : memref<18x18x64xbf16, #tpu.memory_space<vmem>>, vector<16x16x64xbf16>
    %28 = vector.shape_cast %27 : vector<16x16x64xbf16> to vector<256x64xbf16>
    %c0_30 = arith.constant 0 : index
    %c128 = arith.constant 128 : index
    %29 = vector.load %arg9[%c0_30, %c128] : memref<256x576xbf16, #tpu.memory_space<vmem>>, vector<256x64xbf16>
    tpu.vector_store %arg9[%c0_30, %c128], %28 {strides = array<i32>} : memref<256x576xbf16, #tpu.memory_space<vmem>>, vector<256x64xbf16>,
    %c1_31 = arith.constant 1 : index
    %c0_32 = arith.constant 0 : index
    %c0_33 = arith.constant 0 : index
    %30 = vector.load %arg8[%c1_31, %c0_32, %c0_33] : memref<18x18x64xbf16, #tpu.memory_space<vmem>>, vector<16x16x64xbf16>
    %31 = vector.shape_cast %30 : vector<16x16x64xbf16> to vector<256x64xbf16>
    %c0_34 = arith.constant 0 : index
    %c192 = arith.constant 192 : index
    %32 = vector.load %arg9[%c0_34, %c192] : memref<256x576xbf16, #tpu.memory_space<vmem>>, vector<256x64xbf16>
    tpu.vector_store %arg9[%c0_34, %c192], %31 {strides = array<i32>} : memref<256x576xbf16, #tpu.memory_space<vmem>>, vector<256x64xbf16>,
    %c1_35 = arith.constant 1 : index
    %c1_36 = arith.constant 1 : index
    %c0_37 = arith.constant 0 : index
    %33 = vector.load %arg8[%c1_35, %c1_36, %c0_37] : memref<18x18x64xbf16, #tpu.memory_space<vmem>>, vector<16x16x64xbf16>
    %34 = vector.shape_cast %33 : vector<16x16x64xbf16> to vector<256x64xbf16>
    %c0_38 = arith.constant 0 : index
    %c256 = arith.constant 256 : index
    %35 = vector.load %arg9[%c0_38, %c256] : memref<256x576xbf16, #tpu.memory_space<vmem>>, vector<256x64xbf16>
    tpu.vector_store %arg9[%c0_38, %c256], %34 {strides = array<i32>} : memref<256x576xbf16, #tpu.memory_space<vmem>>, vector<256x64xbf16>,
    %c1_39 = arith.constant 1 : index
    %c2_40 = arith.constant 2 : index
    %c0_41 = arith.constant 0 : index
    %36 = vector.load %arg8[%c1_39, %c2_40, %c0_41] : memref<18x18x64xbf16, #tpu.memory_space<vmem>>, vector<16x16x64xbf16>
    %37 = vector.shape_cast %36 : vector<16x16x64xbf16> to vector<256x64xbf16>
    %c0_42 = arith.constant 0 : index
    %c320 = arith.constant 320 : index
    %38 = vector.load %arg9[%c0_42, %c320] : memref<256x576xbf16, #tpu.memory_space<vmem>>, vector<256x64xbf16>
    tpu.vector_store %arg9[%c0_42, %c320], %37 {strides = array<i32>} : memref<256x576xbf16, #tpu.memory_space<vmem>>, vector<256x64xbf16>,
    %c2_43 = arith.constant 2 : index
    %c0_44 = arith.constant 0 : index
    %c0_45 = arith.constant 0 : index
    %39 = vector.load %arg8[%c2_43, %c0_44, %c0_45] : memref<18x18x64xbf16, #tpu.memory_space<vmem>>, vector<16x16x64xbf16>
    %40 = vector.shape_cast %39 : vector<16x16x64xbf16> to vector<256x64xbf16>
    %c0_46 = arith.constant 0 : index
    %c384 = arith.constant 384 : index
    %41 = vector.load %arg9[%c0_46, %c384] : memref<256x576xbf16, #tpu.memory_space<vmem>>, vector<256x64xbf16>
    tpu.vector_store %arg9[%c0_46, %c384], %40 {strides = array<i32>} : memref<256x576xbf16, #tpu.memory_space<vmem>>, vector<256x64xbf16>,
    %c2_47 = arith.constant 2 : index
    %c1_48 = arith.constant 1 : index
    %c0_49 = arith.constant 0 : index
    %42 = vector.load %arg8[%c2_47, %c1_48, %c0_49] : memref<18x18x64xbf16, #tpu.memory_space<vmem>>, vector<16x16x64xbf16>
    %43 = vector.shape_cast %42 : vector<16x16x64xbf16> to vector<256x64xbf16>
    %c0_50 = arith.constant 0 : index
    %c448 = arith.constant 448 : index
    %44 = vector.load %arg9[%c0_50, %c448] : memref<256x576xbf16, #tpu.memory_space<vmem>>, vector<256x64xbf16>
    tpu.vector_store %arg9[%c0_50, %c448], %43 {strides = array<i32>} : memref<256x576xbf16, #tpu.memory_space<vmem>>, vector<256x64xbf16>,
    %c2_51 = arith.constant 2 : index
    %c2_52 = arith.constant 2 : index
    %c0_53 = arith.constant 0 : index
    %45 = vector.load %arg8[%c2_51, %c2_52, %c0_53] : memref<18x18x64xbf16, #tpu.memory_space<vmem>>, vector<16x16x64xbf16>
    %46 = vector.shape_cast %45 : vector<16x16x64xbf16> to vector<256x64xbf16>
    %c0_54 = arith.constant 0 : index
    %c512 = arith.constant 512 : index
    %47 = vector.load %arg9[%c0_54, %c512] : memref<256x576xbf16, #tpu.memory_space<vmem>>, vector<256x64xbf16>
    tpu.vector_store %arg9[%c0_54, %c512], %46 {strides = array<i32>} : memref<256x576xbf16, #tpu.memory_space<vmem>>, vector<256x64xbf16>,
    %c0_55 = arith.constant 0 : index
    %c0_56 = arith.constant 0 : index
    %48 = vector.load %arg9[%c0_55, %c0_56] : memref<256x576xbf16, #tpu.memory_space<vmem>>, vector<256x576xbf16>
    %c0_57 = arith.constant 0 : index
    %c0_58 = arith.constant 0 : index
    %49 = vector.load %arg5[%c0_57, %c0_58] : memref<576x8xbf16, #tpu.memory_space<vmem>>, vector<576x8xbf16>
    %cst_59 = arith.constant dense<0.000000e+00> : vector<256x8xf32>
    %50 = tpu.matmul %48, %49, %cst_59 {dimension_numbers = #tpu.dot_dimension_numbers<[1], [0], [0], [1], [0, 0, 1, 1], [], []>} : vector<256x576xbf16>, vector<576x8xbf16>, vector<256x8xf32> -> vector<256x8xf32>
    %c0_60 = arith.constant 0 : index
    %c0_61 = arith.constant 0 : index
    %51 = vector.load %arg6[%c0_60, %c0_61] : memref<1x8xf32, #tpu.memory_space<vmem>>, vector<1x8xf32>
    %52 = vector.broadcast %51 : vector<1x8xf32> to vector<256x8xf32>
    %53 = arith.addf %50, %52 : vector<256x8xf32>
    %54 = vector.shape_cast %53 : vector<256x8xf32> to vector<16x16x8xf32>
    %c0_62 = arith.constant 0 : index
    %c0_63 = arith.constant 0 : index
    %c0_64 = arith.constant 0 : index
    %c0_65 = arith.constant 0 : index
    %55 = vector.load %arg7[%c0_62, %c0_63, %c0_64, %c0_65] : memref<1x16x16x8xf32, #tpu.memory_space<vmem>>, vector<1x16x16x8xf32>
    %56 = vector.shape_cast %55 : vector<1x16x16x8xf32> to vector<16x16x8xf32>
    %57 = vector.shape_cast %54 : vector<16x16x8xf32> to vector<1x16x16x8xf32>
    tpu.vector_store %arg7[%c0_62, %c0_63, %c0_64, %c0_65], %57 {strides = array<i32>} : memref<1x16x16x8xf32, #tpu.memory_space<vmem>>, vector<1x16x16x8xf32>,
    return
  }
  func.func @transform_0(%arg0: i32, %arg1: i32) -> (i32, i32, i32, i32) {
    %c0_i32 = arith.constant 0 : i32
    %c0_i32_0 = arith.constant 0 : i32
    %c0_i32_1 = arith.constant 0 : i32
    return %arg0, %arg1, %c0_i32, %c0_i32_0 : i32, i32, i32, i32
  }
  func.func @transform_1(%arg0: i32, %arg1: i32) -> (i32, i32) {
    %c0_i32 = arith.constant 0 : i32
    %c0_i32_0 = arith.constant 0 : i32
    %c0_i32_1 = arith.constant 0 : i32
    return %c0_i32, %c0_i32_0 : i32, i32
  }
  func.func @transform_2(%arg0: i32, %arg1: i32) -> (i32, i32) {
    %c0_i32 = arith.constant 0 : i32
    %c0_i32_0 = arith.constant 0 : i32
    %c0_i32_1 = arith.constant 0 : i32
    return %c0_i32, %c0_i32_0 : i32, i32
  }
  func.func @transform_3(%arg0: i32, %arg1: i32) -> (i32, i32) {
    %c0_i32 = arith.constant 0 : i32
    %c0_i32_0 = arith.constant 0 : i32
    %c0_i32_1 = arith.constant 0 : i32
    return %c0_i32, %c0_i32_0 : i32, i32
  }
  func.func @transform_4(%arg0: i32, %arg1: i32) -> (i32, i32) {
    %c0_i32 = arith.constant 0 : i32
    %c0_i32_0 = arith.constant 0 : i32
    %c0_i32_1 = arith.constant 0 : i32
    return %c0_i32, %c0_i32_0 : i32, i32
  }
  func.func @transform_5(%arg0: i32, %arg1: i32) -> (i32, i32, i32, i32) {
    %c0_i32 = arith.constant 0 : i32
    %c0_i32_0 = arith.constant 0 : i32
    %c0_i32_1 = arith.constant 0 : i32
    return %arg0, %arg1, %c0_i32, %c0_i32_0 : i32, i32, i32, i32
  }
}

</mosaic_0001>

<bundles_post_ra>
// kernel: _forward_impl.1
= control target key start
LH: loop header
LB: loop body
LE: loop exit
PB: predicated region body
PF: predicated region fallthrough
CT: control target
= control target key end

     0   :  { %s6573_s18 = smov 0   ;;  %s6575_s19 = smov 0   ;;  %s9023_s0 = inlined_call_operand.vmem [shape: bf16[2,1,288,32], index: 0, kind: input, shape index: {}]   ;;  %s9024_s1 = inlined_call_operand.vmem [shape: bf16[32,64], index: 1, kind: input, shape index: {}]   ;;  %s9025_s2 = inlined_call_operand.vmem [shape: f32[1,64], index: 2, kind: input, shape index: {}]   ;;  %s9026_s3 = inlined_call_operand.vmem [shape: bf16[576,8], index: 3, kind: input, shape index: {}]   ;;  %s9027_s4 = inlined_call_operand.vmem [shape: f32[1,8], index: 4, kind: input, shape index: {}]   ;;  %s9028_s5 = inlined_call_operand.vmem [shape: f32[2,16,16,8], index: 5, kind: output, shape index: {}]  }
   0x1   :  { %s6577_s20 = smov 0  }
   0x2 LB: > { %s27_s21 = sadd.s32 1, %s6535_s19  ;;  %p5687_p0 = scmp.ge.s32.totalorder %s6539_s20, 1  ;;  %s6539_s20 = sphi %s6577_s20, %s15_s20   ;;  %s6535_s19 = sphi %s6575_s19, %s9116_s19   ;;  %s6531_s18 = sphi %s6573_s18, %s9115_s18  }
   0x3   : > { %p29_p1 = scmp.ge.s32.totalorder %s27_s21, 2  ;;  %p207_p2 = scmp.lt.s32.totalorder %s6539_s20, 3 }
   0x5   : > { %s9118_s21 = smov (%p29_p1, %s27_s21), 0  ;;  %p208_p3 = pnand %p5687_p0, %p207_p2 }
   0x7   : > { %211 = sbr.rel (%p208_p3) target bundleno = 954 (0x3ba), region = 40 }
   0xc   : > { %v6365_v0 = vld [vmem:[%s9024_s1 + $0x8] sm:$0xff]   ;;  %p244_p4 = scmp.lt.s32.totalorder %s6531_s18, 1  ;;  %v6366_v1 = vld [vmem:[%s9024_s1] sm:$0xff]   ;;  %vm414_vm0 = vcmask 261120   ;;  %vm682_vm1 = vcmask 516096   ;;  %vm1265_vm6 = vcmask 519168  }
   0xd   : > { %6250 = vmatprep.subr.bf16.mxu0 %v6365_v0  ;;  %vm683_vm2 = vsmask.f32 256  ;;  %v688_v21 = vld [vmem:[#allocation2 + $0xc] sm:$0x1]  ;;  %vm739_vm4 = vsmask.f32 7938 }
   0xe   : > { %s9120_s18 = smov (!%p244_p4, %s6531_s18), 1  ;;  %6251 = vmatpush3.bf16.msra.mxu0 %v6365_v0  ;;  %vm6643_vm3 = vmand %vm682_vm1, %vm683_vm2  ;;  %v685_v23 = vld [vmem:[#allocation2] sm:$0x1]  ;;  %v744_v26 = vld [vmem:[#allocation2 + $0x14] sm:$0x1]  ;;  %vm2130_vm10 = vcmask 1042432  }
   0xf   : > { %6252 = vmatprep.subr.bf16.mxu0 %v6366_v1  ;;  %s6338_s26 = smul.u32 144, %s9120_s18  ;;  %v689_v22 = vsel %vm6643_vm3, 0, %v688_v21  ;;  %v686_v24 = vsel %vm6643_vm3, 0, %v685_v23  ;;  %vm6653_vm5 = vmand %vm682_vm1, %vm739_vm4  ;;  %v741_v28 = vld [vmem:[#allocation2 + $0x8] sm:$0x1]  ;;  %vm2131_vm11 = vcmask 1046532  }
  0x10   : > { %690 = vst [vmem:[#allocation2 + $0xc] sm:$0x1] %v689_v22  ;;  %687 = vst [vmem:[#allocation2] sm:$0x1] %v686_v24  ;;  %v745_v27 = vsel %vm6653_vm5, 0, %v744_v26  ;;  %v742_v29 = vsel %vm6653_vm5, 0, %v741_v28 }
  0x11   : > { %s6603_s29 = scalar_lea.vmem %s9023_s0, %s6338_s26  ;;  %746 = vst [vmem:[#allocation2 + $0x14] sm:$0x1] %v745_v27  ;;  %743 = vst [vmem:[#allocation2 + $0x8] sm:$0x1] %v742_v29  ;;  %v694_v30 = vld [vmem:[#allocation2 + $0x24] sm:$0x1] }
  0x12   : > { %6253 = vmatpush3.bf16.msra.mxu0 %v6366_v1  ;;  %v6367_v2 = vld [vmem:[%s6603_s29] sm:$0xff]   ;;  %v6368_v3 = vld [vmem:[%s6603_s29 + $0x8] sm:$0xff]   ;;  %v6369_v4 = vld [vmem:[%s6603_s29 + $0x10] sm:$0xff]   ;;  %v695_v31 = vsel %vm6643_vm3, 0, %v694_v30  ;;  %vm903_vm7 = vsmask.f32 4368 }
  0x13   : > { %6254 = vmatprep.mubr.msk.bf16.mxu0 %vm414_vm0, %v6367_v2  ;;  %v6370_v5 = vld [vmem:[%s6603_s29 + $0x18] sm:$0xff]   ;;  %v6371_v6 = vld [vmem:[%s6603_s29 + $0x20] sm:$0xff]   ;;  %v6372_v7 = vld [vmem:[%s6603_s29 + $0x28] sm:$0xff]   ;;  %696 = vst [vmem:[#allocation2 + $0x24] sm:$0x1] %v695_v31  ;;  %s6542_s7 = smov 64  }
  0x14   : > { %v6373_v8 = vld [vmem:[%s6603_s29 + $0x30] sm:$0xff]   ;;  %v6374_v9 = vld [vmem:[%s6603_s29 + $0x38] sm:$0xff]   ;;  %v6375_v10 = vld [vmem:[%s6603_s29 + $0x40] sm:$0xff]   ;;  %vm1518_vm13 = vsmask.f32 3328  ;;  %s5949_s6 = sshll.u32 %s9120_s18, 8 }
  0x15   : > { %6255 = vmatmul.mubr.msk.bf16.vlgmr.msra.gmra.mxu0 %vm414_vm0, %v6368_v3  ;;  %v6376_v11 = vld [vmem:[%s6603_s29 + $0x48] sm:$0xff]   ;;  %v6377_v12 = vld [vmem:[%s6603_s29 + $0x50] sm:$0xff]   ;;  %v6378_v13 = vld [vmem:[%s6603_s29 + $0x58] sm:$0xff]   ;;  %vm1519_vm14 = vsmask.f32 7440  ;;  %s8842_s10 = scalar_lea.vmem %s9028_s5, %s5949_s6 }
  0x16   : > { %6258 = vmatprep.mubr.msk.bf16.mxu0 %vm414_vm0, %v6369_v4  ;;  %v6379_v14 = vld [vmem:[%s6603_s29 + $0x60] sm:$0xff]   ;;  %v6380_v15 = vld [vmem:[%s6603_s29 + $0x68] sm:$0xff]   ;;  %v6381_v16 = vld [vmem:[%s6603_s29 + $0x70] sm:$0xff]  }
  0x17   : > { %v6382_v17 = vld [vmem:[%s6603_s29 + $0x78] sm:$0xff]   ;;  %v6383_v18 = vld [vmem:[%s6603_s29 + $0x80] sm:$0xff]   ;;  %v6384_v19 = vld [vmem:[%s6603_s29 + $0x88] sm:$0xff]  }
  0x18   : > { %v691_v32 = vld [vmem:[#allocation2 + $0x18] sm:$0x1]  ;;  %v750_v34 = vld [vmem:[#allocation2 + $0x2c] sm:$0x1]  ;;  %v747_v36 = vld [vmem:[#allocation2 + $0x20] sm:$0x1] }
  0x19   : > { %v692_v33 = vsel %vm6643_vm3, 0, %v691_v32  ;;  %v751_v35 = vsel %vm6653_vm5, 0, %v750_v34  ;;  %v748_v37 = vsel %vm6653_vm5, 0, %v747_v36  ;;  %v700_v38 = vld [vmem:[#allocation2 + $0x3c] sm:$0x1]  ;;  %vm6710_vm8 = vmand %vm1265_vm6, %vm739_vm4 }
  0x1a   : > { %693 = vst [vmem:[#allocation2 + $0x18] sm:$0x1] %v692_v33  ;;  %752 = vst [vmem:[#allocation2 + $0x2c] sm:$0x1] %v751_v35  ;;  %v697_v39 = vld [vmem:[#allocation2 + $0x30] sm:$0x1] }
  0x1b   : > { %749 = vst [vmem:[#allocation2 + $0x20] sm:$0x1] %v748_v37  ;;  %v701_v40 = vsel %vm6643_vm3, 0, %v700_v38  ;;  %v698_v41 = vsel %vm6643_vm3, 0, %v697_v39  ;;  %v756_v42 = vld [vmem:[#allocation2 + $0x44] sm:$0x1]  ;;  %vm6722_vm9 = vmor %vm683_vm2, %vm903_vm7 }
  0x1c   : > { %702 = vst [vmem:[#allocation2 + $0x3c] sm:$0x1] %v701_v40  ;;  %699 = vst [vmem:[#allocation2 + $0x30] sm:$0x1] %v698_v41  ;;  %v757_v43 = vsel %vm6653_vm5, 0, %v756_v42  ;;  %vm5554_vm2 = vcmask 64512  }
  0x1d   : > { %6259 = vmatmul.mubr.msk.bf16.gmra.mxu0 %vm414_vm0, %v6370_v5  ;;  %v753_v44 = vld [vmem:[#allocation2 + $0x38] sm:$0x1]  ;;  %758 = vst [vmem:[#allocation2 + $0x44] sm:$0x1] %v757_v43  ;;  %v706_v46 = vld [vmem:[#allocation2 + $0x54] sm:$0x1]  ;;  %vm6756_vm12 = vmor %vm2130_vm10, %vm2131_vm11 }
  0x1e   : > { %6262 = vmatprep.mubr.msk.bf16.mxu0 %vm414_vm0, %v6371_v6  ;;  %v754_v45 = vsel %vm6653_vm5, 0, %v753_v44  ;;  %v707_v47 = vsel %vm6643_vm3, 0, %v706_v46  ;;  %v703_v48 = vld [vmem:[#allocation2 + $0x48] sm:$0x1]  ;;  %v762_v50 = vld [vmem:[#allocation2 + $0x5c] sm:$0x1]  ;;  %vm6809_vm15 = vmor %vm1518_vm13, %vm1519_vm14 }
  0x1f   : > { %755 = vst [vmem:[#allocation2 + $0x38] sm:$0x1] %v754_v45  ;;  %708 = vst [vmem:[#allocation2 + $0x54] sm:$0x1] %v707_v47  ;;  %v704_v49 = vsel %vm6643_vm3, 0, %v703_v48  ;;  %v763_v51 = vsel %vm6653_vm5, 0, %v762_v50 }
  0x20   : > { %705 = vst [vmem:[#allocation2 + $0x48] sm:$0x1] %v704_v49  ;;  %764 = vst [vmem:[#allocation2 + $0x5c] sm:$0x1] %v763_v51  ;;  %v759_v52 = vld [vmem:[#allocation2 + $0x50] sm:$0x1] }
  0x21   : > { %v760_v53 = vsel %vm6653_vm5, 0, %v759_v52  ;;  %v712_v54 = vld [vmem:[#allocation2 + $0x6c] sm:$0x1]  ;;  %v709_v56 = vld [vmem:[#allocation2 + $0x60] sm:$0x1] }
  0x22   : > { %761 = vst [vmem:[#allocation2 + $0x50] sm:$0x1] %v760_v53  ;;  %v713_v55 = vsel %vm6643_vm3, 0, %v712_v54  ;;  %v710_v57 = vsel %vm6643_vm3, 0, %v709_v56  ;;  %v768_v58 = vld [vmem:[#allocation2 + $0x74] sm:$0x1] }
  0x23   : > { %714 = vst [vmem:[#allocation2 + $0x6c] sm:$0x1] %v713_v55  ;;  %711 = vst [vmem:[#allocation2 + $0x60] sm:$0x1] %v710_v57  ;;  %v769_v59 = vsel %vm6653_vm5, 0, %v768_v58 }
  0x24   : > { %770 = vst [vmem:[#allocation2 + $0x74] sm:$0x1] %v769_v59  ;;  %v765_v60 = vld [vmem:[#allocation2 + $0x68] sm:$0x1]  ;;  %v6696_v62 = vld [vmem:[%s9025_s2] ss:$0 sm:$0xff] }
  0x25   : > { %6263 = vmatmul.mubr.msk.bf16.gmra.mxu0 %vm414_vm0, %v6372_v7  ;;  %v766_v61 = vsel %vm6653_vm5, 0, %v765_v60  ;;  %v718_v63 = vld [vmem:[#allocation2 + $0x84] sm:$0x1]  ;;  %v715_v2 = vld [vmem:[#allocation2 + $0x78] sm:$0x1] }
  0x26   : > { %6266 = vmatprep.mubr.msk.bf16.mxu0 %vm414_vm0, %v6373_v8  ;;  %767 = vst [vmem:[#allocation2 + $0x68] sm:$0x1] %v766_v61  ;;  %v719_v0 = vsel %vm6643_vm3, 0, %v718_v63  ;;  %v716_v4 = vsel %vm6643_vm3, 0, %v715_v2  ;;  %v774_v6 = vld [vmem:[#allocation2 + $0x8c] sm:$0x1] }
  0x27   : > { %720 = vst [vmem:[#allocation2 + $0x84] sm:$0x1] %v719_v0  ;;  %717 = vst [vmem:[#allocation2 + $0x78] sm:$0x1] %v716_v4  ;;  %v771_v21 = vld [vmem:[#allocation2 + $0x80] sm:$0x1] }
  0x28   : > { %v1275_v28 = vld [vmem:[#allocation2 + $0xc] sm:$0xf]  ;;  %v772_v33 = vsel %vm6653_vm5, 0, %v771_v21  ;;  %v1267_v38 = vld [vmem:[#allocation2] sm:$0xf] }
  0x29   : > { %773 = vst [vmem:[#allocation2 + $0x80] sm:$0x1] %v772_v33  ;;  %v1279_v49 = vld [vmem:[#allocation2 + $0x14] sm:$0x1]  ;;  %v1272_v4 = vld [vmem:[#allocation2 + $0x8] sm:$0x1] }
  0x2d   : > { %6267 = vmatmul.mubr.msk.bf16.gmra.mxu0 %vm414_vm0, %v6374_v9  ;;  %v775_v9 = vsel %vm6653_vm5, 0, %v774_v6 }
  0x2e   : > { %6270 = vmatprep.mubr.msk.bf16.mxu0 %vm414_vm0, %v6375_v10  ;;  %776 = vst [vmem:[#allocation2 + $0x8c] sm:$0x1] %v775_v9 }
  0x35   : > { %6271 = vmatmul.mubr.msk.bf16.gmra.mxu0 %vm414_vm0, %v6376_v11 }
  0x36   : > { %6274 = vmatprep.mubr.msk.bf16.mxu0 %vm414_vm0, %v6377_v12 }
  0x3d   : > { %6275 = vmatmul.mubr.msk.bf16.gmra.mxu0 %vm414_vm0, %v6378_v13 }
  0x3e   : > { %6278 = vmatprep.mubr.msk.bf16.mxu0 %vm414_vm0, %v6379_v14 }
  0x45   : > { %6279 = vmatmul.mubr.msk.bf16.gmra.mxu0 %vm414_vm0, %v6380_v15 }
  0x46   : > { %6282 = vmatprep.mubr.msk.bf16.mxu0 %vm414_vm0, %v6381_v16 }
  0x4d   : > { %6283 = vmatmul.mubr.msk.bf16.gmra.mxu0 %vm414_vm0, %v6382_v17 }
  0x4e   : > { %6286 = vmatprep.mubr.msk.bf16.mxu0 %vm414_vm0, %v6383_v18 }
  0x55   : > { %6287 = vmatmul.mubr.msk.bf16.gmra.mxu0 %vm414_vm0, %v6384_v19  ;;  %vm2001_vm0 = vcmask 1043968  }
  0xd5   : > { %v6256_v1 = vpop.f32.mrf.mxu0 }
  0xd6   : > { %v512_v3 = vadd.f32 %v6256_v1, %v6696_v62  ;;  %v9040_v1 = vmov 0  }
  0xd7   : > { %v503_v5 = vpop.f32.mrf.mxu0 }
  0xd8   : > { %v648_v7 = vmax.f32 %v512_v3, 0.0  ;;  %v504_v8 = vadd.f32 %v6696_v62, %v503_v5 }
  0xd9   : > { %v6257_v10 = vpop.f32.mrf.mxu0 }
  0xda   : > { %v5952_v11 = vpack.c.bf16 %v648_v7, %v648_v7  ;;  %v646_v12 = vmax.f32 %v504_v8, 0.0  ;;  %v515_v13 = vadd.f32 %v6257_v10, %v6696_v62 }
  0xdb   : > { %v506_v14 = vpop.f32.mrf.mxu0 }
  0xdc   : > { %v923_v15 = vshrl.u32 %v5952_v11, 16  ;;  %v5950_v16 = vpack.c.bf16 %v646_v12, %v646_v12  ;;  %v649_v17 = vmax.f32 %v515_v13, 0.0  ;;  %v507_v18 = vadd.f32 %v6696_v62, %v506_v14  ;;  %v1289_v12 = vld [vmem:[#allocation2 + $0x24] sm:$0xf] }
  0xdd   : > { %v6260_v19 = vpop.f32.mrf.mxu0  ;;  %v926_v23 = vshll.u32 %v5952_v11, 16 }
  0xde   : > { %v925_v22 = vrot.slane %v923_v15, 7  ;;  %v906_v24 = vshrl.u32 %v5950_v16, 16  ;;  %v5953_v26 = vpack.c.bf16 %v649_v17, %v649_v17  ;;  %v909_v29 = vshll.u32 %v5950_v16, 16 }
  0xdf   : > { %v647_v30 = vmax.f32 %v507_v18, 0.0  ;;  %v528_v31 = vadd.f32 %v6260_v19, %v6696_v62  ;;  %v519_v32 = vpop.f32.mrf.mxu0 }
  0xe0   : > { %v928_v34 = vor.u32 %v926_v23, %v925_v22  ;;  %v929_v35 = vrot.slane %v925_v22, 4  ;;  %v908_v36 = vrot.slane %v906_v24, 7  ;;  %v931_v37 = vshrl.u32 %v5953_v26, 16 }
  0xe1   : > { %v934_v39 = vshll.u32 %v5953_v26, 16  ;;  %v5951_v40 = vpack.c.bf16 %v647_v30, %v647_v30  ;;  %v652_v41 = vmax.f32 %v528_v31, 0.0  ;;  %v520_v42 = vadd.f32 %v6696_v62, %v519_v32  ;;  %v6261_v43 = vpop.f32.mrf.mxu0  ;;  %v1282_v31 = vld [vmem:[#allocation2 + $0x18] sm:$0xf] }
  0xe2   : > { %v1276_v44 = vsel %vm6710_vm8, %v928_v34, %v1275_v28  ;;  %v911_v45 = vor.u32 %v909_v29, %v908_v36  ;;  %v912_v46 = vrot.slane %v908_v36, 4  ;;  %v933_v47 = vrot.slane %v931_v37, 7 }
  0xe3   : > { %1277 = vst [vmem:[#allocation2 + $0xc] sm:$0xf] %v1276_v44  ;;  %v914_v50 = vshrl.u32 %v5951_v40, 16  ;;  %v917_v51 = vshll.u32 %v5951_v40, 16  ;;  %v5956_v52 = vpack.c.bf16 %v652_v41, %v652_v41  ;;  %v650_v53 = vmax.f32 %v520_v42, 0.0  ;;  %v522_v54 = vpop.f32.mrf.mxu0 }
  0xe4   : > { %v1268_v55 = vsel %vm6710_vm8, %v911_v45, %v1267_v38  ;;  %v936_v56 = vor.u32 %v934_v39, %v933_v47  ;;  %v938_v57 = vrot.slane %v933_v47, 4  ;;  %v531_v58 = vadd.f32 %v6261_v43, %v6696_v62  ;;  %v1293_v40 = vld [vmem:[#allocation2 + $0x2c] sm:$0x1] }
  0xe5   : > { %1269 = vst [vmem:[#allocation2] sm:$0xf] %v1268_v55  ;;  %v916_v59 = vrot.slane %v914_v50, 7  ;;  %v957_v60 = vshrl.u32 %v5956_v52, 16  ;;  %v960_v61 = vshll.u32 %v5956_v52, 16  ;;  %v5954_v63 = vpack.c.bf16 %v650_v53, %v650_v53  ;;  %v6264_v0 = vpop.f32.mrf.mxu0 }
  0xe6   : > { %1398 = vst.msk [vmem:[#allocation2] sm:$0xf] %vm1265_vm6, %v9040_v1  ;;  %v937_v2 = vsel %vm6722_vm9, %v929_v35, %v936_v56  ;;  %v1280_v3 = vsel %vm6643_vm3, %v938_v57, %v1279_v49  ;;  %v653_v5 = vmax.f32 %v531_v58, 0.0  ;;  %v523_v6 = vadd.f32 %v6696_v62, %v522_v54  ;;  %v1286_v53 = vld [vmem:[#allocation2 + $0x20] sm:$0x1] }
  0xe7   : > { %1278 = vst.msk [vmem:[#allocation2 + $0x10] sm:$0xf] %vm1265_vm6, %v937_v2  ;;  %1281 = vst [vmem:[#allocation2 + $0x14] sm:$0x1] %v1280_v3  ;;  %v919_v7 = vor.u32 %v917_v51, %v916_v59  ;;  %v921_v8 = vrot.slane %v916_v59, 4  ;;  %v959_v9 = vrot.slane %v957_v60, 7  ;;  %v535_v11 = vpop.f32.mrf.mxu0  ;;  %v544_v16 = vadd.f32 %v6264_v0, %v6696_v62 }
  0xe8   : > { %v940_v10 = vshrl.u32 %v5954_v63, 16  ;;  %v943_v13 = vshll.u32 %v5954_v63, 16  ;;  %v5957_v14 = vpack.c.bf16 %v653_v5, %v653_v5  ;;  %v651_v15 = vmax.f32 %v523_v6, 0.0 }
  0xe9   : > { %v920_v17 = vsel %vm6722_vm9, %v912_v46, %v919_v7  ;;  %v1273_v18 = vsel %vm6643_vm3, %v921_v8, %v1272_v4  ;;  %v962_v19 = vor.u32 %v960_v61, %v959_v9  ;;  %v963_v21 = vrot.slane %v959_v9, 4  ;;  %v6265_v29 = vpop.f32.mrf.mxu0  ;;  %v1303_v9 = vld [vmem:[#allocation2 + $0x3c] sm:$0xf] }
  0xea   : > { %1271 = vst.msk [vmem:[#allocation2 + $0x4] sm:$0xf] %vm1265_vm6, %v920_v17  ;;  %1274 = vst [vmem:[#allocation2 + $0x8] sm:$0x1] %v1273_v18  ;;  %v942_v22 = vrot.slane %v940_v10, 7  ;;  %v965_v23 = vshrl.u32 %v5957_v14, 16  ;;  %v5955_v26 = vpack.c.bf16 %v651_v15, %v651_v15  ;;  %v536_v33 = vadd.f32 %v6696_v62, %v535_v11 }
  0xeb   : > { %v968_v24 = vshll.u32 %v5957_v14, 16  ;;  %v2310_v28 = vld [vmem:[#allocation2 + $0xc] sm:$0xf]  ;;  %1399 = vst.msk [vmem:[#allocation2 + $0x4] sm:$0xf] %vm1265_vm6, %v9040_v1  ;;  %v1290_v30 = vsel %vm6710_vm8, %v962_v19, %v1289_v12  ;;  %v656_v32 = vmax.f32 %v544_v16, 0.0  ;;  %v547_v35 = vadd.f32 %v6265_v29, %v6696_v62  ;;  %v538_v5 = vpop.f32.mrf.mxu0 }
  0xec   : > { %1401 = vst.msk [vmem:[#allocation2 + $0x8] sm:$0x1] %vm682_vm1, %v9040_v1  ;;  %2374 = vrot.lane.b32.xlu1 %v2310_v28, %s6542_s7  ;;  %v2998_v34 = vld [vmem:[#allocation2 + $0xc] sm:$0xe]  ;;  %1291 = vst [vmem:[#allocation2 + $0x24] sm:$0xf] %v1290_v30  ;;  %v945_v36 = vor.u32 %v943_v13, %v942_v22  ;;  %v539_v19 = vadd.f32 %v6696_v62, %v538_v5 }
  0xed   : > { %v946_v37 = vrot.slane %v942_v22, 4  ;;  %v967_v38 = vrot.slane %v965_v23, 7  ;;  %v948_v39 = vshrl.u32 %v5955_v26, 16  ;;  %v951_v41 = vshll.u32 %v5955_v26, 16  ;;  %v1473_v6 = vld [vmem:[#allocation2 + $0xc] sm:$0xf] }
  0xee   : > { %v5960_v42 = vpack.c.bf16 %v656_v32, %v656_v32  ;;  %v654_v43 = vmax.f32 %v536_v33, 0.0  ;;  %v5782_v44 = vrot.slane %v2998_v34, 9  ;;  %v1283_v45 = vsel %vm6710_vm8, %v945_v36, %v1282_v31  ;;  %v2311_v51 = vld [vmem:[#allocation2 + $0x10] sm:$0xf]  ;;  %v3000_v63 = vld [vmem:[#allocation2 + $0x14] sm:$0x1] }
  0xef   : > { %v970_v46 = vor.u32 %v968_v24, %v967_v38  ;;  %v972_v47 = vrot.slane %v967_v38, 4  ;;  %v950_v50 = vrot.slane %v948_v39, 7  ;;  %v2999_v52 = vld [vmem:[#allocation2 + $0x10] sm:$0xf]  ;;  %1284 = vst [vmem:[#allocation2 + $0x18] sm:$0xf] %v1283_v45 }
  0xf0   : > { %v991_v54 = vshrl.u32 %v5960_v42, 16  ;;  %v994_v55 = vshll.u32 %v5960_v42, 16  ;;  %2376 = vrot.lane.b32.xlu1 %v2311_v51, %s6542_s7  ;;  %v5958_v56 = vpack.c.bf16 %v654_v43, %v654_v43  ;;  %v3096_v57 = vrot.slane %v2999_v52, 5  ;;  %v1296_v17 = vld [vmem:[#allocation2 + $0x30] sm:$0xf]  ;;  %v6385_v30 = vld [vmem:[%s9026_s3 + $0x78] sm:$0xff]  }
  0xf1   : > { %v971_v58 = vsel %vm6722_vm9, %v963_v21, %v970_v46  ;;  %v1294_v59 = vsel %vm6643_vm3, %v972_v47, %v1293_v40  ;;  %v953_v60 = vor.u32 %v951_v41, %v950_v50  ;;  %v955_v61 = vrot.slane %v950_v50, 4  ;;  %v1474_v21 = vld [vmem:[#allocation2 + $0x10] sm:$0xf]  ;;  %6006 = vmatprep.subr.bf16.mxu1 %v6385_v30 }
  0xf2   : > { %1292 = vst.msk [vmem:[#allocation2 + $0x28] sm:$0xf] %vm1265_vm6, %v971_v58  ;;  %1295 = vst [vmem:[#allocation2 + $0x2c] sm:$0x1] %v1294_v59  ;;  %v6766_v0 = vrot.slane %v991_v54, 7  ;;  %v974_v2 = vshrl.u32 %v5958_v56, 16  ;;  %v3097_v4 = vsel %vm6756_vm12, %v5782_v44, %v3096_v57 }
  0xf3   : > { %v977_v3 = vshll.u32 %v5958_v56, 16  ;;  %v954_v7 = vsel %vm6722_vm9, %v946_v37, %v953_v60  ;;  %v1287_v8 = vsel %vm6643_vm3, %v955_v61, %v1286_v53  ;;  %3206 = vrot.lane.b32.xlu0 %v3097_v4, %s6542_s7  ;;  %v657_v10 = vmax.f32 %v547_v35, 0.0  ;;  %v3962_v12 = vld [vmem:[#allocation2 + $0x24] sm:$0xe]  ;;  %v1475_v35 = vld [vmem:[#allocation2 + $0x14] sm:$0x1] }
  0xf4   : > { %v3098_v11 = vrot.slane %v3096_v57, 4  ;;  %1285 = vst.msk [vmem:[#allocation2 + $0x1c] sm:$0xf] %vm1265_vm6, %v954_v7  ;;  %1288 = vst [vmem:[#allocation2 + $0x20] sm:$0x1] %v1287_v8  ;;  %v996_v13 = vor.u32 %v994_v55, %v6766_v0  ;;  %v6777_v14 = vrot.slane %v974_v2, 7  ;;  %v6268_v8 = vpop.f32.mrf.mxu0 }
  0xf5   : > { %v3099_v15 = vrot.slane %v3000_v63, 5  ;;  %v997_v16 = vrot.slane %v6766_v0, 4  ;;  %v5961_v18 = vpack.c.bf16 %v657_v10, %v657_v10  ;;  %v1546_v22 = vshrl.u32 %v1473_v6, 16  ;;  %v2314_v29 = vld [vmem:[#allocation2 + $0x24] sm:$0xf]  ;;  %v6386_v58 = vld [vmem:[%s9026_s3 + $0x38] sm:$0xff]  }
  0xf6   : > { %v5799_v23 = vrot.slane %v3962_v12, 9  ;;  %v1304_v24 = vsel %vm6710_vm8, %v996_v13, %v1303_v9  ;;  %v979_v26 = vor.u32 %v977_v3, %v6777_v14  ;;  %v980_v31 = vrot.slane %v6777_v14, 4  ;;  %v1307_v37 = vld [vmem:[#allocation2 + $0x44] sm:$0x1]  ;;  %6007 = vmatpush3.bf16.msra.mxu1 %v6386_v58  ;;  %v2312_v14 = vld [vmem:[#allocation2 + $0x18] sm:$0xf] }
  0xf7   : > { %v3100_v28 = vsel %vm6756_vm12, %v3098_v11, %v3099_v15  ;;  %1305 = vst [vmem:[#allocation2 + $0x3c] sm:$0xf] %v1304_v24  ;;  %v999_v32 = vshrl.u32 %v5961_v18, 16  ;;  %v1002_v33 = vshll.u32 %v5961_v18, 16  ;;  %v655_v34 = vmax.f32 %v539_v19, 0.0  ;;  %2382 = vrot.lane.b32.xlu0 %v2314_v29, %s6542_s7 }
  0xf8   : > { %3208 = vrot.lane.b32.xlu1 %v3100_v28, %s6542_s7  ;;  %v1297_v36 = vsel %vm6710_vm8, %v979_v26, %v1296_v17  ;;  %v1548_v38 = vrot.slane %v1546_v22, 4  ;;  %v1549_v39 = vshll.u32 %v1473_v6, 16  ;;  %v1555_v40 = vshll.u32 %v1474_v21, 16  ;;  %v1470_v6 = vld [vmem:[#allocation2] sm:$0xf] }
  0xf9   : > { %v3963_v41 = vld [vmem:[#allocation2 + $0x28] sm:$0xf]  ;;  %v3964_v42 = vld [vmem:[#allocation2 + $0x2c] sm:$0x1]  ;;  %1298 = vst [vmem:[#allocation2 + $0x30] sm:$0xf] %v1297_v36  ;;  %v5959_v44 = vpack.c.bf16 %v655_v34, %v655_v34  ;;  %v6818_v13 = vadd.f32 %v6268_v8, %v6696_v62 }
  0xfa   : > { %v1001_v43 = vrot.slane %v999_v32, 7  ;;  %v1559_v45 = vshrl.u32 %v1474_v21, 16  ;;  %v4064_v46 = vrot.slane %v3963_v41, 5  ;;  %v2315_v47 = vld [vmem:[#allocation2 + $0x28] sm:$0xf]  ;;  %v1551_v50 = vrot.slane %v1549_v39, 5 }
  0xfb   : > { %v1557_v51 = vrot.slane %v1555_v40, 5  ;;  %v1565_v52 = vshll.u32 %v1475_v35, 16  ;;  %v6794_v53 = vld [vmem:[#allocation2 + $0x1c] sm:$0xf]  ;;  %v982_v56 = vshrl.u32 %v5959_v44, 16  ;;  %v985_v57 = vshll.u32 %v5959_v44, 16 }
  0xfc   : > { %9055 = vst [vmem:[#allocation4_spill] sm:$0xff] %v6794_v53  ;;  %v1004_v54 = vor.u32 %v1002_v33, %v1001_v43  ;;  %v1006_v55 = vrot.slane %v1001_v43, 4  ;;  %2384 = vrot.lane.b32.xlu1 %v2315_v47, %s6542_s7  ;;  %v4065_v59 = vsel %vm6756_vm12, %v5799_v23, %v4064_v46  ;;  %v4066_v60 = vrot.slane %v4064_v46, 4  ;;  %v1471_v7 = vld [vmem:[#allocation2 + $0x4] sm:$0xf]  ;;  %v6387_v46 = vld [vmem:[%s9026_s3 + $0x70] sm:$0xff]  }
  0xfd   : > { %v4067_v61 = vrot.slane %v3964_v42, 5  ;;  %v1552_v63 = vor.u32 %v1551_v50, %v1548_v38  ;;  %4201 = vst.msk [vmem:[#allocation3 + $0x38] sm:$0xf] %vm1265_vm6, %v4065_v59  ;;  %v984_v3 = vrot.slane %v982_v56, 7  ;;  %v1561_v5 = vrot.slane %v1559_v45, 4  ;;  %v551_v45 = vpop.f32.mrf.mxu0  ;;  %6008 = vmatprep.subr.bf16.mxu1 %v6387_v46 }
  0xfe   : > { %v1005_v0 = vsel %vm6722_vm9, %v997_v16, %v1004_v54  ;;  %v1308_v2 = vsel %vm6643_vm3, %v1006_v55, %v1307_v37  ;;  %v9029_v10 = vrot.slane %v6794_v53, 5  ;;  %v1300_v11 = vld [vmem:[#allocation2 + $0x38] sm:$0x1]  ;;  %v1567_v18 = vrot.slane %v1565_v52, 5  ;;  %v6821_v19 = vld [vmem:[#allocation2 + $0x28] sm:$0xf] }
  0xff   : > { %v4068_v9 = vsel %vm6756_vm12, %v4066_v60, %v4067_v61  ;;  %1306 = vst.msk [vmem:[#allocation2 + $0x40] sm:$0xf] %vm1265_vm6, %v1005_v0  ;;  %1309 = vst [vmem:[#allocation2 + $0x44] sm:$0x1] %v1308_v2  ;;  %v1553_v12 = vrot.slane %v1552_v63, 4  ;;  %v987_v15 = vor.u32 %v985_v57, %v984_v3  ;;  %v989_v16 = vrot.slane %v984_v3, 4 }
 0x100   : > { %4202 = vst.msk [vmem:[#allocation3 + $0x4c] sm:$0xf] %vm1265_vm6, %v4068_v9  ;;  %v1562_v17 = vor.u32 %v1561_v5, %v1557_v51  ;;  %v6823_v21 = vld [vmem:[#allocation2 + $0x1c] sm:$0xf]  ;;  %v1522_v24 = vshrl.u32 %v1470_v6, 16  ;;  %v1525_v26 = vshll.u32 %v1470_v6, 16  ;;  %v552_v60 = vadd.f32 %v6696_v62, %v551_v45 }
 0x101   : > { %v3968_v22 = vld [vmem:[#allocation2 + $0x3c] sm:$0xe]  ;;  %v1558_v23 = vsel %vm6809_vm15, %v1553_v12, %v1557_v51  ;;  %v1531_v28 = vshll.u32 %v1471_v7, 16  ;;  %v1472_v29 = vld [vmem:[#allocation2 + $0x8] sm:$0x1]  ;;  %v988_v30 = vsel %vm6722_vm9, %v980_v31, %v987_v15  ;;  %v1301_v32 = vsel %vm6643_vm3, %v989_v16, %v1300_v11  ;;  %v6388_v55 = vld [vmem:[%s9026_s3 + $0x30] sm:$0xff]   ;;  %v6269_v11 = vpop.f32.mrf.mxu0 }
 0x102   : > { %1909 = vrot.lane.b32.xlu0 %v1558_v23, %s6542_s7  ;;  %v1563_v33 = vrot.slane %v1562_v17, 4  ;;  %v1535_v34 = vshrl.u32 %v1471_v7, 16  ;;  %v3006_v35 = vld [vmem:[#allocation2 + $0x2c] sm:$0x1]  ;;  %v3004_v36 = vld [vmem:[#allocation2 + $0x24] sm:$0xe]  ;;  %6009 = vmatpush3.bf16.msra.mxu1 %v6388_v55  ;;  %v563_v45 = vadd.f32 %v6269_v11, %v6696_v62 }
 0x103   : > { %v6836_v37 = vrot.slane %v9029_v10, 4  ;;  %1299 = vst.msk [vmem:[#allocation2 + $0x34] sm:$0xf] %vm1265_vm6, %v988_v30  ;;  %1302 = vst [vmem:[#allocation2 + $0x38] sm:$0x1] %v1301_v32  ;;  %v1524_v38 = vrot.slane %v1522_v24, 4 }
 0x104   : > { %v1527_v39 = vrot.slane %v1525_v26, 5  ;;  %v3110_v31 = vrot.slane %v6821_v19, 5  ;;  %v5801_v40 = vrot.slane %v3968_v22, 9  ;;  %v1568_v41 = vsel %vm6809_vm15, %v1563_v33, %v1567_v18  ;;  %v3003_v43 = vld [vmem:[#allocation2 + $0x20] sm:$0x1]  ;;  %v6389_v3 = vld [vmem:[%s9026_s3 + $0x68] sm:$0xff]  }
 0x105   : > { %9058 = vst [vmem:[#allocation5_spill] sm:$0xff] %v6836_v37  ;;  %v1533_v42 = vrot.slane %v1531_v28, 5  ;;  %v3103_v44 = vrot.slane %v6823_v21, 5  ;;  %1911 = vrot.lane.b32.xlu1 %v1568_v41, %s6542_s7  ;;  %v3113_v50 = vrot.slane %v3006_v35, 5  ;;  %v5784_v51 = vrot.slane %v3004_v36, 9  ;;  %6010 = vmatprep.subr.bf16.mxu1 %v6389_v3  ;;  %v6390_v24 = vld [vmem:[%s9026_s3 + $0x28] sm:$0xff]  }
 0x106   : > { %v1528_v47 = vor.u32 %v1527_v39, %v1524_v38  ;;  %v1537_v52 = vrot.slane %v1535_v34, 4  ;;  %v1480_v54 = vld [vmem:[#allocation2 + $0x28] sm:$0xf]  ;;  %v3969_v56 = vld [vmem:[#allocation2 + $0x40] sm:$0xf]  ;;  %2378 = vrot.lane.b32.xlu0 %v2312_v14, %s6542_s7  ;;  %v3112_v58 = vrot.slane %v3110_v31, 4  ;;  %v554_v14 = vpop.f32.mrf.mxu0  ;;  %6011 = vmatpush3.bf16.msra.mxu1 %v6390_v24 }
 0x107   : > { %v3970_v57 = vld [vmem:[#allocation2 + $0x44] sm:$0x1]  ;;  %v1541_v59 = vshll.u32 %v1472_v29, 16  ;;  %v4078_v61 = vrot.slane %v3969_v56, 5  ;;  %v3106_v2 = vrot.slane %v3003_v43, 5  ;;  %v3105_v6 = vrot.slane %v3103_v44, 4 }
 0x108   : > { %v4081_v63 = vrot.slane %v3970_v57, 5  ;;  %v1529_v0 = vrot.slane %v1528_v47, 4  ;;  %v2313_v5 = vld [vmem:[#allocation2 + $0x1c] sm:$0xf]  ;;  %v1538_v7 = vor.u32 %v1537_v52, %v1533_v42  ;;  %v660_v9 = vmax.f32 %v6818_v13, 0.0  ;;  %v6391_v38 = vld [vmem:[%s9026_s3 + $0x60] sm:$0xff]  }
 0x109   : > { %v1543_v8 = vrot.slane %v1541_v59, 5  ;;  %v4079_v12 = vsel %vm6756_vm12, %v5801_v40, %v4078_v61  ;;  %v4080_v15 = vrot.slane %v4078_v61, 4  ;;  %2380 = vrot.lane.b32.xlu1 %v2313_v5, %s6542_s7  ;;  %v658_v17 = vmax.f32 %v552_v60, 0.0  ;;  %v1481_v18 = vld [vmem:[#allocation2 + $0x2c] sm:$0x1]  ;;  %6012 = vmatprep.subr.bf16.mxu1 %v6391_v38  ;;  %v6392_v47 = vld [vmem:[%s9026_s3 + $0x20] sm:$0xff]  }
 0x10a   : > { %v1534_v16 = vsel %vm6809_vm15, %v1529_v0, %v1533_v42  ;;  %4205 = vst.msk [vmem:[#allocation3 + $0x88] sm:$0xf] %vm1265_vm6, %v4079_v12  ;;  %v1539_v19 = vrot.slane %v1538_v7, 4  ;;  %v5964_v22 = vpack.c.bf16 %v660_v9, %v660_v9  ;;  %v1603_v13 = vshll.u32 %v1480_v54, 16  ;;  %v1479_v32 = vld [vmem:[#allocation2 + $0x24] sm:$0xf]  ;;  %6013 = vmatpush3.bf16.msra.mxu1 %v6392_v47 }
 0x10b   : > { %1905 = vrot.lane.b32.xlu0 %v1534_v16, %s6542_s7  ;;  %v1607_v23 = vshrl.u32 %v1480_v54, 16  ;;  %v4082_v26 = vsel %vm6756_vm12, %v4080_v15, %v4081_v63  ;;  %v3114_v28 = vsel %vm6756_vm12, %v3112_v58, %v3113_v50  ;;  %v3111_v29 = vsel %vm6756_vm12, %v5784_v51, %v3110_v31  ;;  %v1317_v50 = vld [vmem:[#allocation2 + $0x54] sm:$0xf]  ;;  %v3403_v56 = vld [vmem:[#allocation2 + $0x28] sm:$0xf]  ;;  %v6393_v5 = vld [vmem:[%s9026_s3 + $0x58] sm:$0xff]  }
 0x10c   : > { %v5962_v30 = vpack.c.bf16 %v658_v17, %v658_v17  ;;  %4206 = vst.msk [vmem:[#allocation3 + $0x9c] sm:$0xf] %vm1265_vm6, %v4082_v26  ;;  %v1025_v33 = vshrl.u32 %v5964_v22, 16  ;;  %v1028_v34 = vshll.u32 %v5964_v22, 16  ;;  %v6875_v35 = vrot.slane %v1603_v13, 5  ;;  %6014 = vmatprep.subr.bf16.mxu1 %v6393_v5  ;;  %v6394_v22 = vld [vmem:[%s9026_s3 + $0x18] sm:$0xff]  }
 0x10d   : > { %v1613_v36 = vshll.u32 %v1481_v18, 16  ;;  %3216 = vrot.lane.b32.xlu1 %v3114_v28, %s6542_s7  ;;  %v3107_v39 = vsel %vm6756_vm12, %v3105_v6, %v3106_v2  ;;  %v1609_v41 = vrot.slane %v1607_v23, 4  ;;  %v1544_v42 = vsel %vm6809_vm15, %v1539_v19, %v1543_v8  ;;  %v1310_v58 = vld [vmem:[#allocation2 + $0x48] sm:$0xf]  ;;  %v2319_v6 = vld [vmem:[#allocation2 + $0x40] sm:$0xf] }
 0x10e   : > { %v1008_v31 = vshrl.u32 %v5962_v30, 16  ;;  %v1011_v40 = vshll.u32 %v5962_v30, 16  ;;  %v6886_v43 = vrot.slane %v1025_v33, 7  ;;  %v1594_v46 = vshrl.u32 %v1479_v32, 16  ;;  %v3404_v11 = vld [vmem:[#allocation2 + $0x2c] sm:$0x1]  ;;  %6015 = vmatpush3.bf16.msra.mxu1 %v6394_v22 }
 0x10f   : > { %3214 = vrot.lane.b32.xlu0 %v3111_v29, %s6542_s7  ;;  %v1610_v52 = vor.u32 %v1609_v41, %v6875_v35  ;;  %v1597_v54 = vshll.u32 %v1479_v32, 16  ;;  %v555_v55 = vadd.f32 %v6696_v62, %v554_v14  ;;  %v1615_v59 = vrot.slane %v1613_v36, 5  ;;  %v3402_v19 = vld [vmem:[#allocation2 + $0x24] sm:$0xf]  ;;  %v3001_v28 = vld [vmem:[#allocation2 + $0x18] sm:$0xe] }
 0x110   : > { %v6892_v51 = vrot.slane %v1008_v31, 7  ;;  %v1030_v57 = vor.u32 %v1028_v34, %v6886_v43  ;;  %v661_v60 = vmax.f32 %v563_v45, 0.0  ;;  %v1596_v61 = vrot.slane %v1594_v46, 4  ;;  %v2318_v29 = vld [vmem:[#allocation2 + $0x3c] sm:$0xf] }
 0x111   : > { %3212 = vrot.lane.b32.xlu1 %v3107_v39, %s6542_s7  ;;  %v1031_v63 = vrot.slane %v6886_v43, 4  ;;  %v1611_v2 = vrot.slane %v1610_v52, 4  ;;  %v1599_v3 = vrot.slane %v1597_v54, 5  ;;  %v659_v9 = vmax.f32 %v555_v55, 0.0  ;;  %v1477_v31 = vld [vmem:[#allocation2 + $0x1c] sm:$0xf] }
 0x112   : > { %v1013_v0 = vor.u32 %v1011_v40, %v6892_v51  ;;  %v1318_v7 = vsel %vm6710_vm8, %v1030_v57, %v1317_v50  ;;  %v5965_v8 = vpack.c.bf16 %v661_v60, %v661_v60  ;;  %v3481_v12 = vshll.u32 %v3403_v56, 16  ;;  %v1321_v40 = vld [vmem:[#allocation2 + $0x5c] sm:$0x1]  ;;  %v1478_v54 = vld [vmem:[#allocation2 + $0x20] sm:$0x1] }
 0x113   : > { %1907 = vrot.lane.b32.xlu0 %v1544_v42, %s6542_s7  ;;  %1319 = vst [vmem:[#allocation2 + $0x54] sm:$0xf] %v1318_v7  ;;  %v1014_v15 = vrot.slane %v6892_v51, 4  ;;  %v1600_v17 = vor.u32 %v1599_v3, %v1596_v61  ;;  %v3485_v18 = vshrl.u32 %v3403_v56, 16  ;;  %v5963_v24 = vpack.c.bf16 %v659_v9, %v659_v9  ;;  %v1314_v42 = vld [vmem:[#allocation2 + $0x50] sm:$0x1] }
 0x114   : > { %v1311_v16 = vsel %vm6710_vm8, %v1013_v0, %v1310_v58  ;;  %v1033_v13 = vshrl.u32 %v5965_v8, 16  ;;  %v1036_v23 = vshll.u32 %v5965_v8, 16  ;;  %v6912_v26 = vrot.slane %v3481_v12, 5  ;;  %v6923_v60 = vld [vmem:[#allocation2 + $0x34] sm:$0xf] }
 0x115   : > { %1312 = vst [vmem:[#allocation2 + $0x48] sm:$0xf] %v1311_v16  ;;  %2392 = vrot.lane.b32.xlu1 %v2319_v6, %s6542_s7  ;;  %v1616_v30 = vsel %vm6809_vm15, %v1611_v2, %v1615_v59  ;;  %v1601_v32 = vrot.slane %v1600_v17, 4  ;;  %v3487_v33 = vrot.slane %v3485_v18, 4  ;;  %v3491_v34 = vshll.u32 %v3404_v11, 16 }
 0x116   : > { %v1035_v36 = vrot.slane %v1033_v13, 7  ;;  %v1016_v14 = vshrl.u32 %v5963_v24, 16  ;;  %v1019_v38 = vshll.u32 %v5963_v24, 16  ;;  %v3472_v39 = vshrl.u32 %v3402_v19, 16  ;;  %v3400_v59 = vld [vmem:[#allocation2 + $0x1c] sm:$0xf] }
 0x117   : > { %2390 = vrot.lane.b32.xlu0 %v2318_v29, %s6542_s7  ;;  %v1606_v41 = vsel %vm6809_vm15, %v1601_v32, %v6875_v35  ;;  %v3488_v43 = vor.u32 %v3487_v33, %v6912_v26  ;;  %v3493_v45 = vrot.slane %v3491_v34, 5  ;;  %v5783_v46 = vrot.slane %v3001_v28, 9  ;;  %v1476_v8 = vld [vmem:[#allocation2 + $0x18] sm:$0xf]  ;;  %v3401_v12 = vld [vmem:[#allocation2 + $0x20] sm:$0x1] }
 0x118   : > { %v1038_v47 = vor.u32 %v1036_v23, %v1035_v36  ;;  %v1040_v50 = vrot.slane %v1035_v36, 4  ;;  %v1018_v51 = vrot.slane %v1016_v14, 7  ;;  %v3474_v52 = vrot.slane %v3472_v39, 4  ;;  %v6946_v22 = vld [vmem:[#allocation2 + $0x40] sm:$0xf]  ;;  %v6272_v23 = vpop.f32.mrf.mxu0 }
 0x119   : > { %1919 = vrot.lane.b32.xlu1 %v1616_v30, %s6542_s7  ;;  %v3489_v55 = vrot.slane %v3488_v43, 4  ;;  %v3475_v56 = vshll.u32 %v3402_v19, 16  ;;  %v1579_v57 = vshll.u32 %v1477_v31, 16  ;;  %v1583_v58 = vshrl.u32 %v1477_v31, 16  ;;  %v3012_v13 = vld [vmem:[#allocation2 + $0x44] sm:$0x1] }
 0x11a   : > { %v1039_v35 = vsel %vm6722_vm9, %v1031_v63, %v1038_v47  ;;  %v1322_v61 = vsel %vm6643_vm3, %v1040_v50, %v1321_v40  ;;  %v1021_v0 = vor.u32 %v1019_v38, %v1018_v51  ;;  %v1023_v2 = vrot.slane %v1018_v51, 4  ;;  %v2317_v28 = vld [vmem:[#allocation2 + $0x34] sm:$0xf]  ;;  %v3399_v32 = vld [vmem:[#allocation2 + $0x18] sm:$0xf]  ;;  %v567_v50 = vpop.f32.mrf.mxu0 }
 0x11b   : > { %1917 = vrot.lane.b32.xlu0 %v1606_v41, %s6542_s7  ;;  %1320 = vst.msk [vmem:[#allocation2 + $0x58] sm:$0xf] %vm1265_vm6, %v1039_v35  ;;  %1323 = vst [vmem:[#allocation2 + $0x5c] sm:$0x1] %v1322_v61  ;;  %v3494_v3 = vsel %vm6809_vm15, %v3489_v55, %v3493_v45  ;;  %v3477_v5 = vrot.slane %v3475_v56, 5  ;;  %v6933_v6 = vrot.slane %v1579_v57, 5  ;;  %v3104_v17 = vsel %vm6756_vm12, %v5783_v46, %v3103_v44 }
 0x11c   : > { %v1585_v7 = vrot.slane %v1583_v58, 4  ;;  %v1022_v63 = vsel %vm6722_vm9, %v1014_v15, %v1021_v0  ;;  %v1315_v9 = vsel %vm6643_vm3, %v1023_v2, %v1314_v42  ;;  %v1589_v11 = vshll.u32 %v1478_v54, 16  ;;  %v6952_v14 = vld [vmem:[#allocation2 + $0x34] sm:$0xf]  ;;  %v3009_v41 = vld [vmem:[#allocation2 + $0x38] sm:$0x1] }
 0x11d   : > { %v3457_v16 = vshll.u32 %v3400_v59, 16  ;;  %1313 = vst.msk [vmem:[#allocation2 + $0x4c] sm:$0xf] %vm1265_vm6, %v1022_v63  ;;  %1316 = vst [vmem:[#allocation2 + $0x50] sm:$0x1] %v1315_v9  ;;  %3837 = vrot.lane.b32.xlu1 %v3494_v3, %s6542_s7  ;;  %v3478_v18 = vor.u32 %v3477_v5, %v3474_v52  ;;  %v3461_v15 = vshrl.u32 %v3400_v59, 16 }
 0x11e   : > { %v1586_v19 = vor.u32 %v1585_v7, %v6933_v6  ;;  %v9036_v24 = vrot.slane %v6923_v60, 5  ;;  %v1570_v30 = vshrl.u32 %v1476_v8, 16  ;;  %v1573_v21 = vshll.u32 %v1476_v8, 16  ;;  %v6960_v47 = vld [vmem:[#allocation2 + $0x3c] sm:$0xe]  ;;  %v6395_v51 = vld [vmem:[%s9026_s3 + $0x50] sm:$0xff]  }
 0x11f   : > { %3210 = vrot.lane.b32.xlu0 %v3104_v17, %s6542_s7  ;;  %v6950_v29 = vrot.slane %v3457_v16, 5  ;;  %v3479_v33 = vrot.slane %v3478_v18, 4  ;;  %v1591_v44 = vrot.slane %v1589_v11, 5  ;;  %v3463_v34 = vrot.slane %v3461_v15, 4  ;;  %v6396_v57 = vld [vmem:[%s9026_s3 + $0x10] sm:$0xff]   ;;  %6016 = vmatprep.subr.bf16.mxu1 %v6395_v51  ;;  %v6397_v9 = vld [vmem:[%s9026_s3 + $0x48] sm:$0xff]  }
 0x120   : > { %v3467_v36 = vshll.u32 %v3401_v12, 16  ;;  %v1587_v38 = vrot.slane %v1586_v19, 4  ;;  %v1572_v39 = vrot.slane %v1570_v30, 4  ;;  %v1575_v31 = vrot.slane %v1573_v21, 5  ;;  %v2316_v58 = vld [vmem:[#allocation2 + $0x30] sm:$0xf]  ;;  %6017 = vmatpush3.bf16.msra.mxu1 %v6396_v57  ;;  %v6273_v19 = vpop.f32.mrf.mxu0 }
 0x121   : > { %v3124_v40 = vrot.slane %v6946_v22, 5  ;;  %2388 = vrot.lane.b32.xlu1 %v2317_v28, %s6542_s7  ;;  %v3484_v42 = vsel %vm6809_vm15, %v3479_v33, %v6912_v26  ;;  %v3464_v43 = vor.u32 %v3463_v34, %v6950_v29  ;;  %v3127_v45 = vrot.slane %v3012_v13, 5  ;;  %v1486_v2 = vld [vmem:[#allocation2 + $0x40] sm:$0xf]  ;;  %v1487_v18 = vld [vmem:[#allocation2 + $0x44] sm:$0x1]  ;;  %6018 = vmatprep.subr.bf16.mxu1 %v6397_v9 }
 0x122   : > { %v3448_v46 = vshrl.u32 %v3399_v32, 16  ;;  %v6965_v52 = vld [vmem:[#allocation2 + $0x58] sm:$0xf]  ;;  %v1576_v54 = vor.u32 %v1575_v31, %v1572_v39  ;;  %v3451_v26 = vshll.u32 %v3399_v32, 16  ;;  %v3117_v56 = vrot.slane %v6952_v14, 5  ;;  %v6398_v15 = vld [vmem:[%s9026_s3 + $0x8] sm:$0xff]  }
 0x123   : > { %3835 = vrot.lane.b32.xlu0 %v3484_v42, %s6542_s7  ;;  %v3126_v55 = vrot.slane %v3124_v40, 4  ;;  %v3465_v59 = vrot.slane %v3464_v43, 4  ;;  %v3469_v35 = vrot.slane %v3467_v36, 5  ;;  %v3120_v0 = vrot.slane %v3009_v41, 5  ;;  %v1485_v32 = vld [vmem:[#allocation2 + $0x3c] sm:$0xf] }
 0x124   : > { %v3450_v61 = vrot.slane %v3448_v46, 4  ;;  %v6974_v3 = vld [vmem:[#allocation2 + $0x4c] sm:$0xf]  ;;  %v1592_v5 = vsel %vm6809_vm15, %v1587_v38, %v1591_v44  ;;  %v1577_v7 = vrot.slane %v1576_v54, 4  ;;  %v3453_v8 = vrot.slane %v3451_v26, 5  ;;  %6019 = vmatpush3.bf16.msra.mxu1 %v6398_v15  ;;  %v6399_v46 = vld [vmem:[%s9026_s3 + $0x40] sm:$0xff]  }
 0x125   : > { %v3119_v63 = vrot.slane %v3117_v56, 4  ;;  %v6985_v11 = vrot.slane %v9036_v24, 4  ;;  %v9034_v12 = vrot.slane %v6965_v52, 5  ;;  %v9035_v16 = vrot.slane %v6974_v3, 5  ;;  %1915 = vrot.lane.b32.xlu1 %v1592_v5, %s6542_s7  ;;  %6020 = vmatprep.subr.bf16.mxu1 %v6399_v46  ;;  %v6401_v9 = vld [vmem:[%s9026_s3] sm:$0xff]  }
 0x126   : > { %v3128_v17 = vsel %vm6756_vm12, %v3126_v55, %v3127_v45  ;;  %v3470_v13 = vsel %vm6809_vm15, %v3465_v59, %v3469_v35  ;;  %v3454_v28 = vor.u32 %v3453_v8, %v3450_v61  ;;  %v5786_v30 = vrot.slane %v6960_v47, 9  ;;  %v570_v45 = vpop.f32.mrf.mxu0  ;;  %v6400_v59 = vld [vmem:[%s9026_s3 + $0xf8] sm:$0xff]  }
 0x127   : > { %2386 = vrot.lane.b32.xlu0 %v2316_v58, %s6542_s7  ;;  %v576_v21 = vadd.f32 %v6272_v23, %v6696_v62  ;;  %v1582_v33 = vsel %vm6809_vm15, %v1577_v7, %v6933_v6  ;;  %v3121_v44 = vsel %vm6756_vm12, %v3119_v63, %v3120_v0  ;;  %v568_v34 = vadd.f32 %v6696_v62, %v567_v50  ;;  %v7019_v58 = vld [vmem:[#allocation2 + $0x40] sm:$0xf] }
 0x128   : > { %v1651_v36 = vshll.u32 %v1486_v2, 16  ;;  %v3455_v38 = vrot.slane %v3454_v28, 4  ;;  %v1655_v31 = vshrl.u32 %v1486_v2, 16  ;;  %v1661_v41 = vshll.u32 %v1487_v18, 16  ;;  %6118 = vmatprep.subr.bf16.mxu0 %v6400_v59  ;;  %6021 = vmatpush3.bf16.msra.mxu1 %v6401_v9 }
 0x129   : > { %v664_v39 = vmax.f32 %v576_v21, 0.0  ;;  %3833 = vrot.lane.b32.xlu1 %v3470_v13, %s6542_s7  ;;  %v662_v23 = vmax.f32 %v568_v34, 0.0  ;;  %v579_v43 = vadd.f32 %v6273_v19, %v6696_v62  ;;  %v1642_v6 = vshrl.u32 %v1485_v32, 16  ;;  %v1331_v19 = vld [vmem:[#allocation2 + $0x6c] sm:$0xf] }
 0x12a   : > { %v7007_v42 = vrot.slane %v1651_v36, 5  ;;  %v3460_v47 = vsel %vm6809_vm15, %v3455_v38, %v6950_v29  ;;  %v1657_v51 = vrot.slane %v1655_v31, 4  ;;  %v7017_v54 = vrot.slane %v1661_v41, 5  ;;  %v7028_v29 = vld [vmem:[%s9025_s2] ss:$0 sm:$0xff]  ;;  %v6402_v36 = vld [vmem:[%s9026_s3 + $0xb8] sm:$0xff]  }
 0x12b   : > { %1913 = vrot.lane.b32.xlu0 %v1582_v33, %s6542_s7  ;;  %v5968_v50 = vpack.c.bf16 %v664_v39, %v664_v39  ;;  %v5966_v55 = vpack.c.bf16 %v662_v23, %v662_v23  ;;  %v665_v26 = vmax.f32 %v579_v43, 0.0  ;;  %v1644_v57 = vrot.slane %v1642_v6, 4  ;;  %v1335_v41 = vld [vmem:[#allocation2 + $0x74] sm:$0x1]  ;;  %v3410_v43 = vld [vmem:[#allocation2 + $0x44] sm:$0x1]  ;;  %6119 = vmatpush3.bf16.msra.mxu0 %v6402_v36 }
 0x12c   : > { %v1645_v62 = vshll.u32 %v1485_v32, 16  ;;  %v1658_v0 = vor.u32 %v1657_v51, %v7007_v42  ;;  %v571_v2 = vadd.f32 %v7028_v29, %v570_v45  ;;  %v3529_v28 = vshll.u32 %v7019_v58, 16  ;;  %v6406_v6 = vld [vmem:[%s9026_s3 + $0xf0] sm:$0xff]  }
 0x12d   : > { %v1059_v35 = vshrl.u32 %v5968_v50, 16  ;;  %v1062_v61 = vshll.u32 %v5968_v50, 16  ;;  %3224 = vrot.lane.b32.xlu1 %v3128_v17, %s6542_s7  ;;  %v1042_v5 = vshrl.u32 %v5966_v55, 16  ;;  %v1045_v7 = vshll.u32 %v5966_v55, 16  ;;  %v1324_v17 = vld [vmem:[#allocation2 + $0x60] sm:$0xf]  ;;  %6120 = vmatprep.subr.bf16.mxu0 %v6406_v6 }
 0x12e   : > { %v5969_v8 = vpack.c.bf16 %v665_v26, %v665_v26  ;;  %v1647_v63 = vrot.slane %v1645_v62, 5  ;;  %v7036_v15 = vrot.slane %v1658_v0, 4  ;;  %v663_v13 = vmax.f32 %v571_v2, 0.0  ;;  %v2323_v50 = vld [vmem:[#allocation2 + $0x58] sm:$0xf] }
 0x12f   : > { %3831 = vrot.lane.b32.xlu0 %v3460_v47, %s6542_s7  ;;  %v1061_v18 = vrot.slane %v1059_v35, 7  ;;  %v7039_v21 = vrot.slane %v1042_v5, 7  ;;  %v3125_v38 = vsel %vm6756_vm12, %v5786_v30, %v3124_v40  ;;  %v3408_v30 = vld [vmem:[#allocation2 + $0x3c] sm:$0xf]  ;;  %v6409_v47 = vld [vmem:[%s9026_s3 + $0xb0] sm:$0xff]   ;;  %v3539_v9 = vshll.u32 %v3410_v43, 16 }
 0x130   : > { %v1067_v32 = vshrl.u32 %v5969_v8, 16  ;;  %v1070_v33 = vshll.u32 %v5969_v8, 16  ;;  %v1648_v34 = vor.u32 %v1647_v63, %v1644_v57  ;;  %v5967_v23 = vpack.c.bf16 %v663_v13, %v663_v13  ;;  %v1328_v35 = vld [vmem:[#allocation2 + $0x68] sm:$0x1]  ;;  %v3007_v0 = vld [vmem:[#allocation2 + $0x30] sm:$0xe]  ;;  %6121 = vmatpush3.bf16.msra.mxu0 %v6409_v47 }
 0x131   : > { %v1064_v39 = vor.u32 %v1062_v61, %v1061_v18  ;;  %v1065_v31 = vrot.slane %v1061_v18, 4  ;;  %3220 = vrot.lane.b32.xlu1 %v3121_v44, %s6542_s7  ;;  %v1047_v45 = vor.u32 %v1045_v7, %v7039_v21  ;;  %v1664_v22 = vsel %vm6809_vm15, %v7036_v15, %v7017_v54  ;;  %v6410_v54 = vld [vmem:[%s9026_s3 + $0xe8] sm:$0xff]   ;;  %v1483_v2 = vld [vmem:[#allocation2 + $0x34] sm:$0xf]  ;;  %v1484_v18 = vld [vmem:[#allocation2 + $0x38] sm:$0x1] }
 0x132   : > { %v1069_v46 = vrot.slane %v1067_v32, 7  ;;  %v7057_v40 = vrot.slane %v1648_v34, 4  ;;  %v1048_v51 = vrot.slane %v7039_v21, 4  ;;  %v1050_v55 = vshrl.u32 %v5967_v23, 16  ;;  %v2322_v5 = vld [vmem:[#allocation2 + $0x54] sm:$0xf]  ;;  %6122 = vmatprep.subr.bf16.mxu0 %v6410_v54 }
 0x133   : > { %3222 = vrot.lane.b32.xlu0 %v3125_v38, %s6542_s7  ;;  %v1332_v44 = vsel %vm6710_vm8, %v1064_v39, %v1331_v19  ;;  %v1053_v26 = vshll.u32 %v5967_v23, 16  ;;  %v1325_v57 = vsel %vm6710_vm8, %v1047_v45, %v1324_v17  ;;  %v7071_v61 = vrot.slane %v3529_v28, 5  ;;  %v3406_v19 = vld [vmem:[#allocation2 + $0x34] sm:$0xf]  ;;  %v3407_v17 = vld [vmem:[#allocation2 + $0x38] sm:$0x1] }
 0x134   : > { %1333 = vst [vmem:[#allocation2 + $0x6c] sm:$0xf] %v1332_v44  ;;  %v1072_v62 = vor.u32 %v1070_v33, %v1069_v46  ;;  %v1074_v59 = vrot.slane %v1069_v46, 4  ;;  %1326 = vst [vmem:[#allocation2 + $0x60] sm:$0xf] %v1325_v57  ;;  %v1654_v7 = vsel %vm6809_vm15, %v7057_v40, %v7007_v42  ;;  %v1052_v8 = vrot.slane %v1050_v55, 7 }
 0x135   : > { %v3533_v63 = vshrl.u32 %v7019_v58, 16  ;;  %2400 = vrot.lane.b32.xlu1 %v2323_v50, %s6542_s7  ;;  %v3520_v28 = vshrl.u32 %v3408_v30, 16  ;;  %v3523_v21 = vshll.u32 %v3408_v30, 16  ;;  %v1408_v32 = vld [vmem:[#allocation2 + $0xc] sm:$0xf]  ;;  %v5785_v36 = vrot.slane %v3007_v0, 9 }
 0x136   : > { %v1073_v15 = vsel %vm6722_vm9, %v1065_v31, %v1072_v62  ;;  %v1336_v13 = vsel %vm6643_vm3, %v1074_v59, %v1335_v41  ;;  %v6411_v42 = vld [vmem:[%s9026_s3 + $0xa8] sm:$0xff]   ;;  %v1055_v58 = vor.u32 %v1053_v26, %v1052_v8  ;;  %v1057_v33 = vrot.slane %v1052_v8, 4  ;;  %1440 = vst.msk [vmem:[#allocation3 + $0x28] sm:$0xf] %vm1265_vm6, %v1408_v32  ;;  %v1409_v38 = vld [vmem:[#allocation2 + $0x10] sm:$0xf] }
 0x137   : > { %2398 = vrot.lane.b32.xlu0 %v2322_v5, %s6542_s7  ;;  %1334 = vst.msk [vmem:[#allocation2 + $0x70] sm:$0xf] %vm1265_vm6, %v1073_v15  ;;  %1337 = vst [vmem:[#allocation2 + $0x74] sm:$0x1] %v1336_v13  ;;  %v3535_v34 = vrot.slane %v3533_v63, 4  ;;  %v3541_v39 = vrot.slane %v3539_v9, 5  ;;  %6123 = vmatpush3.bf16.msra.mxu0 %v6411_v42  ;;  %v6276_v13 = vpop.f32.mrf.mxu0 }
 0x138   : > { %v3522_v31 = vrot.slane %v3520_v28, 4  ;;  %v3525_v41 = vrot.slane %v3523_v21, 5  ;;  %v1627_v23 = vshll.u32 %v1483_v2, 16  ;;  %1441 = vst.msk [vmem:[#allocation3 + $0x3c] sm:$0xf] %vm1265_vm6, %v1409_v38  ;;  %v6412_v43 = vld [vmem:[%s9026_s3 + $0xe0] sm:$0xff]   ;;  %v1056_v6 = vsel %vm6722_vm9, %v1048_v51, %v1055_v58 }
 0x139   : > { %v1329_v45 = vsel %vm6643_vm3, %v1057_v33, %v1328_v35  ;;  %v3536_v46 = vor.u32 %v3535_v34, %v7071_v61  ;;  %v1631_v40 = vshrl.u32 %v1483_v2, 16  ;;  %v1482_v30 = vld [vmem:[#allocation2 + $0x30] sm:$0xf]  ;;  %1927 = vrot.lane.b32.xlu1 %v1664_v22, %s6542_s7  ;;  %1327 = vst.msk [vmem:[#allocation2 + $0x64] sm:$0xf] %vm1265_vm6, %v1056_v6  ;;  %v1637_v44 = vshll.u32 %v1484_v18, 16  ;;  %6124 = vmatprep.subr.bf16.mxu0 %v6412_v43 }
 0x13a   : > { %1330 = vst [vmem:[#allocation2 + $0x68] sm:$0x1] %v1329_v45  ;;  %v3526_v47 = vor.u32 %v3525_v41, %v3522_v31  ;;  %v7100_v50 = vrot.slane %v1627_v23, 5  ;;  %v3505_v55 = vshll.u32 %v3406_v19, 16  ;;  %v1406_v26 = vld [vmem:[#allocation2] sm:$0xf]  ;;  %v3118_v35 = vsel %vm6756_vm12, %v5785_v36, %v3117_v56 }
 0x13b   : > { %v6413_v51 = vld [vmem:[%s9026_s3 + $0xa0] sm:$0xff]   ;;  %1925 = vrot.lane.b32.xlu0 %v1654_v7, %s6542_s7  ;;  %v3537_v54 = vrot.slane %v3536_v46, 4  ;;  %v1633_v57 = vrot.slane %v1631_v40, 4  ;;  %v3509_v62 = vshrl.u32 %v3406_v19, 16  ;;  %v3515_v22 = vshll.u32 %v3407_v17, 16  ;;  %v583_v46 = vpop.f32.mrf.mxu0 }
 0x13c   : > { %v7106_v59 = vld [vmem:[#allocation2 + $0x58] sm:$0xf]  ;;  %1438 = vst.msk [vmem:[#allocation3] sm:$0xf] %vm1265_vm6, %v1406_v26  ;;  %v3527_v0 = vrot.slane %v3526_v47, 4  ;;  %v7113_v2 = vrot.slane %v3505_v55, 5  ;;  %6125 = vmatpush3.bf16.msra.mxu0 %v6413_v51 }
 0x13d   : > { %v1618_v5 = vshrl.u32 %v1482_v30, 16  ;;  %v3018_v8 = vld [vmem:[#allocation2 + $0x5c] sm:$0x1]  ;;  %v3542_v7 = vsel %vm6809_vm15, %v3537_v54, %v3541_v39  ;;  %v1634_v63 = vor.u32 %v1633_v57, %v7100_v50  ;;  %v1639_v9 = vrot.slane %v1637_v44, 5  ;;  %v3405_v19 = vld [vmem:[#allocation2 + $0x30] sm:$0xf] }
 0x13e   : > { %v3511_v18 = vrot.slane %v3509_v62, 4  ;;  %v7118_v15 = vld [vmem:[#allocation2 + $0x4c] sm:$0xf]  ;;  %v7120_v14 = vld [vmem:[#allocation2 + $0x70] sm:$0xf]  ;;  %3845 = vrot.lane.b32.xlu1 %v3542_v7, %s6542_s7  ;;  %v7123_v56 = vrot.slane %v3515_v22, 5 }
 0x13f   : > { %v1620_v28 = vrot.slane %v1618_v5, 4  ;;  %v1621_v21 = vshll.u32 %v1482_v30, 16  ;;  %v3138_v17 = vrot.slane %v7106_v59, 5  ;;  %v9032_v32 = vrot.slane %v7120_v14, 5  ;;  %3218 = vrot.lane.b32.xlu0 %v3118_v35, %s6542_s7  ;;  %v2321_v34 = vld [vmem:[#allocation2 + $0x4c] sm:$0xf] }
 0x140   : > { %v1635_v42 = vrot.slane %v1634_v63, 4  ;;  %v3512_v58 = vor.u32 %v3511_v18, %v7113_v2  ;;  %v3141_v33 = vrot.slane %v3018_v8, 5  ;;  %v3496_v39 = vshrl.u32 %v3405_v19, 16  ;;  %v7139_v43 = vld [vmem:[#allocation2 + $0x64] sm:$0xf]  ;;  %v6415_v63 = vld [vmem:[%s9026_s3 + $0x98] sm:$0xff]  }
 0x141   : > { %v1623_v36 = vrot.slane %v1621_v21, 5  ;;  %v3140_v38 = vrot.slane %v3138_v17, 4  ;;  %v3499_v31 = vshll.u32 %v3405_v19, 16  ;;  %v7133_v41 = vrot.slane %v9034_v12, 4  ;;  %v7147_v55 = vld [vmem:[#allocation2 + $0x50] sm:$0x1]  ;;  %v6277_v21 = vpop.f32.mrf.mxu0 }
 0x142   : > { %v7137_v23 = vrot.slane %v9035_v16, 4  ;;  %v3513_v6 = vrot.slane %v3512_v58, 4  ;;  %v3131_v45 = vrot.slane %v7118_v15, 5  ;;  %v9033_v40 = vrot.slane %v7139_v43, 5  ;;  %2396 = vrot.lane.b32.xlu1 %v2321_v34, %s6542_s7  ;;  %v1492_v26 = vld [vmem:[#allocation2 + $0x58] sm:$0xf] }
 0x143   : > { %v3532_v30 = vsel %vm6809_vm15, %v3527_v0, %v7071_v61  ;;  %v1624_v47 = vor.u32 %v1623_v36, %v1620_v28  ;;  %v3498_v44 = vrot.slane %v3496_v39, 4  ;;  %v7151_v51 = vrot.slane %v9032_v32, 4  ;;  %v7158_v22 = vld [vmem:[#allocation2 + $0x54] sm:$0xe]  ;;  %v6414_v61 = vld [vmem:[%s9026_s3 + $0xd8] sm:$0xff]  }
 0x144   : > { %3843 = vrot.lane.b32.xlu0 %v3532_v30, %s6542_s7  ;;  %v1640_v54 = vsel %vm6809_vm15, %v1635_v42, %v1639_v9  ;;  %v3142_v57 = vsel %vm6756_vm12, %v3140_v38, %v3141_v33  ;;  %v3501_v62 = vrot.slane %v3499_v31, 5  ;;  %v3518_v35 = vsel %vm6809_vm15, %v3513_v6, %v7123_v56  ;;  %v1493_v7 = vld [vmem:[#allocation2 + $0x5c] sm:$0x1]  ;;  %v1491_v42 = vld [vmem:[#allocation2 + $0x54] sm:$0xf]  ;;  %6126 = vmatprep.subr.bf16.mxu0 %v6414_v61 }
 0x145   : > { %v1625_v0 = vrot.slane %v1624_v47, 4  ;;  %v3133_v5 = vrot.slane %v3131_v45, 4  ;;  %v592_v8 = vadd.f32 %v7028_v29, %v6276_v13  ;;  %v3134_v18 = vrot.slane %v7147_v55, 5  ;;  %v6416_v56 = vld [vmem:[%s9026_s3 + $0xd0] sm:$0xff]   ;;  %v2320_v58 = vld [vmem:[#allocation2 + $0x48] sm:$0xf]  ;;  %6127 = vmatpush3.bf16.msra.mxu0 %v6415_v63 }
 0x146   : > { %v3502_v9 = vor.u32 %v3501_v62, %v3498_v44  ;;  %v584_v19 = vadd.f32 %v7028_v29, %v583_v46  ;;  %v1699_v28 = vshll.u32 %v1492_v26, 16  ;;  %v7179_v13 = vrot.slane %v9033_v40, 4  ;;  %1923 = vrot.lane.b32.xlu1 %v1640_v54, %s6542_s7  ;;  %6128 = vmatprep.subr.bf16.mxu0 %v6416_v56  ;;  %v6417_v63 = vld [vmem:[%s9026_s3 + $0x90] sm:$0xff]   ;;  %v3419_v16 = vld [vmem:[#allocation2 + $0x68] sm:$0x1] }
 0x147   : > { %v5788_v33 = vrot.slane %v7158_v22, 9  ;;  %v668_v34 = vmax.f32 %v592_v8, 0.0  ;;  %v1703_v36 = vshrl.u32 %v1492_v26, 16  ;;  %v1630_v38 = vsel %vm6809_vm15, %v1625_v0, %v7100_v50  ;;  %v586_v22 = vpop.f32.mrf.mxu0  ;;  %v3414_v59 = vld [vmem:[#allocation2 + $0x54] sm:$0xf] }
 0x148   : > { %2394 = vrot.lane.b32.xlu0 %v2320_v58, %s6542_s7  ;;  %v666_v39 = vmax.f32 %v584_v19, 0.0  ;;  %v7187_v31 = vrot.slane %v1699_v28, 5  ;;  %v1709_v6 = vshll.u32 %v1493_v7, 16  ;;  %v595_v47 = vadd.f32 %v7028_v29, %v6277_v21  ;;  %v3415_v7 = vld [vmem:[#allocation2 + $0x58] sm:$0xf] }
 0x149   : > { %v5972_v46 = vpack.c.bf16 %v668_v34, %v668_v34  ;;  %v1705_v30 = vrot.slane %v1703_v36, 4  ;;  %v1690_v44 = vshrl.u32 %v1491_v42, 16  ;;  %v3503_v55 = vrot.slane %v3502_v9, 4  ;;  %6129 = vmatpush3.bf16.msra.mxu0 %v6417_v63  ;;  %v1345_v34 = vld [vmem:[#allocation2 + $0x84] sm:$0xf] }
 0x14a   : > { %v5970_v54 = vpack.c.bf16 %v666_v39, %v666_v39  ;;  %v7190_v26 = vrot.slane %v1709_v6, 5  ;;  %v1693_v62 = vshll.u32 %v1491_v42, 16  ;;  %3841 = vrot.lane.b32.xlu1 %v3518_v35, %s6542_s7  ;;  %v669_v8 = vmax.f32 %v595_v47, 0.0  ;;  %v1414_v32 = vld [vmem:[#allocation2 + $0x30] sm:$0xf] }
 0x14b   : > { %v1093_v61 = vshrl.u32 %v5972_v46, 16  ;;  %v1096_v50 = vshll.u32 %v5972_v46, 16  ;;  %v1706_v0 = vor.u32 %v1705_v30, %v7187_v31  ;;  %v1692_v28 = vrot.slane %v1690_v44, 4  ;;  %1446 = vst.msk [vmem:[#allocation3 + $0xa0] sm:$0xf] %vm1265_vm6, %v1414_v32 }
 0x14c   : > { %1921 = vrot.lane.b32.xlu0 %v1630_v38, %s6542_s7  ;;  %v1076_v9 = vshrl.u32 %v5970_v54, 16  ;;  %v1079_v19 = vshll.u32 %v5970_v54, 16  ;;  %v1695_v21 = vrot.slane %v1693_v62, 5  ;;  %v5973_v35 = vpack.c.bf16 %v669_v8, %v669_v8  ;;  %v6418_v38 = vld [vmem:[%s9026_s3 + $0xc8] sm:$0xff]   ;;  %v1338_v54 = vld [vmem:[#allocation2 + $0x78] sm:$0xf] }
 0x14d   : > { %v1095_v42 = vrot.slane %v1093_v61, 7  ;;  %v7198_v56 = vrot.slane %v1706_v0, 4  ;;  %v587_v58 = vadd.f32 %v7028_v29, %v586_v22  ;;  %v3577_v6 = vshll.u32 %v3415_v7, 16  ;;  %v7212_v22 = vld [vmem:[#allocation2 + $0x48] sm:$0xe]  ;;  %6130 = vmatprep.subr.bf16.mxu0 %v6418_v38 }
 0x14e   : > { %v7201_v36 = vrot.slane %v1076_v9, 7  ;;  %v1696_v39 = vor.u32 %v1695_v21, %v1692_v28  ;;  %v3581_v46 = vshrl.u32 %v3415_v7, 16  ;;  %3232 = vrot.lane.b32.xlu1 %v3142_v57, %s6542_s7  ;;  %v3508_v30 = vsel %vm6809_vm15, %v3503_v55, %v7113_v2  ;;  %v3416_v2 = vld [vmem:[#allocation2 + $0x5c] sm:$0x1]  ;;  %v1349_v9 = vld [vmem:[#allocation2 + $0x8c] sm:$0x1] }
 0x14f   : > { %v3135_v47 = vsel %vm6756_vm12, %v3133_v5, %v3134_v18  ;;  %v1098_v44 = vor.u32 %v1096_v50, %v1095_v42  ;;  %v1101_v62 = vshrl.u32 %v5973_v35, 16  ;;  %v3139_v61 = vsel %vm6756_vm12, %v5788_v33, %v3138_v17  ;;  %v6419_v5 = vld [vmem:[%s9026_s3 + $0x88] sm:$0xff]   ;;  %v6422_v17 = vld [vmem:[%s9026_s3 + $0xc0] sm:$0xff]  }
 0x150   : > { %3839 = vrot.lane.b32.xlu0 %v3508_v30, %s6542_s7  ;;  %v1099_v57 = vrot.slane %v1095_v42, 4  ;;  %v1081_v0 = vor.u32 %v1079_v19, %v7201_v36  ;;  %v1104_v8 = vshll.u32 %v5973_v35, 16  ;;  %v667_v50 = vmax.f32 %v587_v58, 0.0  ;;  %v1407_v21 = vld [vmem:[#allocation2 + $0x4] sm:$0xf]  ;;  %6131 = vmatpush3.bf16.msra.mxu0 %v6419_v5 }
 0x151   : > { %v1346_v18 = vsel %vm6710_vm8, %v1098_v44, %v1345_v34  ;;  %v1103_v55 = vrot.slane %v1101_v62, 7  ;;  %v7225_v7 = vrot.slane %v3577_v6, 5  ;;  %v1712_v63 = vsel %vm6809_vm15, %v7198_v56, %v7190_v26  ;;  %v1489_v6 = vld [vmem:[#allocation2 + $0x4c] sm:$0xf]  ;;  %v7239_v38 = vld [vmem:[#allocation2] sm:$0xe]  ;;  %6132 = vmatprep.subr.bf16.mxu0 %v6422_v17 }
 0x152   : > { %1347 = vst [vmem:[#allocation2 + $0x84] sm:$0xf] %v1346_v18  ;;  %v1339_v33 = vsel %vm6710_vm8, %v1081_v0, %v1338_v54  ;;  %v7236_v19 = vrot.slane %v1696_v39, 4  ;;  %v3583_v28 = vrot.slane %v3581_v46, 4  ;;  %3228 = vrot.lane.b32.xlu1 %v3135_v47, %s6542_s7  ;;  %v5971_v58 = vpack.c.bf16 %v667_v50, %v667_v50  ;;  %1439 = vst.msk [vmem:[#allocation3 + $0x14] sm:$0xf] %vm1265_vm6, %v1407_v21 }
 0x153   : > { %1340 = vst [vmem:[#allocation2 + $0x78] sm:$0xf] %v1339_v33  ;;  %v1106_v42 = vor.u32 %v1104_v8, %v1103_v55  ;;  %v1108_v35 = vrot.slane %v1103_v55, 4  ;;  %v3587_v34 = vshll.u32 %v3416_v2, 16  ;;  %v2327_v39 = vld [vmem:[#allocation2 + $0x70] sm:$0xf] }
 0x154   : > { %3230 = vrot.lane.b32.xlu0 %v3139_v61, %s6542_s7  ;;  %v3584_v46 = vor.u32 %v3583_v28, %v7225_v7  ;;  %v5787_v30 = vrot.slane %v7212_v22, 9  ;;  %v3568_v44 = vshrl.u32 %v3414_v59, 16  ;;  %v3571_v47 = vshll.u32 %v3414_v59, 16  ;;  %v6425_v54 = vld [vmem:[%s9026_s3 + $0x80] sm:$0xff]   ;;  %v1490_v61 = vld [vmem:[#allocation2 + $0x50] sm:$0x1] }
 0x155   : > { %v1107_v62 = vsel %vm6722_vm9, %v1099_v57, %v1106_v42  ;;  %v1350_v0 = vsel %vm6643_vm3, %v1108_v35, %v1349_v9  ;;  %v1084_v8 = vshrl.u32 %v5971_v58, 16  ;;  %v1087_v2 = vshll.u32 %v5971_v58, 16  ;;  %v2035_v5 = vld [vmem:[#allocation2 + $0x4] sm:$0xf]  ;;  %v3412_v18 = vld [vmem:[#allocation2 + $0x4c] sm:$0xf]  ;;  %6133 = vmatpush3.bf16.msra.mxu0 %v6425_v54 }
 0x156   : > { %v1082_v55 = vrot.slane %v7201_v36, 4  ;;  %1348 = vst.msk [vmem:[#allocation2 + $0x88] sm:$0xf] %vm1265_vm6, %v1107_v62  ;;  %1351 = vst [vmem:[#allocation2 + $0x8c] sm:$0x1] %v1350_v0  ;;  %v1702_v22 = vsel %vm6809_vm15, %v7236_v19, %v7187_v31  ;;  %v3570_v57 = vrot.slane %v3568_v44, 4  ;;  %2408 = vrot.lane.b32.xlu1 %v2327_v39, %s6542_s7  ;;  %v3132_v31 = vsel %vm6756_vm12, %v5787_v30, %v3131_v45 }
 0x157   : > { %v1342_v50 = vld [vmem:[#allocation2 + $0x80] sm:$0x1]  ;;  %v3573_v59 = vrot.slane %v3571_v47, 5  ;;  %v1413_v17 = vld [vmem:[#allocation2 + $0x28] sm:$0xf]  ;;  %v1086_v9 = vrot.slane %v1084_v8, 7 }
 0x158   : > { %v2326_v33 = vld [vmem:[#allocation2 + $0x6c] sm:$0xf]  ;;  %v3589_v28 = vrot.slane %v3587_v34, 5  ;;  %v1675_v21 = vshll.u32 %v1489_v6, 16  ;;  %v1679_v36 = vshrl.u32 %v1489_v6, 16  ;;  %v3585_v42 = vrot.slane %v3584_v46, 4 }
 0x159   : > { %1445 = vst.msk [vmem:[#allocation3 + $0x8c] sm:$0xf] %vm1265_vm6, %v1413_v17  ;;  %2406 = vrot.lane.b32.xlu0 %v2326_v33, %s6542_s7  ;;  %v3574_v19 = vor.u32 %v3573_v59, %v3570_v57  ;;  %v5766_v35 = vrot.slane %v7239_v38, 9  ;;  %v1412_v58 = vld [vmem:[#allocation2 + $0x24] sm:$0xf]  ;;  %v1089_v44 = vor.u32 %v1087_v2, %v1086_v9  ;;  %v1091_v47 = vrot.slane %v1086_v9, 4 }
 0x15a   : > { %v3338_v39 = vld [vmem:[#allocation2 + $0x28] sm:$0xf]  ;;  %v7266_v34 = vrot.slane %v1675_v21, 5  ;;  %v1681_v6 = vrot.slane %v1679_v36, 4  ;;  %v3413_v54 = vld [vmem:[#allocation2 + $0x50] sm:$0x1]  ;;  %1935 = vrot.lane.b32.xlu1 %v1712_v63, %s6542_s7 }
 0x15b   : > { %1444 = vst.msk [vmem:[#allocation3 + $0x78] sm:$0xf] %vm1265_vm6, %v1412_v58  ;;  %3370 = vst.msk [vmem:[#allocation3 + $0x48] sm:$0xf] %vm1265_vm6, %v3338_v39  ;;  %v7270_v46 = vrot.slane %v3574_v19, 4  ;;  %v1685_v15 = vshll.u32 %v1490_v61, 16  ;;  %v1090_v38 = vsel %vm6722_vm9, %v1082_v55, %v1089_v44  ;;  %v1343_v0 = vsel %vm6643_vm3, %v1091_v47, %v1342_v50 }
 0x15c   : > { %v2135_v62 = vrot.slane %v2035_v5, 5  ;;  %v3553_v45 = vshll.u32 %v3412_v18, 16  ;;  %v2036_v30 = vld [vmem:[#allocation2 + $0x8] sm:$0x1]  ;;  %v1682_v8 = vor.u32 %v1681_v6, %v7266_v34  ;;  %v3557_v2 = vshrl.u32 %v3412_v18, 16 }
 0x15d   : > { %v1488_v61 = vld [vmem:[#allocation2 + $0x48] sm:$0xf]  ;;  %1933 = vrot.lane.b32.xlu0 %v1702_v22, %s6542_s7  ;;  %1341 = vst.msk [vmem:[#allocation2 + $0x7c] sm:$0xf] %vm1265_vm6, %v1090_v38  ;;  %1344 = vst [vmem:[#allocation2 + $0x80] sm:$0x1] %v1343_v0  ;;  %v3590_v5 = vsel %vm6809_vm15, %v3585_v42, %v3589_v28  ;;  %v3580_v59 = vsel %vm6809_vm15, %v7270_v46, %v7225_v7 }
 0x15e   : > { %v2136_v26 = vsel %vm6756_vm12, %v5766_v35, %v2135_v62  ;;  %v7289_v56 = vrot.slane %v3553_v45, 5  ;;  %v3563_v63 = vshll.u32 %v3413_v54, 16  ;;  %v2502_v55 = vld [vmem:[#allocation2 + $0xc] sm:$0xf]  ;;  %v3559_v18 = vrot.slane %v3557_v2, 4  ;;  %3853 = vrot.lane.b32.xlu1 %v3590_v5, %s6542_s7  ;;  %v2375_v54 = vpop.permute.xlu1 %2374 }
 0x15f   : > { %2277 = vst.msk [vmem:[#allocation3 + $0x4] sm:$0xf] %vm1265_vm6, %v2136_v26  ;;  %v2137_v50 = vrot.slane %v2135_v62, 4  ;;  %v2138_v57 = vrot.slane %v2036_v30, 5  ;;  %v2503_v22 = vld [vmem:[#allocation2 + $0x10] sm:$0xf]  ;;  %v6280_v30 = vpop.f32.mrf.mxu0 }
 0x160   : > { %v1687_v17 = vrot.slane %v1685_v15, 5  ;;  %v1666_v33 = vshrl.u32 %v1488_v61, 16  ;;  %v1669_v9 = vshll.u32 %v1488_v61, 16  ;;  %v2504_v28 = vld [vmem:[#allocation2 + $0x14] sm:$0x1]  ;;  %v1683_v21 = vrot.slane %v1682_v8, 4 }
 0x161   : > { %v3560_v36 = vor.u32 %v3559_v18, %v7289_v56  ;;  %v2139_v42 = vsel %vm6756_vm12, %v2137_v50, %v2138_v57  ;;  %v2551_v19 = vshrl.u32 %v2502_v55, 16  ;;  %v7300_v35 = vld [vmem:[#allocation2 + $0x70] sm:$0xf]  ;;  %v3024_v58 = vld [vmem:[#allocation2 + $0x74] sm:$0x1]  ;;  %3226 = vrot.lane.b32.xlu0 %v3132_v31, %s6542_s7  ;;  %v7305_v7 = vrot.slane %v3563_v63, 5 }
 0x162   : > { %v7302_v39 = vld [vmem:[#allocation2 + $0x88] sm:$0xf]  ;;  %2278 = vst.msk [vmem:[#allocation3 + $0x18] sm:$0xf] %vm1265_vm6, %v2139_v42  ;;  %v1668_v44 = vrot.slane %v1666_v33, 4  ;;  %v1671_v47 = vrot.slane %v1669_v9, 5  ;;  %v1688_v50 = vsel %vm6809_vm15, %v1683_v21, %v1687_v17  ;;  %v599_v17 = vpop.f32.mrf.mxu0 }
 0x163   : > { %v2554_v6 = vshll.u32 %v2502_v55, 16  ;;  %v7308_v46 = vrot.slane %v3560_v36, 4  ;;  %v2553_v15 = vrot.slane %v2551_v19, 4  ;;  %v2560_v62 = vshll.u32 %v2503_v22, 16  ;;  %v724_v38 = vld [vmem:[#allocation2 + $0x9c] sm:$0x1]  ;;  %v2377_v19 = vpop.permute.xlu1 %2376 }
 0x164   : > { %v2564_v45 = vshrl.u32 %v2503_v22, 16  ;;  %v2325_v0 = vld [vmem:[#allocation2 + $0x64] sm:$0xf]  ;;  %2470 = vst.msk [vmem:[#allocation3 + $0x4] sm:$0xf] %vm2001_vm0, %v2375_v54  ;;  %v1672_v8 = vor.u32 %v1671_v47, %v1668_v44  ;;  %v3152_v2 = vrot.slane %v7300_v35, 5 }
 0x165   : > { %v2556_v31 = vrot.slane %v2554_v6, 5  ;;  %v3155_v61 = vrot.slane %v3024_v58, 5  ;;  %v9030_v5 = vrot.slane %v7302_v39, 5  ;;  %2404 = vrot.lane.b32.xlu1 %v2325_v0, %s6542_s7  ;;  %v2562_v26 = vrot.slane %v2560_v62, 5  ;;  %v3411_v18 = vld [vmem:[#allocation2 + $0x48] sm:$0xf]  ;;  %3851 = vrot.lane.b32.xlu0 %v3580_v59, %s6542_s7 }
 0x166   : > { %v2566_v63 = vrot.slane %v2564_v45, 4  ;;  %v2570_v55 = vshll.u32 %v2504_v28, 16  ;;  %v1673_v57 = vrot.slane %v1672_v8, 4  ;;  %v3154_v33 = vrot.slane %v3152_v2, 4  ;;  %v2040_v9 = vld [vmem:[#allocation2 + $0x18] sm:$0xe] }
 0x167   : > { %v2557_v22 = vor.u32 %v2556_v31, %v2553_v15  ;;  %v2041_v36 = vld [vmem:[#allocation2 + $0x1c] sm:$0xf]  ;;  %v3566_v42 = vsel %vm6809_vm15, %v7308_v46, %v7305_v7  ;;  %v608_v58 = vadd.f32 %v7028_v29, %v6280_v30  ;;  %v725_v59 = vsel %vm6643_vm3, 0, %v724_v38  ;;  %v721_v21 = vld [vmem:[#allocation2 + $0x90] sm:$0x1] }
 0x168   : > { %v2567_v28 = vor.u32 %v2566_v63, %v2562_v26  ;;  %v3337_v44 = vld [vmem:[#allocation2 + $0x24] sm:$0xf]  ;;  %v2324_v47 = vld [vmem:[#allocation2 + $0x60] sm:$0xf]  ;;  %2471 = vst.msk [vmem:[#allocation3 + $0x18] sm:$0xf] %vm2001_vm0, %v2377_v19  ;;  %v1678_v6 = vsel %vm6809_vm15, %v1673_v57, %v7266_v34  ;;  %v7332_v7 = vsel %vm6756_vm12, %v3154_v33, %v3155_v61  ;;  %v3207_v34 = vpop.permute.xlu0 %3206  ;;  %v600_v63 = vadd.f32 %v7028_v29, %v599_v17  ;;  %v6281_v19 = vpop.f32.mrf.mxu0 }
 0x169   : > { %v2558_v54 = vrot.slane %v2557_v22, 4  ;;  %v2572_v46 = vrot.slane %v2570_v55, 5  ;;  %726 = vst [vmem:[#allocation2 + $0x9c] sm:$0x1] %v725_v59  ;;  %3369 = vst.msk [vmem:[#allocation3 + $0x34] sm:$0xf] %vm1265_vm6, %v3337_v44  ;;  %1931 = vrot.lane.b32.xlu1 %v1688_v50, %s6542_s7  ;;  %2402 = vrot.lane.b32.xlu0 %v2324_v47, %s6542_s7 }
 0x16a   : > { %v1411_v15 = vld [vmem:[#allocation2 + $0x1c] sm:$0xf]  ;;  %v2568_v62 = vrot.slane %v2567_v28, 4  ;;  %v672_v45 = vmax.f32 %v608_v58, 0.0  ;;  %v3544_v30 = vshrl.u32 %v3411_v18, 16  ;;  %v3547_v38 = vshll.u32 %v3411_v18, 16 }
 0x16b   : > { %v7336_v0 = vld [vmem:[#allocation2 + $0x64] sm:$0xf]  ;;  %1443 = vst.msk [vmem:[#allocation3 + $0x64] sm:$0xf] %vm1265_vm6, %v1411_v15  ;;  %v2563_v8 = vsel %vm6809_vm15, %v2558_v54, %v2562_v26  ;;  %v5768_v31 = vrot.slane %v2040_v9, 9  ;;  %v2149_v61 = vrot.slane %v2041_v36, 5 }
 0x16c   : > { %v3021_v55 = vld [vmem:[#allocation2 + $0x68] sm:$0x1]  ;;  %2966 = vst.msk [vmem:[#allocation3 + $0x8] sm:$0xf] %vm1265_vm6, %v2563_v8  ;;  %v2573_v18 = vsel %vm6809_vm15, %v2568_v62, %v2572_v46  ;;  %v5976_v50 = vpack.c.bf16 %v672_v45, %v672_v45  ;;  %v3546_v57 = vrot.slane %v3544_v30, 4  ;;  %v3549_v22 = vrot.slane %v3547_v38, 5  ;;  %v2383_v62 = vpop.permute.xlu0 %2382 }
 0x16d   : > { %v2042_v33 = vld [vmem:[#allocation2 + $0x20] sm:$0x1]  ;;  %v780_v28 = vld [vmem:[#allocation2 + $0xa4] sm:$0x1]  ;;  %3302 = vst.msk [vmem:[#allocation3 + $0x8] sm:$0xf] %vm2001_vm0, %v3207_v34  ;;  %v2150_v26 = vsel %vm6756_vm12, %v5768_v31, %v2149_v61  ;;  %3849 = vrot.lane.b32.xlu1 %v3566_v42, %s6542_s7  ;;  %1929 = vrot.lane.b32.xlu0 %v1678_v6, %s6542_s7  ;;  %v611_v6 = vadd.f32 %v7028_v29, %v6281_v19 }
 0x16e   : > { %2967 = vst.msk [vmem:[#allocation3 + $0x1c] sm:$0xf] %vm1265_vm6, %v2573_v18  ;;  %v670_v9 = vmax.f32 %v600_v63, 0.0  ;;  %v722_v36 = vsel %vm6643_vm3, 0, %v721_v21  ;;  %v3145_v58 = vrot.slane %v7336_v0, 5  ;;  %v1127_v17 = vshrl.u32 %v5976_v50, 16  ;;  %v3209_v21 = vpop.permute.xlu1 %3208  ;;  %v602_v18 = vpop.f32.mrf.mxu0 }
 0x16f   : > { %v3336_v59 = vld [vmem:[#allocation2 + $0x1c] sm:$0xf]  ;;  %v1130_v44 = vshll.u32 %v5976_v50, 16  ;;  %v3550_v47 = vor.u32 %v3549_v22, %v3546_v57  ;;  %2281 = vst.msk [vmem:[#allocation3 + $0x54] sm:$0xf] %vm1265_vm6, %v2150_v26  ;;  %v3148_v54 = vrot.slane %v3021_v55, 5 }
 0x170   : > { %723 = vst [vmem:[#allocation2 + $0x90] sm:$0x1] %v722_v36  ;;  %3368 = vst.msk [vmem:[#allocation3 + $0x20] sm:$0xf] %vm1265_vm6, %v3336_v59  ;;  %v1410_v46 = vld [vmem:[#allocation2 + $0x18] sm:$0xf]  ;;  %v5974_v42 = vpack.c.bf16 %v670_v9, %v670_v9 }
 0x171   : > { %v7359_v15 = vld [vmem:[%s9026_s3 + $0x118] sm:$0xff]   ;;  %v3147_v45 = vrot.slane %v3145_v58, 4  ;;  %v2151_v30 = vrot.slane %v2149_v61, 4  ;;  %v2152_v38 = vrot.slane %v2042_v33, 5  ;;  %1442 = vst.msk [vmem:[#allocation3 + $0x50] sm:$0xf] %vm1265_vm6, %v1410_v46  ;;  %3240 = vrot.lane.b32.xlu1 %v7332_v7, %s6542_s7  ;;  %v603_v7 = vadd.f32 %v7028_v29, %v602_v18 }
 0x172   : > { %v777_v34 = vld [vmem:[#allocation2 + $0x98] sm:$0x1]  ;;  %3303 = vst.msk [vmem:[#allocation3 + $0x1c] sm:$0xf] %vm2001_vm0, %v3209_v21  ;;  %v7366_v8 = vrot.slane %v1127_v17, 7  ;;  %v3551_v31 = vrot.slane %v3550_v47, 4  ;;  %6330 = vmatprep.subr.bf16.mxu1 %v7359_v15  ;;  %6290 = vmatprep.subr.bf16.mxu0 %v7359_v15  ;;  %v2385_v47 = vpop.permute.xlu1 %2384 }
 0x173   : > { %2474 = vst.msk [vmem:[#allocation3 + $0x54] sm:$0xf] %vm2001_vm0, %v2383_v62  ;;  %v781_v63 = vsel %vm6653_vm5, 0, %v780_v28  ;;  %v3022_v55 = vld [vmem:[#allocation2 + $0x6c] sm:$0xe]  ;;  %v1110_v50 = vshrl.u32 %v5974_v42, 16  ;;  %v3149_v22 = vsel %vm6756_vm12, %v3147_v45, %v3148_v54  ;;  %v2153_v33 = vsel %vm6756_vm12, %v2151_v30, %v2152_v38 }
 0x174   : > { %v1359_v61 = vld [vmem:[#allocation2 + $0x9c] sm:$0xf]  ;;  %v1113_v57 = vshll.u32 %v5974_v42, 16  ;;  %782 = vst [vmem:[#allocation2 + $0xa4] sm:$0x1] %v781_v63  ;;  %v1132_v28 = vor.u32 %v1130_v44, %v7366_v8  ;;  %v1133_v26 = vrot.slane %v7366_v8, 4  ;;  %v3556_v9 = vsel %vm6809_vm15, %v3551_v31, %v7289_v56 }
 0x175   : > { %v1498_v19 = vld [vmem:[#allocation2 + $0x70] sm:$0xf]  ;;  %2282 = vst.msk [vmem:[#allocation3 + $0x68] sm:$0xf] %vm1265_vm6, %v2153_v33  ;;  %v673_v36 = vmax.f32 %v611_v6, 0.0  ;;  %3847 = vrot.lane.b32.xlu0 %v3556_v9, %s6542_s7  ;;  %v7387_v17 = vrot.slane %v1110_v50, 7  ;;  %3236 = vrot.lane.b32.xlu1 %v3149_v22, %s6542_s7 }
 0x176   : > { %v3335_v59 = vld [vmem:[#allocation2 + $0x18] sm:$0xf]  ;;  %v5790_v54 = vrot.slane %v3022_v55, 9  ;;  %v778_v44 = vsel %vm6653_vm5, 0, %v777_v34  ;;  %v2037_v46 = vld [vmem:[#allocation2 + $0xc] sm:$0xe]  ;;  %v1360_v56 = vsel %vm6710_vm8, %v1132_v28, %v1359_v61 }
 0x177   : > { %3367 = vst.msk [vmem:[#allocation3 + $0xc] sm:$0xf] %vm1265_vm6, %v3335_v59  ;;  %v5977_v21 = vpack.c.bf16 %v673_v36, %v673_v36  ;;  %779 = vst [vmem:[#allocation2 + $0x98] sm:$0x1] %v778_v44  ;;  %v1499_v62 = vld [vmem:[#allocation2 + $0x74] sm:$0x1]  ;;  %v1115_v29 = vor.u32 %v1113_v57, %v7387_v17 }
 0x178   : > { %2475 = vst.msk [vmem:[#allocation3 + $0x68] sm:$0xf] %vm2001_vm0, %v2385_v47  ;;  %v1747_v42 = vshll.u32 %v1498_v19, 16  ;;  %v1751_v45 = vshrl.u32 %v1498_v19, 16  ;;  %v2038_v30 = vld [vmem:[#allocation2 + $0x10] sm:$0xf]  ;;  %v3153_v31 = vsel %vm6756_vm12, %v5790_v54, %v3152_v2 }
 0x179   : > { %1361 = vst [vmem:[#allocation2 + $0x9c] sm:$0xf] %v1360_v56  ;;  %v1116_v38 = vrot.slane %v7387_v17, 4  ;;  %v1352_v34 = vld [vmem:[#allocation2 + $0x90] sm:$0xf]  ;;  %v671_v6 = vmax.f32 %v603_v7, 0.0  ;;  %3238 = vrot.lane.b32.xlu0 %v3153_v31, %s6542_s7  ;;  %v1910_v56 = vpop.permute.xlu0 %1909 }
 0x17a   : > { %v2039_v63 = vld [vmem:[#allocation2 + $0x14] sm:$0x1]  ;;  %v1135_v55 = vshrl.u32 %v5977_v21, 16  ;;  %v1138_v18 = vshll.u32 %v5977_v21, 16  ;;  %v7403_v61 = vrot.slane %v1747_v42, 5  ;;  %v1753_v50 = vrot.slane %v1751_v45, 4 }
 0x17b   : > { %v1497_v33 = vld [vmem:[#allocation2 + $0x6c] sm:$0xf]  ;;  %v1353_v57 = vsel %vm6710_vm8, %v1115_v29, %v1352_v34  ;;  %v5975_v19 = vpack.c.bf16 %v671_v6, %v671_v6  ;;  %v2331_v35 = vld [vmem:[#allocation2 + $0x88] sm:$0xf]  ;;  %v1757_v28 = vshll.u32 %v1499_v62, 16  ;;  %v5767_v9 = vrot.slane %v2037_v46, 9  ;;  %v6284_v62 = vpop.f32.mrf.mxu0 }
 0x17c   : > { %v7408_v2 = vld [vmem:[#allocation2 + $0x70] sm:$0xf]  ;;  %v1417_v36 = vld [vmem:[#allocation2 + $0x40] sm:$0xf]  ;;  %1354 = vst [vmem:[#allocation2 + $0x90] sm:$0xf] %v1353_v57  ;;  %v1754_v47 = vor.u32 %v1753_v50, %v7403_v61  ;;  %2416 = vrot.lane.b32.xlu1 %v2331_v35, %s6542_s7 }
 0x17d   : > { %v1137_v22 = vrot.slane %v1135_v55, 7  ;;  %v2330_v59 = vld [vmem:[#allocation2 + $0x84] sm:$0xf]  ;;  %v2142_v54 = vrot.slane %v2038_v30, 5  ;;  %v2145_v7 = vrot.slane %v2039_v63, 5  ;;  %v1118_v21 = vshrl.u32 %v5975_v19, 16  ;;  %v2379_v8 = vpop.permute.xlu0 %2378 }
 0x17e   : > { %1449 = vst.msk [vmem:[#allocation3 + $0xdc] sm:$0xf] %vm1265_vm6, %v1417_v36  ;;  %v1363_v44 = vld [vmem:[#allocation2 + $0xa4] sm:$0x1]  ;;  %v1121_v42 = vshll.u32 %v5975_v19, 16  ;;  %v1759_v45 = vrot.slane %v1757_v28, 5  ;;  %2414 = vrot.lane.b32.xlu0 %v2330_v59, %s6542_s7  ;;  %v1912_v36 = vpop.permute.xlu1 %1911 }
 0x17f   : > { %v1738_v29 = vshrl.u32 %v1497_v33, 16  ;;  %v1140_v46 = vor.u32 %v1138_v18, %v1137_v22  ;;  %v1142_v34 = vrot.slane %v1137_v22, 4  ;;  %2004 = vst.msk [vmem:[#allocation3 + $0x28] sm:$0xf] %vm2001_vm0, %v1910_v56  ;;  %v1755_v31 = vrot.slane %v1754_v47, 4 }
 0x180   : > { %v2143_v30 = vsel %vm6756_vm12, %v5767_v9, %v2142_v54  ;;  %v1416_v6 = vld [vmem:[#allocation2 + $0x3c] sm:$0xf]  ;;  %v3342_v63 = vld [vmem:[#allocation2 + $0x40] sm:$0xf]  ;;  %v1120_v55 = vrot.slane %v1118_v21, 7  ;;  %v2144_v50 = vrot.slane %v2142_v54, 4  ;;  %v615_v21 = vpop.f32.mrf.mxu0 }
 0x181   : > { %2279 = vst.msk [vmem:[#allocation3 + $0x2c] sm:$0xf] %vm1265_vm6, %v2143_v30  ;;  %v1740_v57 = vrot.slane %v1738_v29, 4  ;;  %v1741_v19 = vshll.u32 %v1497_v33, 16  ;;  %v3422_v18 = vld [vmem:[#allocation2 + $0x74] sm:$0x1]  ;;  %v1141_v35 = vsel %vm6722_vm9, %v1133_v26, %v1140_v46  ;;  %v1364_v28 = vsel %vm6643_vm3, %v1142_v34, %v1363_v44 }
 0x182   : > { %1448 = vst.msk [vmem:[#allocation3 + $0xc8] sm:$0xf] %vm1265_vm6, %v1416_v6  ;;  %3374 = vst.msk [vmem:[#allocation3 + $0x98] sm:$0xf] %vm1265_vm6, %v3342_v63  ;;  %v1356_v9 = vld [vmem:[#allocation2 + $0x98] sm:$0x1]  ;;  %v1760_v22 = vsel %vm6809_vm15, %v1755_v31, %v1759_v45  ;;  %v1123_v47 = vor.u32 %v1121_v42, %v1120_v55  ;;  %v2146_v26 = vsel %vm6756_vm12, %v2144_v50, %v2145_v7 }
 0x183   : > { %v3625_v33 = vshll.u32 %v7408_v2, 16  ;;  %v730_v59 = vld [vmem:[#allocation2 + $0xb4] sm:$0x1]  ;;  %1362 = vst.msk [vmem:[#allocation2 + $0xa0] sm:$0xf] %vm1265_vm6, %v1141_v35  ;;  %v1125_v54 = vrot.slane %v1120_v55, 4  ;;  %1943 = vrot.lane.b32.xlu1 %v1760_v22, %s6542_s7  ;;  %v6285_v22 = vpop.f32.mrf.mxu0 }
 0x184   : > { %1365 = vst [vmem:[#allocation2 + $0xa4] sm:$0x1] %v1364_v28  ;;  %2005 = vst.msk [vmem:[#allocation3 + $0x3c] sm:$0xf] %vm2001_vm0, %v1912_v36  ;;  %v1743_v44 = vrot.slane %v1741_v19, 5  ;;  %v3629_v42 = vshrl.u32 %v7408_v2, 16  ;;  %v1124_v31 = vsel %vm6722_vm9, %v1116_v38, %v1123_v47  ;;  %v1906_v28 = vpop.permute.xlu0 %1905 }
 0x185   : > { %v2509_v56 = vld [vmem:[#allocation2 + $0x28] sm:$0xf]  ;;  %v7433_v29 = vld [vmem:[#allocation2 + $0x7c] sm:$0xf]  ;;  %2472 = vst.msk [vmem:[#allocation3 + $0x2c] sm:$0xf] %vm2001_vm0, %v2379_v8  ;;  %v1357_v30 = vsel %vm6643_vm3, %v1125_v54, %v1356_v9 }
 0x186   : > { %2280 = vst.msk [vmem:[#allocation3 + $0x40] sm:$0xf] %vm1265_vm6, %v2146_v26  ;;  %v7438_v45 = vrot.slane %v3625_v33, 5  ;;  %v3635_v46 = vshll.u32 %v3422_v18, 16  ;;  %v7444_v7 = vld [vmem:[%s9025_s2] ss:$0 sm:$0xff]  ;;  %v1744_v6 = vor.u32 %v1743_v44, %v1740_v57 }
 0x187   : > { %v624_v34 = vadd.f32 %v7444_v7, %v6284_v62  ;;  %v731_v2 = vsel %vm6643_vm3, 0, %v730_v59  ;;  %v2510_v63 = vld [vmem:[#allocation2 + $0x2c] sm:$0x1]  ;;  %v7457_v55 = vrot.slane %v9030_v5, 4  ;;  %1355 = vst.msk [vmem:[#allocation2 + $0x94] sm:$0xf] %vm1265_vm6, %v1124_v31  ;;  %v2381_v62 = vpop.permute.xlu1 %2380  ;;  %v616_v54 = vadd.f32 %v7444_v7, %v615_v21 }
 0x188   : > { %1358 = vst [vmem:[#allocation2 + $0x98] sm:$0x1] %v1357_v30  ;;  %v3631_v17 = vrot.slane %v3629_v42, 4  ;;  %732 = vst [vmem:[#allocation2 + $0xb4] sm:$0x1] %v731_v2  ;;  %v2608_v38 = vshll.u32 %v2509_v56, 16 }
 0x189   : > { %v676_v50 = vmax.f32 %v624_v34, 0.0  ;;  %v3019_v19 = vld [vmem:[#allocation2 + $0x60] sm:$0xe]  ;;  %v9031_v18 = vrot.slane %v7433_v29, 5  ;;  %2473 = vst.msk [vmem:[#allocation3 + $0x40] sm:$0xf] %vm2001_vm0, %v2381_v62 }
 0x18a   : > { %v1745_v57 = vrot.slane %v1744_v6, 4  ;;  %v3637_v35 = vrot.slane %v3635_v46, 5  ;;  %v2612_v9 = vshrl.u32 %v2509_v56, 16  ;;  %v727_v36 = vld [vmem:[#allocation2 + $0xa8] sm:$0x1]  ;;  %v3632_v33 = vor.u32 %v3631_v17, %v7438_v45 }
 0x18b   : > { %2002 = vst.msk [vmem:[#allocation3] sm:$0xf] %vm2001_vm0, %v1906_v28  ;;  %v5980_v59 = vpack.c.bf16 %v676_v50, %v676_v50  ;;  %v7464_v47 = vrot.slane %v2608_v38, 5  ;;  %v2508_v8 = vld [vmem:[#allocation2 + $0x24] sm:$0xf]  ;;  %v2618_v46 = vshll.u32 %v2510_v63, 16  ;;  %v3217_v2 = vpop.permute.xlu1 %3216  ;;  %v7482_v38 = vpop.permute.xlu0 %3214 }
 0x18c   : > { %v3341_v26 = vld [vmem:[#allocation2 + $0x3c] sm:$0xf]  ;;  %v1750_v44 = vsel %vm6809_vm15, %v1745_v57, %v7403_v61  ;;  %v2614_v42 = vrot.slane %v2612_v9, 4  ;;  %v5789_v56 = vrot.slane %v3019_v19, 9  ;;  %v1415_v34 = vld [vmem:[#allocation2 + $0x34] sm:$0xf]  ;;  %v618_v19 = vpop.f32.mrf.mxu0 }
 0x18d   : > { %3373 = vst.msk [vmem:[#allocation3 + $0x84] sm:$0xf] %vm1265_vm6, %v3341_v26  ;;  %1941 = vrot.lane.b32.xlu0 %v1750_v44, %s6542_s7  ;;  %v3633_v31 = vrot.slane %v3632_v33, 4  ;;  %v1161_v30 = vshrl.u32 %v5980_v59, 16  ;;  %v1164_v6 = vshll.u32 %v5980_v59, 16  ;;  %v674_v62 = vmax.f32 %v616_v54, 0.0 }
 0x18e   : > { %1447 = vst.msk [vmem:[#allocation3 + $0xb4] sm:$0xf] %vm1265_vm6, %v1415_v34  ;;  %v7475_v21 = vrot.slane %v9031_v18, 4  ;;  %v7477_v61 = vld [vmem:[#allocation2 + $0xa0] sm:$0xf]  ;;  %v2615_v63 = vor.u32 %v2614_v42, %v7464_v47  ;;  %v728_v17 = vsel %vm6643_vm3, 0, %v727_v36  ;;  %v3146_v36 = vsel %vm6756_vm12, %v5789_v56, %v3145_v58 }
 0x18f   : > { %9059 = vst [vmem:[#allocation6_spill] sm:$0xff] %v7477_v61  ;;  %v2599_v50 = vshrl.u32 %v2508_v8, 16  ;;  %v3638_v57 = vsel %vm6809_vm15, %v3633_v31, %v3637_v35  ;;  %v7486_v28 = vrot.slane %v1161_v30, 7  ;;  %729 = vst [vmem:[#allocation2 + $0xa8] sm:$0x1] %v728_v17  ;;  %v5978_v9 = vpack.c.bf16 %v674_v62, %v674_v62  ;;  %v7497_v62 = vpop.permute.xlu1 %3212  ;;  %v1908_v17 = vpop.permute.xlu0 %1907 }
 0x190   : > { %v2602_v33 = vshll.u32 %v2508_v8, 16  ;;  %3861 = vrot.lane.b32.xlu1 %v3638_v57, %s6542_s7  ;;  %v1373_v59 = vld [vmem:[#allocation2 + $0xb4] sm:$0xf]  ;;  %v2616_v54 = vrot.slane %v2615_v63, 4  ;;  %v2620_v26 = vrot.slane %v2618_v46, 5  ;;  %v627_v44 = vadd.f32 %v7444_v7, %v6285_v22 }
 0x191   : > { %v786_v42 = vld [vmem:[#allocation2 + $0xbc] sm:$0x1]  ;;  %v9037_v35 = vrot.slane %v7477_v61, 5  ;;  %v1166_v34 = vor.u32 %v1164_v6, %v7486_v28  ;;  %3234 = vrot.lane.b32.xlu0 %v3146_v36, %s6542_s7  ;;  %v1144_v8 = vshrl.u32 %v5978_v9, 16  ;;  %v2507_v30 = vld [vmem:[#allocation2 + $0x20] sm:$0x1]  ;;  %v7500_v46 = vadd.f32 %v7444_v7, %v618_v19 }
 0x192   : > { %v2506_v31 = vld [vmem:[#allocation2 + $0x1c] sm:$0xf]  ;;  %v2621_v0 = vsel %vm6809_vm15, %v2616_v54, %v2620_v26  ;;  %v1147_v58 = vshll.u32 %v5978_v9, 16  ;;  %v2601_v22 = vrot.slane %v2599_v50, 4  ;;  %v2604_v56 = vrot.slane %v2602_v33, 5 }
 0x193   : > { %v3420_v63 = vld [vmem:[#allocation2 + $0x6c] sm:$0xf]  ;;  %v1167_v6 = vrot.slane %v7486_v28, 4  ;;  %v1374_v57 = vsel %vm6710_vm8, %v1166_v34, %v1373_v59  ;;  %2971 = vst.msk [vmem:[#allocation3 + $0x6c] sm:$0xf] %vm1265_vm6, %v2621_v0  ;;  %v7508_v36 = vrot.slane %v1144_v8, 7  ;;  %v7521_v5 = vpop.permute.xlu0 %2390 }
 0x194   : > { %v2329_v10 = vld [vmem:[#allocation2 + $0x7c] sm:$0xf]  ;;  %v677_v19 = vmax.f32 %v627_v44, 0.0  ;;  %2003 = vst.msk [vmem:[#allocation3 + $0x14] sm:$0xf] %vm2001_vm0, %v1908_v17  ;;  %v2605_v50 = vor.u32 %v2604_v56, %v2601_v22  ;;  %v787_v9 = vsel %vm6653_vm5, 0, %v786_v42  ;;  %v7517_v17 = vpop.permute.xlu1 %2392 }
 0x195   : > { %1375 = vst [vmem:[#allocation2 + $0xb4] sm:$0xf] %v1374_v57  ;;  %3307 = vst.msk [vmem:[#allocation3 + $0x6c] sm:$0xf] %vm2001_vm0, %v3217_v2  ;;  %2412 = vrot.lane.b32.xlu1 %v2329_v10, %s6542_s7  ;;  %v2584_v33 = vshll.u32 %v2506_v31, 16  ;;  %v2588_v54 = vshrl.u32 %v2506_v31, 16  ;;  %v1149_v26 = vor.u32 %v1147_v58, %v7508_v36 }
 0x196   : > { %v783_v59 = vld [vmem:[#allocation2 + $0xb0] sm:$0x1]  ;;  %v1150_v34 = vrot.slane %v7508_v36, 4  ;;  %788 = vst [vmem:[#allocation2 + $0xbc] sm:$0x1] %v787_v9  ;;  %v5981_v44 = vpack.c.bf16 %v677_v19, %v677_v19  ;;  %v2594_v8 = vshll.u32 %v2507_v30, 16 }
 0x197   : > { %v1495_v0 = vld [vmem:[#allocation2 + $0x64] sm:$0xf]  ;;  %v3340_v2 = vld [vmem:[#allocation2 + $0x34] sm:$0xf]  ;;  %v1366_v57 = vld [vmem:[#allocation2 + $0xa8] sm:$0xf] }
 0x198   : > { %v2606_v10 = vrot.slane %v2605_v50, 4  ;;  %v7519_v22 = vrot.slane %v2584_v33, 5  ;;  %v2590_v56 = vrot.slane %v2588_v54, 4  ;;  %v3616_v42 = vshrl.u32 %v3420_v63, 16  ;;  %3372 = vst.msk [vmem:[#allocation3 + $0x70] sm:$0xf] %vm1265_vm6, %v3340_v2 }
 0x199   : > { %v1367_v31 = vsel %vm6710_vm8, %v1149_v26, %v1366_v57  ;;  %v1169_v58 = vshrl.u32 %v5981_v44, 16  ;;  %v1172_v19 = vshll.u32 %v5981_v44, 16  ;;  %v2596_v30 = vrot.slane %v2594_v8, 5  ;;  %v1496_v9 = vld [vmem:[#allocation2 + $0x68] sm:$0x1] }
 0x19a   : > { %1368 = vst [vmem:[#allocation2 + $0xa8] sm:$0xf] %v1367_v31  ;;  %v2611_v50 = vsel %vm6809_vm15, %v2606_v10, %v7464_v47  ;;  %v2591_v33 = vor.u32 %v2590_v56, %v7519_v22  ;;  %v3618_v54 = vrot.slane %v3616_v42, 4  ;;  %v3619_v18 = vshll.u32 %v3420_v63, 16  ;;  %v7534_v8 = vld [vmem:[#allocation2 + $0x34] sm:$0xf]  ;;  %v1920_v31 = vpop.permute.xlu1 %1919 }
 0x19b   : > { %2970 = vst.msk [vmem:[#allocation3 + $0x58] sm:$0xf] %vm1265_vm6, %v2611_v50  ;;  %v1171_v2 = vrot.slane %v1169_v58, 7  ;;  %v675_v40 = vmax.f32 %v7500_v46, 0.0  ;;  %v784_v26 = vsel %vm6653_vm5, 0, %v783_v59  ;;  %v1723_v44 = vshll.u32 %v1495_v0, 16  ;;  %v1918_v59 = vpop.permute.xlu0 %1917 }
 0x19c   : > { %v7536_v57 = vld [vmem:[#allocation2 + $0x38] sm:$0x1]  ;;  %3306 = vst.msk [vmem:[#allocation3 + $0x58] sm:$0xf] %vm2001_vm0, %v7482_v38  ;;  %v2592_v47 = vrot.slane %v2591_v33, 4  ;;  %v3621_v63 = vrot.slane %v3619_v18, 5 }
 0x19d   : > { %785 = vst [vmem:[#allocation2 + $0xb0] sm:$0x1] %v784_v26  ;;  %v1727_v10 = vshrl.u32 %v1495_v0, 16  ;;  %v1733_v56 = vshll.u32 %v1496_v9, 16  ;;  %v3418_v46 = vld [vmem:[#allocation2 + $0x64] sm:$0xf]  ;;  %v1174_v42 = vor.u32 %v1172_v19, %v1171_v2  ;;  %v5979_v50 = vpack.c.bf16 %v675_v40, %v675_v40 }
 0x19e   : > { %2009 = vst.msk [vmem:[#allocation3 + $0x8c] sm:$0xf] %vm2001_vm0, %v1920_v31  ;;  %v1176_v58 = vrot.slane %v1171_v2, 4  ;;  %v7542_v12 = vrot.slane %v1723_v44, 5  ;;  %2008 = vst.msk [vmem:[#allocation3 + $0x78] sm:$0xf] %vm2001_vm0, %v1918_v59  ;;  %v2597_v18 = vsel %vm6809_vm15, %v2592_v47, %v2596_v30  ;;  %v3622_v38 = vor.u32 %v3621_v63, %v3618_v54  ;;  %v3838_v31 = vpop.permute.xlu1 %3837 }
 0x19f   : > { %v6403_v32 = vld [vmem:[#allocation3] ss:$20 sps:$4 sm:$0xff]   ;;  %v1377_v24 = vld [vmem:[#allocation2 + $0xbc] sm:$0x1]  ;;  %v1729_v0 = vrot.slane %v1727_v10, 4  ;;  %v1735_v9 = vrot.slane %v1733_v56, 5  ;;  %v1175_v19 = vsel %vm6722_vm9, %v1167_v6, %v1174_v42  ;;  %v7566_v63 = vpop.permute.xlu0 %3210 }
 0x1a0   : > { %v6405_v33 = vld [vmem:[#allocation3 + $0x4] ss:$20 sps:$4 sm:$0xff]   ;;  %v1378_v40 = vsel %vm6643_vm3, %v1176_v58, %v1377_v24  ;;  %2969 = vst.msk [vmem:[#allocation3 + $0x44] sm:$0xf] %vm1265_vm6, %v2597_v18  ;;  %v1152_v2 = vshrl.u32 %v5979_v50, 16  ;;  %v1155_v26 = vshll.u32 %v5979_v50, 16 }
 0x1a1   : > { %v2046_v44 = vld [vmem:[#allocation2 + $0x30] sm:$0xe]  ;;  %1376 = vst.msk [vmem:[#allocation2 + $0xb8] sm:$0xf] %vm1265_vm6, %v1175_v19  ;;  %1379 = vst [vmem:[#allocation2 + $0xbc] sm:$0x1] %v1378_v40  ;;  %v1730_v24 = vor.u32 %v1729_v0, %v7542_v12  ;;  %5103 = vmatprep.mubr.bf16.mxu1 %v6405_v33 }
 0x1a2   : > { %v7557_v30 = vld [vmem:[%s9026_s3 + $0x110] sm:$0xff]   ;;  %3305 = vst.msk [vmem:[#allocation3 + $0x44] sm:$0xf] %vm2001_vm0, %v7497_v62  ;;  %v3623_v28 = vrot.slane %v3622_v38, 4  ;;  %v2163_v6 = vrot.slane %v7534_v8, 5  ;;  %v2166_v54 = vrot.slane %v7536_v57, 5  ;;  %5104 = vmatmul.mubr.bf16.vlgmr.msra.gmra.mxu1 %v6403_v32  ;;  %v7575_v32 = vpop.permute.xlu1 %2388 }
 0x1a3   : > { %v1494_v47 = vld [vmem:[#allocation2 + $0x60] sm:$0xf]  ;;  %3930 = vst.msk [vmem:[#allocation3 + $0x48] sm:$0xf] %vm2001_vm0, %v3838_v31  ;;  %v6407_v10 = vld [vmem:[#allocation3 + $0x2c] ss:$20 sps:$4 sm:$0xff]   ;;  %6334 = vmatpush3.bf16.msra.mxu1 %v7359_v15  ;;  %v3836_v31 = vpop.permute.xlu0 %3835 }
 0x1a4   : > { %v1154_v56 = vrot.slane %v1152_v2, 7  ;;  %v3601_v59 = vshll.u32 %v3418_v46, 16  ;;  %v3605_v42 = vshrl.u32 %v3418_v46, 16  ;;  %v3611_v58 = vshll.u32 %v3419_v16, 16  ;;  %v3417_v50 = vld [vmem:[#allocation2 + $0x60] sm:$0xf]  ;;  %5111 = vmatprep.mubr.bf16.mxu1 %v6407_v10  ;;  %6331 = vmatprep.subr.bf16.mxu1 %v7557_v30 }
 0x1a5   : > { %v3628_v62 = vsel %vm6809_vm15, %v3623_v28, %v7438_v45  ;;  %v1731_v8 = vrot.slane %v1730_v24, 4  ;;  %v2165_v18 = vrot.slane %v2163_v6, 4  ;;  %v5770_v57 = vrot.slane %v2046_v44, 9  ;;  %v1504_v38 = vld [vmem:[#allocation2 + $0x88] sm:$0xf] }
 0x1a6   : > { %3859 = vrot.lane.b32.xlu0 %v3628_v62, %s6542_s7  ;;  %v1157_v0 = vor.u32 %v1155_v26, %v1154_v56  ;;  %v1159_v33 = vrot.slane %v1154_v56, 4  ;;  %v1370_v19 = vld [vmem:[#allocation2 + $0xb0] sm:$0x1]  ;;  %v7573_v46 = vrot.slane %v3601_v59, 5  ;;  %v3607_v16 = vrot.slane %v3605_v42, 4 }
 0x1a7   : > { %v1736_v45 = vsel %vm6809_vm15, %v1731_v8, %v1735_v9  ;;  %v2167_v40 = vsel %vm6756_vm12, %v2165_v18, %v2166_v54  ;;  %v2328_v2 = vld [vmem:[#allocation2 + $0x78] sm:$0xf]  ;;  %v3613_v15 = vrot.slane %v3611_v58, 5  ;;  %v2164_v26 = vsel %vm6756_vm12, %v5770_v57, %v2163_v6  ;;  %v1505_v44 = vld [vmem:[#allocation2 + $0x8c] sm:$0x1]  ;;  %6335 = vmatpush3.bf16.msra.mxu1 %v7557_v30 }
 0x1a8   : > { %v1158_v28 = vsel %vm6722_vm9, %v1150_v34, %v1157_v0  ;;  %v1371_v24 = vsel %vm6643_vm3, %v1159_v33, %v1370_v19  ;;  %1939 = vrot.lane.b32.xlu1 %v1736_v45, %s6542_s7  ;;  %2286 = vst.msk [vmem:[#allocation3 + $0xb8] sm:$0xf] %vm1265_vm6, %v2167_v40  ;;  %v3608_v9 = vor.u32 %v3607_v16, %v7573_v46  ;;  %2285 = vst.msk [vmem:[#allocation3 + $0xa4] sm:$0xf] %vm1265_vm6, %v2164_v26  ;;  %v2505_v6 = vld [vmem:[#allocation2 + $0x18] sm:$0xf]  ;;  %v6288_v19 = vpop.f32.mrf.mxu0  ;;  %v7612_v16 = vpop.permute.xlu0 %2386 }
 0x1a9   : > { %v1714_v54 = vshrl.u32 %v1494_v47, 16  ;;  %3929 = vst.msk [vmem:[#allocation3 + $0x34] sm:$0xf] %vm2001_vm0, %v3836_v31  ;;  %v3339_v10 = vld [vmem:[#allocation2 + $0x30] sm:$0xf]  ;;  %v1717_v34 = vshll.u32 %v1494_v47, 16 }
 0x1aa   : > { %v7595_v36 = vld [vmem:[#allocation2 + $0x94] sm:$0xf]  ;;  %1369 = vst.msk [vmem:[#allocation2 + $0xac] sm:$0xf] %vm1265_vm6, %v1158_v28  ;;  %1372 = vst [vmem:[#allocation2 + $0xb0] sm:$0x1] %v1371_v24  ;;  %2410 = vrot.lane.b32.xlu0 %v2328_v2, %s6542_s7 }
 0x1ab   : > { %9060 = vst [vmem:[#allocation7_spill] sm:$0xff] %v7595_v36  ;;  %2479 = vst.msk [vmem:[#allocation3 + $0xb8] sm:$0xf] %vm2001_vm0, %v7517_v17  ;;  %v3592_v56 = vshrl.u32 %v3417_v50, 16  ;;  %v3595_v59 = vshll.u32 %v3417_v50, 16  ;;  %v1795_v42 = vshll.u32 %v1504_v38, 16  ;;  %v1916_v17 = vpop.permute.xlu1 %1915 }
 0x1ac   : > { %2478 = vst.msk [vmem:[#allocation3 + $0xa4] sm:$0xf] %vm2001_vm0, %v7521_v5  ;;  %v3609_v58 = vrot.slane %v3608_v9, 4  ;;  %v1716_v62 = vrot.slane %v1714_v54, 4  ;;  %v1799_v8 = vshrl.u32 %v1504_v38, 16  ;;  %v1805_v18 = vshll.u32 %v1505_v44, 16 }
 0x1ad   : > { %3371 = vst.msk [vmem:[#allocation3 + $0x5c] sm:$0xf] %vm1265_vm6, %v3339_v10  ;;  %v7605_v57 = vld [vmem:[#allocation2 + $0x28] sm:$0xf]  ;;  %v7609_v5 = vrot.slane %v9037_v35, 4  ;;  %v1719_v47 = vrot.slane %v1717_v34, 5 }
 0x1ae   : > { %v3594_v50 = vrot.slane %v3592_v56, 4  ;;  %v3597_v0 = vrot.slane %v3595_v59, 5  ;;  %v2045_v33 = vld [vmem:[#allocation2 + $0x2c] sm:$0x1]  ;;  %2007 = vst.msk [vmem:[#allocation3 + $0x64] sm:$0xf] %vm2001_vm0, %v1916_v17  ;;  %v3614_v38 = vsel %vm6809_vm15, %v3609_v58, %v3613_v15  ;;  %v640_v17 = vadd.f32 %v7444_v7, %v6288_v19 }
 0x1af   : > { %9061 = vst [vmem:[#allocation8_spill] sm:$0xff] %v7609_v5  ;;  %v9038_v45 = vrot.slane %v7595_v36, 5  ;;  %v7617_v40 = vrot.slane %v1795_v42, 5  ;;  %v1801_v2 = vrot.slane %v1799_v8, 4  ;;  %3857 = vrot.lane.b32.xlu1 %v3614_v38, %s6542_s7  ;;  %v1720_v26 = vor.u32 %v1719_v47, %v1716_v62  ;;  %v2335_v44 = vld [vmem:[#allocation2 + $0xa0] sm:$0xf]  ;;  %v3834_v15 = vpop.permute.xlu1 %3833  ;;  %v631_v62 = vpop.f32.mrf.mxu0 }
 0x1b0   : > { %v3598_v31 = vor.u32 %v3597_v0, %v3594_v50  ;;  %v1807_v28 = vrot.slane %v1805_v18, 5  ;;  %v2575_v24 = vshrl.u32 %v2505_v6, 16  ;;  %v736_v9 = vld [vmem:[#allocation2 + $0xcc] sm:$0x1]  ;;  %v7620_v54 = vld [vmem:[#allocation2 + $0xb8] sm:$0xf]  ;;  %v1914_v18 = vpop.permute.xlu0 %1913 }
 0x1b1   : > { %v1802_v10 = vor.u32 %v1801_v2, %v7617_v40  ;;  %v2578_v34 = vshll.u32 %v2505_v6, 16  ;;  %v9039_v56 = vrot.slane %v7605_v57, 5  ;;  %v2159_v59 = vrot.slane %v2045_v33, 5  ;;  %v733_v47 = vld [vmem:[#allocation2 + $0xc0] sm:$0x1] }
 0x1b2   : > { %v1721_v42 = vrot.slane %v1720_v26, 4  ;;  %v3599_v58 = vrot.slane %v3598_v31, 4  ;;  %v2577_v8 = vrot.slane %v2575_v24, 4  ;;  %3928 = vst.msk [vmem:[#allocation3 + $0x20] sm:$0xf] %vm2001_vm0, %v3834_v15  ;;  %v737_v6 = vsel %vm6643_vm3, 0, %v736_v9 }
 0x1b3   : > { %v1803_v50 = vrot.slane %v1802_v10, 4  ;;  %v2580_v0 = vrot.slane %v2578_v34, 5  ;;  %v2158_v38 = vrot.slane %v9039_v56, 4  ;;  %v1503_v33 = vld [vmem:[#allocation2 + $0x84] sm:$0xf]  ;;  %v7633_v2 = vrot.slane %v9038_v45, 4  ;;  %2424 = vrot.lane.b32.xlu1 %v2335_v44, %s6542_s7 }
 0x1b4   : > { %2006 = vst.msk [vmem:[#allocation3 + $0x50] sm:$0xf] %vm2001_vm0, %v1914_v18  ;;  %v1726_v26 = vsel %vm6809_vm15, %v1721_v42, %v7542_v12  ;;  %v680_v31 = vmax.f32 %v640_v17, 0.0  ;;  %738 = vst [vmem:[#allocation2 + $0xcc] sm:$0x1] %v737_v6  ;;  %v3604_v24 = vsel %vm6809_vm15, %v3599_v58, %v7573_v46  ;;  %v632_v34 = vadd.f32 %v7444_v7, %v631_v62  ;;  %v7647_v18 = vpop.permute.xlu1 %3224  ;;  %v6289_v46 = vpop.f32.mrf.mxu0 }
 0x1b5   : > { %9062 = vst [vmem:[#allocation9_spill] sm:$0xff] %v7633_v2  ;;  %1937 = vrot.lane.b32.xlu0 %v1726_v26, %s6542_s7  ;;  %v2581_v9 = vor.u32 %v2580_v0, %v2577_v8  ;;  %v2160_v10 = vsel %vm6756_vm12, %v2158_v38, %v2159_v59  ;;  %v792_v15 = vld [vmem:[#allocation2 + $0xd4] sm:$0x1]  ;;  %v1808_v12 = vsel %vm6809_vm15, %v1803_v50, %v1807_v28  ;;  %v734_v42 = vsel %vm6643_vm3, 0, %v733_v47  ;;  %v1501_v58 = vld [vmem:[#allocation2 + $0x7c] sm:$0xf]  ;;  %v3832_v8 = vpop.permute.xlu0 %3831 }
 0x1b6   : > { %2284 = vst.msk [vmem:[#allocation3 + $0x90] sm:$0xf] %vm1265_vm6, %v2160_v10  ;;  %v5984_v44 = vpack.c.bf16 %v680_v31, %v680_v31  ;;  %v1786_v17 = vshrl.u32 %v1503_v33, 16  ;;  %v7657_v59 = vld [vmem:[%s9026_s3 + $0x108] sm:$0xff]   ;;  %v678_v28 = vmax.f32 %v632_v34, 0.0  ;;  %v1789_v50 = vshll.u32 %v1503_v33, 16 }
 0x1b7   : > { %v2582_v62 = vrot.slane %v2581_v9, 4  ;;  %2477 = vst.msk [vmem:[#allocation3 + $0x90] sm:$0xf] %vm2001_vm0, %v7575_v32  ;;  %735 = vst [vmem:[#allocation2 + $0xc0] sm:$0x1] %v734_v42  ;;  %v643_v0 = vadd.f32 %v7444_v7, %v6289_v46  ;;  %1951 = vrot.lane.b32.xlu1 %v1808_v12, %s6542_s7  ;;  %v793_v31 = vsel %vm6653_vm5, 0, %v792_v15  ;;  %6332 = vmatprep.subr.bf16.mxu1 %v7657_v59 }
 0x1b8   : > { %v1502_v38 = vld [vmem:[#allocation2 + $0x80] sm:$0x1]  ;;  %3927 = vst.msk [vmem:[#allocation3 + $0xc] sm:$0xf] %vm2001_vm0, %v3832_v8  ;;  %v1195_v47 = vshrl.u32 %v5984_v44, 16  ;;  %v1198_v6 = vshll.u32 %v5984_v44, 16  ;;  %v5982_v33 = vpack.c.bf16 %v678_v28, %v678_v28  ;;  %v7671_v34 = vpop.permute.xlu1 %3220  ;;  %6336 = vmatpush3.bf16.msra.mxu1 %v7657_v59 }
 0x1b9   : > { %v1788_v26 = vrot.slane %v1786_v17, 4  ;;  %3855 = vrot.lane.b32.xlu0 %v3604_v24, %s6542_s7  ;;  %v2587_v32 = vsel %vm6809_vm15, %v2582_v62, %v7519_v22  ;;  %v1791_v9 = vrot.slane %v1789_v50, 5  ;;  %v681_v10 = vmax.f32 %v643_v0, 0.0  ;;  %794 = vst [vmem:[#allocation2 + $0xd4] sm:$0x1] %v793_v31  ;;  %v7677_v17 = vpop.permute.xlu0 %3222  ;;  %v4240_v0 = vld [vmem:[#allocation3 + $0x3c] sm:$0xff] }
 0x1ba   : > { %2968 = vst.msk [vmem:[#allocation3 + $0x30] sm:$0xf] %vm1265_vm6, %v2587_v32  ;;  %v7675_v12 = vrot.slane %v1195_v47, 7  ;;  %v1771_v15 = vshll.u32 %v1501_v58, 16  ;;  %v1775_v44 = vshrl.u32 %v1501_v58, 16  ;;  %v1781_v42 = vshll.u32 %v1502_v38, 16 }
 0x1bb   : > { %v2043_v24 = vld [vmem:[#allocation2 + $0x24] sm:$0xe]  ;;  %3304 = vst.msk [vmem:[#allocation3 + $0x30] sm:$0xf] %vm2001_vm0, %v7566_v63  ;;  %v1387_v22 = vld [vmem:[#allocation2 + $0xcc] sm:$0xf]  ;;  %v1792_v28 = vor.u32 %v1791_v9, %v1788_v26  ;;  %v5985_v50 = vpack.c.bf16 %v681_v10, %v681_v10  ;;  %v634_v9 = vpop.f32.mrf.mxu0 }
 0x1bc   : > { %v2333_v46 = vld [vmem:[#allocation2 + $0x94] sm:$0xf]  ;;  %v1178_v8 = vshrl.u32 %v5982_v33, 16  ;;  %v1181_v62 = vshll.u32 %v5982_v33, 16  ;;  %v2334_v31 = vld [vmem:[#allocation2 + $0x9c] sm:$0xf]  ;;  %v1200_v47 = vor.u32 %v1198_v6, %v7675_v12  ;;  %v7691_v19 = vpop.permute.xlu1 %2400  ;;  %v635_v37 = vadd.f32 %v7444_v7, %v634_v9 }
 0x1bd   : > { %2420 = vrot.lane.b32.xlu1 %v2333_v46, %s6542_s7  ;;  %v7684_v58 = vrot.slane %v1771_v15, 5  ;;  %v1777_v38 = vrot.slane %v1775_v44, 4  ;;  %v789_v35 = vld [vmem:[#allocation2 + $0xc8] sm:$0x1]  ;;  %2422 = vrot.lane.b32.xlu0 %v2334_v31, %s6542_s7  ;;  %v1793_v45 = vrot.slane %v1792_v28, 4  ;;  %v1203_v33 = vshrl.u32 %v5985_v50, 16 }
 0x1be   : > { %v7687_v63 = vrot.slane %v1178_v8, 7  ;;  %v1206_v26 = vshll.u32 %v5985_v50, 16  ;;  %v7689_v10 = vld [vmem:[#allocation2 + $0x40] sm:$0xf]  ;;  %v1388_v15 = vsel %vm6710_vm8, %v1200_v47, %v1387_v22  ;;  %v1783_v56 = vrot.slane %v1781_v42, 5  ;;  %v7700_v50 = vpop.permute.xlu0 %2398 }
 0x1bf   : > { %v6420_v6 = vld [vmem:[#allocation3 + $0x54] ss:$20 sps:$4 sm:$0xff]   ;;  %v1778_v44 = vor.u32 %v1777_v38, %v7684_v58  ;;  %v5769_v31 = vrot.slane %v2043_v24, 9  ;;  %v7696_v8 = vld [vmem:[#allocation2 + $0x44] sm:$0x1]  ;;  %v1798_v22 = vsel %vm6809_vm15, %v1793_v45, %v7617_v40  ;;  %v1205_v47 = vrot.slane %v1203_v33, 7 }
 0x1c0   : > { %v4237_v32 = vld [vmem:[#allocation3 + $0x28] sm:$0xff]  ;;  %v7698_v28 = vld [vmem:[#allocation2 + $0x78] sm:$0xf]  ;;  %1389 = vst [vmem:[#allocation2 + $0xcc] sm:$0xf] %v1388_v15  ;;  %v1183_v1 = vor.u32 %v1181_v62, %v7687_v63  ;;  %v9063_v42 = vmov 0   ;;  %v1928_v36 = vpop.permute.xlu1 %1927 }
 0x1c1   : > { %v1380_v46 = vld [vmem:[#allocation2 + $0xc0] sm:$0xf]  ;;  %v6428_v38 = vld [vmem:[#allocation3 + $0xc] ss:$20 sps:$4 sm:$0xff]   ;;  %1403 = vst.msk [vmem:[#allocation2 + $0xcc] sm:$0xf] %vm1265_vm6, %v9063_v42  ;;  %v5820_v62 = vcombine.low %v4237_v32, %v4240_v0  ;;  %1949 = vrot.lane.b32.xlu0 %v1798_v22, %s6542_s7  ;;  %v1208_v40 = vor.u32 %v1206_v26, %v1205_v47 }
 0x1c2   : > { %v6426_v53 = vld [vmem:[#allocation3 + $0x8] ss:$20 sps:$4 sm:$0xff]   ;;  %v1779_v5 = vrot.slane %v1778_v44, 4  ;;  %v9064_v61 = vrot.slane %v7605_v57, 5  ;;  %v1421_v2 = vld [vmem:[#allocation2 + $0x58] sm:$0xf]  ;;  %v1381_v45 = vsel %vm6710_vm8, %v1183_v1, %v1380_v46  ;;  %5264 = vmatprep.mubr.bf16.mxu0 %v6428_v38 }
 0x1c3   : > { %v1391_v24 = vld [vmem:[#allocation2 + $0xd4] sm:$0x1]  ;;  %v1210_v33 = vrot.slane %v1205_v47, 4  ;;  %v790_v44 = vsel %vm6653_vm5, 0, %v789_v35  ;;  %v1510_v57 = vld [vmem:[#allocation2 + $0xa0] sm:$0xf]  ;;  %5112 = vmatmul.mubr.bf16.gmra.mxu1 %v5820_v62  ;;  %5265 = vmatmul.mubr.bf16.vlgmr.msra.gmra.mxu0 %v6426_v53 }
 0x1c4   : > { %v2157_v15 = vsel %vm6756_vm12, %v5769_v31, %v9064_v61  ;;  %1453 = vst.msk [vmem:[#allocation3 + $0x12c] sm:$0xf] %vm1265_vm6, %v1421_v2  ;;  %1382 = vst [vmem:[#allocation2 + $0xc0] sm:$0xf] %v1381_v45  ;;  %v1784_v7 = vsel %vm6809_vm15, %v1779_v5, %v1783_v56  ;;  %v679_v27 = vmax.f32 %v635_v37, 0.0  ;;  %v2656_v61 = vshll.u32 %v7689_v10, 16  ;;  %v1926_v2 = vpop.permute.xlu0 %1925  ;;  %5119 = vmatprep.mubr.bf16.mxu1 %v6420_v6  ;;  %v3846_v38 = vpop.permute.xlu1 %3845 }
 0x1c5   : > { %2283 = vst.msk [vmem:[#allocation3 + $0x7c] sm:$0xf] %vm1265_vm6, %v2157_v15  ;;  %791 = vst [vmem:[#allocation2 + $0xc8] sm:$0x1] %v790_v44  ;;  %v2332_v1 = vld [vmem:[#allocation2 + $0x90] sm:$0xf]  ;;  %v1392_v37 = vsel %vm6643_vm3, %v1210_v33, %v1391_v24  ;;  %1947 = vrot.lane.b32.xlu1 %v1784_v7, %s6542_s7 }
 0x1c6   : > { %2476 = vst.msk [vmem:[#allocation3 + $0x7c] sm:$0xf] %vm2001_vm0, %v7612_v16  ;;  %v2660_v25 = vshrl.u32 %v7689_v10, 16  ;;  %v1511_v35 = vld [vmem:[#allocation2 + $0xa4] sm:$0x1]  ;;  %v9065_v5 = vrot.slane %v7675_v12, 4  ;;  %2418 = vrot.lane.b32.xlu0 %v2332_v1, %s6542_s7 }
 0x1c7   : > { %v7727_v0 = vld [vmem:[#allocation2 + $0x34] sm:$0xf]  ;;  %2013 = vst.msk [vmem:[#allocation3 + $0xdc] sm:$0xf] %vm2001_vm0, %v1928_v36  ;;  %v6429_v32 = vld [vmem:[#allocation3 + $0x34] ss:$20 sps:$4 sm:$0xff]   ;;  %v5983_v36 = vpack.c.bf16 %v679_v27, %v679_v27 }
 0x1c8   : > { %v1209_v16 = vsel %vm6722_vm9, %v9065_v5, %v1208_v40  ;;  %v2339_v56 = vld [vmem:[#allocation2 + $0xb8] sm:$0xf]  ;;  %v2666_v26 = vshll.u32 %v7696_v8, 16  ;;  %v1762_v9 = vshrl.u32 %v7698_v28, 16  ;;  %2012 = vst.msk [vmem:[#allocation3 + $0xc8] sm:$0xf] %vm2001_vm0, %v1926_v2  ;;  %5272 = vmatprep.mubr.bf16.mxu0 %v6429_v32 }
 0x1c9   : > { %v1420_v53 = vld [vmem:[#allocation2 + $0x54] sm:$0xf]  ;;  %1390 = vst.msk [vmem:[#allocation2 + $0xd0] sm:$0xf] %vm1265_vm6, %v1209_v16  ;;  %1393 = vst [vmem:[#allocation2 + $0xd4] sm:$0x1] %v1392_v37  ;;  %2432 = vrot.lane.b32.xlu1 %v2339_v56, %s6542_s7 }
 0x1ca   : > { %v7741_v12 = vrot.slane %v2656_v61, 5  ;;  %v2662_v10 = vrot.slane %v2660_v25, 4  ;;  %v1765_v46 = vshll.u32 %v7698_v28, 16  ;;  %1452 = vst.msk [vmem:[#allocation3 + $0x118] sm:$0xf] %vm1265_vm6, %v1420_v53  ;;  %v6516_v6 = vld [vmem:[%s9026_s3 + $0x118] sm:$0xff]   ;;  %v7770_v53 = vpop.permute.xlu1 %2396 }
 0x1cb   : > { %v3346_v31 = vld [vmem:[#allocation2 + $0x58] sm:$0xf]  ;;  %6291 = vmatpush3.bf16.msra.mxu0 %v6516_v6  ;;  %1404 = vst.msk [vmem:[#allocation2 + $0xd0] sm:$0xf] %vm1265_vm6, %v9063_v42  ;;  %v2668_v8 = vrot.slane %v2666_v26, 5  ;;  %v1764_v22 = vrot.slane %v1762_v9, 4 }
 0x1cc   : > { %1405 = vst.msk [vmem:[#allocation2 + $0xd4] sm:$0x1] %vm682_vm1, %v9063_v42  ;;  %v1843_v28 = vshll.u32 %v1510_v57, 16  ;;  %v1847_v47 = vshrl.u32 %v1510_v57, 16  ;;  %6292 = vmatprep.subr.bf16.mxu0 %v7557_v30  ;;  %v1186_v24 = vshrl.u32 %v5983_v36, 16  ;;  %v1189_v15 = vshll.u32 %v5983_v36, 16  ;;  %v7757_v42 = vpop.permute.xlu0 %3218 }
 0x1cd   : > { %3378 = vst.msk [vmem:[#allocation3 + $0xe8] sm:$0xf] %vm1265_vm6, %v3346_v31  ;;  %v2663_v62 = vor.u32 %v2662_v10, %v7741_v12  ;;  %v1767_v45 = vrot.slane %v1765_v46, 5  ;;  %v4243_v40 = vld [vmem:[#allocation3 + $0x50] sm:$0xff]  ;;  %v1853_v57 = vshll.u32 %v1511_v35, 16  ;;  %v2632_v27 = vshll.u32 %v7727_v0, 16 }
 0x1ce   : > { %3934 = vst.msk [vmem:[#allocation3 + $0x98] sm:$0xf] %vm2001_vm0, %v3846_v38  ;;  %v7760_v33 = vrot.slane %v1843_v28, 5  ;;  %v1849_v44 = vrot.slane %v1847_v47, 4  ;;  %v2513_v7 = vld [vmem:[#allocation2 + $0x38] sm:$0x1] }
 0x1cf   : > { %v1188_v1 = vrot.slane %v1186_v24, 7  ;;  %v2664_v61 = vrot.slane %v2663_v62, 4  ;;  %v1768_v25 = vor.u32 %v1767_v45, %v1764_v22  ;;  %v2636_v2 = vshrl.u32 %v7727_v0, 16  ;;  %v2514_v32 = vld [vmem:[#allocation2 + $0x3c] sm:$0xf]  ;;  %6293 = vmatpush3.bf16.msra.mxu0 %v7557_v30 }
 0x1d0   : > { %v4246_v5 = vld [vmem:[#allocation3 + $0x64] sm:$0xff]  ;;  %v1384_v16 = vld [vmem:[#allocation2 + $0xc8] sm:$0x1]  ;;  %v1850_v37 = vor.u32 %v1849_v44, %v7760_v33  ;;  %v1855_v56 = vrot.slane %v1853_v57, 5  ;;  %v7766_v26 = vrot.slane %v2632_v27, 5  ;;  %6294 = vmatprep.subr.bf16.mxu0 %v7657_v59  ;;  %v3844_v6 = vpop.permute.xlu0 %3843  ;;  %v2642_v47 = vshll.u32 %v2513_v7, 16  ;;  %v1924_v7 = vpop.permute.xlu1 %1923 }
 0x1d1   : > { %v7768_v9 = vld [vmem:[#allocation2 + $0x4c] sm:$0xf]  ;;  %v5825_v35 = vcombine.low %v4243_v40, %v4246_v5  ;;  %v1191_v0 = vor.u32 %v1189_v15, %v1188_v1  ;;  %v1193_v10 = vrot.slane %v1188_v1, 4  ;;  %v2669_v30 = vsel %vm6809_vm15, %v2664_v61, %v2668_v8  ;;  %v6423_v31 = vld [vmem:[#allocation3 + $0x7c] ss:$20 sps:$4 sm:$0xff]  }
 0x1d2   : > { %v7773_v36 = vld [vmem:[#allocation2 + $0xac] sm:$0xf]  ;;  %v1769_v46 = vrot.slane %v1768_v25, 4  ;;  %2975 = vst.msk [vmem:[#allocation3 + $0xbc] sm:$0xf] %vm1265_vm6, %v2669_v30  ;;  %v1851_v22 = vrot.slane %v1850_v37, 4 }
 0x1d3   : > { %v2638_v28 = vrot.slane %v2636_v2, 4  ;;  %v2647_v38 = vshrl.u32 %v2514_v32, 16  ;;  %v2054_v24 = vld [vmem:[#allocation2 + $0x50] sm:$0x1]  ;;  %5120 = vmatmul.mubr.bf16.gmra.mxu1 %v5825_v35  ;;  %3933 = vst.msk [vmem:[#allocation3 + $0x84] sm:$0xf] %vm2001_vm0, %v3844_v6  ;;  %v1385_v8 = vsel %vm6643_vm3, %v1193_v10, %v1384_v16  ;;  %6295 = vmatpush3.bf16.msra.mxu0 %v7657_v59 }
 0x1d4   : > { %v9066_v62 = vrot.slane %v7687_v63, 4  ;;  %3311 = vst.msk [vmem:[#allocation3 + $0xbc] sm:$0xf] %vm2001_vm0, %v7647_v18  ;;  %v1774_v45 = vsel %vm6809_vm15, %v1769_v46, %v7684_v58  ;;  %v2650_v40 = vshll.u32 %v2514_v32, 16  ;;  %v1509_v44 = vld [vmem:[#allocation2 + $0x9c] sm:$0xf]  ;;  %5127 = vmatprep.mubr.bf16.mxu1 %v6423_v31  ;;  %v1856_v20 = vsel %vm6809_vm15, %v1851_v22, %v1855_v56  ;;  %v7800_v5 = vpop.permute.xlu0 %2394 }
 0x1d5   : > { %v1507_v57 = vld [vmem:[#allocation2 + $0x94] sm:$0xf]  ;;  %v4141_v63 = vrot.slane %v7773_v36, 5  ;;  %1386 = vst [vmem:[#allocation2 + $0xc8] sm:$0x1] %v1385_v8  ;;  %1945 = vrot.lane.b32.xlu0 %v1774_v45, %s6542_s7  ;;  %v2639_v48 = vor.u32 %v2638_v28, %v7766_v26  ;;  %v2644_v18 = vrot.slane %v2642_v47, 5  ;;  %1959 = vrot.lane.b32.xlu1 %v1856_v20, %s6542_s7 }
 0x1d6   : > { %v1192_v15 = vsel %vm6722_vm9, %v9066_v62, %v1191_v0  ;;  %v1508_v58 = vld [vmem:[#allocation2 + $0x98] sm:$0x1]  ;;  %v2338_v27 = vld [vmem:[#allocation2 + $0xb4] sm:$0xf]  ;;  %v2649_v1 = vrot.slane %v2647_v38, 4  ;;  %v2652_v59 = vrot.slane %v2650_v40, 5  ;;  %v3842_v62 = vpop.permute.xlu1 %3841 }
 0x1d7   : > { %1383 = vst.msk [vmem:[#allocation2 + $0xc4] sm:$0xf] %vm1265_vm6, %v1192_v15  ;;  %v2177_v61 = vrot.slane %v7768_v9, 5  ;;  %v2180_v25 = vrot.slane %v2054_v24, 5  ;;  %v2052_v2 = vld [vmem:[#allocation2 + $0x48] sm:$0xe] }
 0x1d8   : > { %v3424_v32 = vld [vmem:[#allocation2 + $0x7c] sm:$0xf]  ;;  %2011 = vst.msk [vmem:[#allocation3 + $0xb4] sm:$0xf] %vm2001_vm0, %v1924_v7  ;;  %v2640_v16 = vrot.slane %v2639_v48, 4  ;;  %v1834_v56 = vshrl.u32 %v1509_v44, 16  ;;  %v2653_v46 = vor.u32 %v2652_v59, %v2649_v1 }
 0x1d9   : > { %v2337_v37 = vld [vmem:[#allocation2 + $0xac] sm:$0xf]  ;;  %v1837_v35 = vshll.u32 %v1509_v44, 16  ;;  %v1819_v0 = vshll.u32 %v1507_v57, 16  ;;  %v3425_v10 = vld [vmem:[#allocation2 + $0x80] sm:$0x1]  ;;  %2430 = vrot.lane.b32.xlu0 %v2338_v27, %s6542_s7 }
 0x1da   : > { %v7802_v30 = vld [vmem:[#allocation2 + $0x90] sm:$0xf]  ;;  %v2179_v31 = vrot.slane %v2177_v61, 4  ;;  %v1823_v6 = vshrl.u32 %v1507_v57, 16  ;;  %v1829_v22 = vshll.u32 %v1508_v58, 16  ;;  %v2645_v28 = vsel %vm6809_vm15, %v2640_v16, %v2644_v18  ;;  %2428 = vrot.lane.b32.xlu1 %v2337_v37, %s6542_s7  ;;  %v1922_v57 = vpop.permute.xlu0 %1921 }
 0x1db   : > { %v3345_v9 = vld [vmem:[#allocation2 + $0x54] sm:$0xf]  ;;  %v1836_v47 = vrot.slane %v1834_v56, 4  ;;  %v1839_v38 = vrot.slane %v1837_v35, 5  ;;  %v7807_v24 = vrot.slane %v1819_v0, 5  ;;  %v2654_v8 = vrot.slane %v2653_v46, 4  ;;  %v7836_v56 = vpop.permute.xlu1 %3232 }
 0x1dc   : > { %3377 = vst.msk [vmem:[#allocation3 + $0xd4] sm:$0xf] %vm1265_vm6, %v3345_v9  ;;  %v1419_v15 = vld [vmem:[#allocation2 + $0x4c] sm:$0xf]  ;;  %2973 = vst.msk [vmem:[#allocation3 + $0x94] sm:$0xf] %vm1265_vm6, %v2645_v28  ;;  %v2181_v45 = vsel %vm6756_vm12, %v2179_v31, %v2180_v25 }
 0x1dd   : > { %v1825_v40 = vrot.slane %v1823_v6, 4  ;;  %v1831_v44 = vrot.slane %v1829_v22, 5  ;;  %3932 = vst.msk [vmem:[#allocation3 + $0x70] sm:$0xf] %vm2001_vm0, %v3842_v62  ;;  %3309 = vst.msk [vmem:[#allocation3 + $0x94] sm:$0xf] %vm2001_vm0, %v7671_v34  ;;  %v1840_v20 = vor.u32 %v1839_v38, %v1836_v47  ;;  %v2659_v7 = vsel %vm6809_vm15, %v2654_v8, %v7741_v12 }
 0x1de   : > { %1451 = vst.msk [vmem:[#allocation3 + $0x104] sm:$0xf] %vm1265_vm6, %v1419_v15  ;;  %2290 = vst.msk [vmem:[#allocation3 + $0x108] sm:$0xf] %vm1265_vm6, %v2181_v45  ;;  %v5772_v48 = vrot.slane %v2052_v2, 9  ;;  %v3649_v18 = vshll.u32 %v3424_v32, 16 }
 0x1df   : > { %v3653_v58 = vshrl.u32 %v3424_v32, 16  ;;  %2010 = vst.msk [vmem:[#allocation3 + $0xa0] sm:$0xf] %vm2001_vm0, %v1922_v57  ;;  %2483 = vst.msk [vmem:[#allocation3 + $0x108] sm:$0xf] %vm2001_vm0, %v7691_v19  ;;  %v1826_v27 = vor.u32 %v1825_v40, %v7807_v24  ;;  %v3659_v1 = vshll.u32 %v3425_v10, 16 }
 0x1e0   : > { %v1810_v34 = vshrl.u32 %v7802_v30, 16  ;;  %v1516_v59 = vld [vmem:[#allocation2 + $0xb8] sm:$0xf]  ;;  %v2511_v25 = vld [vmem:[#allocation2 + $0x30] sm:$0xf]  ;;  %v9067_v2 = vrot.slane %v7620_v54, 5  ;;  %v2178_v12 = vsel %vm6756_vm12, %v5772_v48, %v2177_v61  ;;  %v3840_v61 = vpop.permute.xlu0 %3839 }
 0x1e1   : > { %2974 = vst.msk [vmem:[#allocation3 + $0xa8] sm:$0xf] %vm1265_vm6, %v2659_v7  ;;  %v1841_v32 = vrot.slane %v1840_v20, 4  ;;  %v7834_v37 = vrot.slane %v3649_v18, 5  ;;  %v1517_v19 = vld [vmem:[#allocation2 + $0xbc] sm:$0x1] }
 0x1e2   : > { %v7829_v16 = vrot.slane %v9067_v2, 4  ;;  %v7840_v35 = vrot.slane %v4141_v63, 4  ;;  %3310 = vst.msk [vmem:[#allocation3 + $0xa8] sm:$0xf] %vm2001_vm0, %v7677_v17  ;;  %v1827_v0 = vrot.slane %v1826_v27, 4  ;;  %v3655_v10 = vrot.slane %v3653_v58, 4 }
 0x1e3   : > { %2289 = vst.msk [vmem:[#allocation3 + $0xf4] sm:$0xf] %vm1265_vm6, %v2178_v12  ;;  %v3661_v46 = vrot.slane %v3659_v1, 5  ;;  %v7845_v31 = vld [vmem:[#allocation2 + $0x40] sm:$0xf]  ;;  %v1846_v6 = vsel %vm6809_vm15, %v1841_v32, %v7760_v33  ;;  %v4249_v22 = vld [vmem:[#allocation3 + $0x78] sm:$0xff] }
 0x1e4   : > { %2482 = vst.msk [vmem:[#allocation3 + $0xf4] sm:$0xf] %vm2001_vm0, %v7700_v50  ;;  %v1812_v9 = vrot.slane %v1810_v34, 4  ;;  %v1813_v28 = vshll.u32 %v7802_v30, 16  ;;  %v1891_v17 = vshll.u32 %v1516_v59, 16  ;;  %1957 = vrot.lane.b32.xlu0 %v1846_v6, %s6542_s7  ;;  %v1832_v38 = vsel %vm6809_vm15, %v1827_v0, %v1831_v44  ;;  %v4252_v50 = vld [vmem:[#allocation3 + $0x8c] sm:$0xff]  ;;  %v7864_v44 = vpop.permute.xlu1 %3228  ;;  %v7866_v34 = vpop.permute.xlu0 %3230 }
 0x1e5   : > { %3931 = vst.msk [vmem:[#allocation3 + $0x5c] sm:$0xf] %vm2001_vm0, %v3840_v61  ;;  %v3344_v47 = vld [vmem:[#allocation2 + $0x4c] sm:$0xf]  ;;  %v3656_v62 = vor.u32 %v3655_v10, %v7834_v37  ;;  %v1895_v15 = vshrl.u32 %v1516_v59, 16  ;;  %v1901_v33 = vshll.u32 %v1517_v19, 16  ;;  %1955 = vrot.lane.b32.xlu1 %v1832_v38, %s6542_s7  ;;  %v5830_v1 = vcombine.low %v4249_v22, %v4252_v50 }
 0x1e6   : > { %v2051_v8 = vld [vmem:[#allocation2 + $0x44] sm:$0x1]  ;;  %v3423_v45 = vld [vmem:[#allocation2 + $0x78] sm:$0xf]  ;;  %3376 = vst.msk [vmem:[#allocation3 + $0xc0] sm:$0xf] %vm1265_vm6, %v3344_v47 }
 0x1e7   : > { %v2336_v30 = vld [vmem:[#allocation2 + $0xa8] sm:$0xf]  ;;  %v1815_v40 = vrot.slane %v1813_v28, 5  ;;  %v7860_v57 = vrot.slane %v1891_v17, 5  ;;  %v2623_v20 = vshrl.u32 %v2511_v25, 16  ;;  %v2626_v48 = vshll.u32 %v2511_v25, 16  ;;  %5128 = vmatmul.mubr.bf16.gmra.mxu1 %v5830_v1 }
 0x1e8   : > { %v7862_v18 = vld [vmem:[#allocation2 + $0xb4] sm:$0xf]  ;;  %v3657_v58 = vrot.slane %v3656_v62, 4  ;;  %v1897_v7 = vrot.slane %v1895_v15, 4  ;;  %v1903_v27 = vrot.slane %v1901_v33, 5  ;;  %v4238_v2 = vld [vmem:[#allocation3 + $0x30] sm:$0xff]  ;;  %2426 = vrot.lane.b32.xlu0 %v2336_v30, %s6542_s7  ;;  %v7876_v33 = vpop.permute.xlu1 %2408 }
 0x1e9   : > { %v6431_v59 = vld [vmem:[#allocation3 + $0xa4] ss:$20 sps:$4 sm:$0xff]   ;;  %v1816_v12 = vor.u32 %v1815_v40, %v1812_v9  ;;  %v2625_v19 = vrot.slane %v2623_v20, 4  ;;  %v2628_v0 = vrot.slane %v2626_v48, 5  ;;  %v2170_v10 = vrot.slane %v7845_v31, 5  ;;  %v7883_v20 = vpop.permute.xlu0 %2406 }
 0x1ea   : > { %v4241_v32 = vld [vmem:[#allocation3 + $0x44] sm:$0xff]  ;;  %v3662_v25 = vsel %vm6809_vm15, %v3657_v58, %v3661_v46  ;;  %v1898_v61 = vor.u32 %v1897_v7, %v7860_v57  ;;  %v2173_v6 = vrot.slane %v2051_v8, 5  ;;  %v3640_v22 = vshrl.u32 %v3423_v45, 16  ;;  %v1513_v28 = vld [vmem:[#allocation2 + $0xac] sm:$0xf]  ;;  %5135 = vmatprep.mubr.bf16.mxu1 %v6431_v59 }
 0x1eb   : > { %v1418_v17 = vld [vmem:[#allocation2 + $0x48] sm:$0xf]  ;;  %3865 = vrot.lane.b32.xlu1 %v3662_v25, %s6542_s7  ;;  %v1817_v47 = vrot.slane %v1816_v12, 4  ;;  %v2629_v9 = vor.u32 %v2628_v0, %v2625_v19  ;;  %v2172_v38 = vrot.slane %v2170_v10, 4  ;;  %v3643_v62 = vshll.u32 %v3423_v45, 16  ;;  %v6467_v46 = vld [vmem:[%s9026_s3 + $0x100] sm:$0xff]  }
 0x1ec   : > { %v1514_v15 = vld [vmem:[#allocation2 + $0xb0] sm:$0x1]  ;;  %1450 = vst.msk [vmem:[#allocation3 + $0xf0] sm:$0xf] %vm1265_vm6, %v1418_v17  ;;  %v1899_v8 = vrot.slane %v1898_v61, 4  ;;  %v3642_v50 = vrot.slane %v3640_v22, 4  ;;  %v5822_v30 = vcombine.low %v4238_v2, %v4241_v32  ;;  %6333 = vmatprep.subr.bf16.mxu1 %v6467_v46  ;;  %6296 = vmatprep.subr.bf16.mxu0 %v6467_v46  ;;  %v1936_v17 = vpop.permute.xlu1 %1935 }
 0x1ed   : > { %v1882_v40 = vshrl.u32 %v7862_v18, 16  ;;  %v6435_v48 = vld [vmem:[#allocation3 + $0x5c] ss:$20 sps:$4 sm:$0xff]   ;;  %v1822_v45 = vsel %vm6809_vm15, %v1817_v47, %v7807_v24  ;;  %v2630_v58 = vrot.slane %v2629_v9, 4  ;;  %v2174_v7 = vsel %vm6756_vm12, %v2172_v38, %v2173_v6  ;;  %v2049_v59 = vld [vmem:[#allocation2 + $0x3c] sm:$0xe]  ;;  %6337 = vmatpush3.bf16.msra.mxu1 %v6467_v46  ;;  %6297 = vmatpush3.bf16.msra.mxu0 %v6467_v46 }
 0x1ee   : > { %v3645_v1 = vrot.slane %v3643_v62, 5  ;;  %v7890_v12 = vld [vmem:[#allocation2 + $0x7c] sm:$0xf]  ;;  %1953 = vrot.lane.b32.xlu0 %v1822_v45, %s6542_s7  ;;  %v1904_v2 = vsel %vm6809_vm15, %v1899_v8, %v1903_v27  ;;  %2288 = vst.msk [vmem:[#allocation3 + $0xe0] sm:$0xf] %vm1265_vm6, %v2174_v7  ;;  %5273 = vmatmul.mubr.bf16.gmra.mxu0 %v5822_v30  ;;  %v1885_v24 = vshll.u32 %v7862_v18, 16 }
 0x1ef   : > { %v1884_v32 = vrot.slane %v1882_v40, 4  ;;  %v1867_v19 = vshll.u32 %v1513_v28, 16  ;;  %v3027_v0 = vld [vmem:[#allocation2 + $0x80] sm:$0x1]  ;;  %1967 = vrot.lane.b32.xlu1 %v1904_v2, %s6542_s7  ;;  %v2635_v25 = vsel %vm6809_vm15, %v2630_v58, %v7766_v26  ;;  %2481 = vst.msk [vmem:[#allocation3 + $0xe0] sm:$0xf] %vm2001_vm0, %v7770_v53  ;;  %5280 = vmatprep.mubr.bf16.mxu0 %v6435_v48  ;;  %v1934_v26 = vpop.permute.xlu0 %1933 }
 0x1f0   : > { %v3646_v61 = vor.u32 %v3645_v1, %v3642_v50  ;;  %v1871_v6 = vshrl.u32 %v1513_v28, 16  ;;  %v1877_v27 = vshll.u32 %v1514_v15, 16  ;;  %v2521_v22 = vld [vmem:[#allocation2 + $0x58] sm:$0xf]  ;;  %v3343_v47 = vld [vmem:[#allocation2 + $0x48] sm:$0xf] }
 0x1f1   : > { %2972 = vst.msk [vmem:[#allocation3 + $0x80] sm:$0xf] %vm1265_vm6, %v2635_v25  ;;  %v1887_v18 = vrot.slane %v1885_v24, 5  ;;  %v7904_v9 = vrot.slane %v1867_v19, 5  ;;  %v5771_v38 = vrot.slane %v2049_v59, 9  ;;  %v3159_v62 = vrot.slane %v7890_v12, 5 }
 0x1f2   : > { %v2522_v8 = vld [vmem:[#allocation2 + $0x5c] sm:$0x1]  ;;  %2017 = vst.msk [vmem:[#allocation3 + $0x12c] sm:$0xf] %vm2001_vm0, %v1936_v17  ;;  %3308 = vst.msk [vmem:[#allocation3 + $0x80] sm:$0xf] %vm2001_vm0, %v7757_v42 }
 0x1f3   : > { %3375 = vst.msk [vmem:[#allocation3 + $0xac] sm:$0xf] %vm1265_vm6, %v3343_v47  ;;  %v3647_v53 = vrot.slane %v3646_v61, 4  ;;  %v1873_v28 = vrot.slane %v1871_v6, 4  ;;  %v1879_v15 = vrot.slane %v1877_v27, 5  ;;  %v3162_v50 = vrot.slane %v3027_v0, 5  ;;  %v7932_v61 = vpop.permute.xlu0 %3226 }
 0x1f4   : > { %v1512_v30 = vld [vmem:[#allocation2 + $0xa8] sm:$0xf]  ;;  %2016 = vst.msk [vmem:[#allocation3 + $0x118] sm:$0xf] %vm2001_vm0, %v1934_v26  ;;  %v2341_v40 = vld [vmem:[#allocation2 + $0xc4] sm:$0xf]  ;;  %v1888_v48 = vor.u32 %v1887_v18, %v1884_v32  ;;  %v2171_v45 = vsel %vm6756_vm12, %v5771_v38, %v2170_v10  ;;  %v3854_v10 = vpop.permute.xlu1 %3853 }
 0x1f5   : > { %v3161_v46 = vrot.slane %v3159_v62, 4  ;;  %v2704_v58 = vshll.u32 %v2521_v22, 16  ;;  %v6438_v7 = vld [vmem:[#allocation3 + $0x58] ss:$20 sps:$4 sm:$0xff]   ;;  %v3652_v42 = vsel %vm6809_vm15, %v3647_v53, %v7834_v37  ;;  %2436 = vrot.lane.b32.xlu1 %v2341_v40, %s6542_s7  ;;  %v1874_v1 = vor.u32 %v1873_v28, %v7904_v9  ;;  %2287 = vst.msk [vmem:[#allocation3 + $0xcc] sm:$0xf] %vm1265_vm6, %v2171_v45 }
 0x1f6   : > { %v2708_v59 = vshrl.u32 %v2521_v22, 16  ;;  %v2714_v31 = vshll.u32 %v2522_v8, 16  ;;  %v3427_v2 = vld [vmem:[#allocation2 + $0x88] sm:$0xf]  ;;  %v3428_v32 = vld [vmem:[#allocation2 + $0x8c] sm:$0x1]  ;;  %3863 = vrot.lane.b32.xlu0 %v3652_v42, %s6542_s7  ;;  %5281 = vmatmul.mubr.bf16.gmra.mxu0 %v6438_v7 }
 0x1f7   : > { %v1889_v24 = vrot.slane %v1888_v48, 4  ;;  %2480 = vst.msk [vmem:[#allocation3 + $0xcc] sm:$0xf] %vm2001_vm0, %v7800_v5  ;;  %v3163_v37 = vsel %vm6756_vm12, %v3161_v46, %v3162_v50  ;;  %v7929_v19 = vrot.slane %v2704_v58, 5  ;;  %v1858_v0 = vshrl.u32 %v1512_v30, 16 }
 0x1f8   : > { %v2518_v25 = vld [vmem:[#allocation2 + $0x4c] sm:$0xf]  ;;  %3938 = vst.msk [vmem:[#allocation3 + $0xe8] sm:$0xf] %vm2001_vm0, %v3854_v10  ;;  %v1875_v6 = vrot.slane %v1874_v1, 4  ;;  %v2710_v27 = vrot.slane %v2708_v59, 4  ;;  %v7942_v45 = vpop.permute.xlu1 %2404 }
 0x1f9   : > { %v2716_v22 = vrot.slane %v2714_v31, 5  ;;  %v1861_v17 = vshll.u32 %v1512_v30, 16  ;;  %v2519_v47 = vld [vmem:[#allocation2 + $0x50] sm:$0x1]  ;;  %v1894_v5 = vsel %vm6809_vm15, %v1889_v24, %v7860_v57  ;;  %v1860_v18 = vrot.slane %v1858_v0, 4 }
 0x1fa   : > { %v3673_v38 = vshll.u32 %v3427_v2, 16  ;;  %v3677_v8 = vshrl.u32 %v3427_v2, 16  ;;  %v3025_v26 = vld [vmem:[#allocation2 + $0x78] sm:$0xe]  ;;  %v1880_v53 = vsel %vm6809_vm15, %v1875_v6, %v1879_v15  ;;  %v2711_v28 = vor.u32 %v2710_v27, %v7929_v19  ;;  %v7940_v48 = vld [vmem:[#allocation2 + $0x88] sm:$0xf]  ;;  %1965 = vrot.lane.b32.xlu0 %v1894_v5, %s6542_s7  ;;  %v3852_v15 = vpop.permute.xlu0 %3851 }
 0x1fb   : > { %v1863_v50 = vrot.slane %v1861_v17, 5  ;;  %v3683_v40 = vshll.u32 %v3428_v32, 16  ;;  %v3030_v30 = vld [vmem:[#allocation2 + $0x8c] sm:$0x1]  ;;  %1963 = vrot.lane.b32.xlu1 %v1880_v53, %s6542_s7  ;;  %v2680_v58 = vshll.u32 %v2518_v25, 16  ;;  %v2684_v7 = vshrl.u32 %v2518_v25, 16 }
 0x1fc   : > { %v7946_v57 = vrot.slane %v3673_v38, 5  ;;  %v3679_v46 = vrot.slane %v3677_v8, 4  ;;  %v2520_v42 = vld [vmem:[#allocation2 + $0x54] sm:$0xf]  ;;  %v2712_v1 = vrot.slane %v2711_v28, 4  ;;  %v2690_v2 = vshll.u32 %v2519_v47, 16  ;;  %v1932_v53 = vpop.permute.xlu1 %1931 }
 0x1fd   : > { %v1864_v59 = vor.u32 %v1863_v50, %v1860_v18  ;;  %v3685_v31 = vrot.slane %v3683_v40, 5  ;;  %v7948_v32 = vld [vmem:[#allocation2 + $0x64] sm:$0xf]  ;;  %v7950_v10 = vld [vmem:[#allocation2 + $0x68] sm:$0x1]  ;;  %v7954_v6 = vrot.slane %v2680_v58, 5 }
 0x1fe   : > { %v6439_v24 = vld [vmem:[#allocation3 + $0x84] ss:$20 sps:$4 sm:$0xff]   ;;  %3937 = vst.msk [vmem:[#allocation3 + $0xd4] sm:$0xf] %vm2001_vm0, %v3852_v15  ;;  %v3680_v0 = vor.u32 %v3679_v46, %v7946_v57  ;;  %v2686_v27 = vrot.slane %v2684_v7, 4  ;;  %v5791_v17 = vrot.slane %v3025_v26, 9  ;;  %v2717_v18 = vsel %vm6809_vm15, %v2712_v1, %v2716_v22  ;;  %v7968_v46 = vpop.permute.xlu0 %2402 }
 0x1ff   : > { %v3426_v25 = vld [vmem:[#allocation2 + $0x84] sm:$0xf]  ;;  %v2340_v5 = vld [vmem:[#allocation2 + $0xc0] sm:$0xf]  ;;  %v1865_v38 = vrot.slane %v1864_v59, 4  ;;  %v2692_v47 = vrot.slane %v2690_v2, 5  ;;  %5288 = vmatprep.mubr.bf16.mxu0 %v6439_v24  ;;  %3244 = vrot.lane.b32.xlu1 %v3163_v37, %s6542_s7 }
 0x200   : > { %v3166_v8 = vrot.slane %v7940_v48, 5  ;;  %2434 = vrot.lane.b32.xlu0 %v2340_v5, %s6542_s7  ;;  %2979 = vst.msk [vmem:[#allocation3 + $0x10c] sm:$0xf] %vm1265_vm6, %v2717_v18  ;;  %v3681_v28 = vrot.slane %v3680_v0, 4  ;;  %v2687_v26 = vor.u32 %v2686_v27, %v7954_v6  ;;  %v3160_v22 = vsel %vm6756_vm12, %v5791_v17, %v3159_v62  ;;  %v3430_v40 = vld [vmem:[#allocation2 + $0x94] sm:$0xf]  ;;  %v3850_v5 = vpop.permute.xlu1 %3849 }
 0x201   : > { %v3169_v50 = vrot.slane %v3030_v30, 5  ;;  %2015 = vst.msk [vmem:[#allocation3 + $0x104] sm:$0xf] %vm2001_vm0, %v1932_v53  ;;  %v1425_v58 = vld [vmem:[#allocation2 + $0x70] sm:$0xf]  ;;  %v1870_v37 = vsel %vm6809_vm15, %v1865_v38, %v7904_v9  ;;  %v2695_v7 = vshrl.u32 %v2520_v42, 16 }
 0x202   : > { %3315 = vst.msk [vmem:[#allocation3 + $0x10c] sm:$0xf] %vm2001_vm0, %v7836_v56  ;;  %v3168_v12 = vrot.slane %v3166_v8, 4  ;;  %v2698_v15 = vshll.u32 %v2520_v42, 16  ;;  %v3431_v62 = vld [vmem:[#allocation2 + $0x98] sm:$0x1]  ;;  %v3686_v30 = vsel %vm6809_vm15, %v3681_v28, %v3685_v31  ;;  %v1930_v28 = vpop.permute.xlu0 %1929 }
 0x203   : > { %1457 = vst.msk [vmem:[#allocation3 + $0x17c] sm:$0xf] %vm1265_vm6, %v1425_v58  ;;  %v2688_v1 = vrot.slane %v2687_v26, 4  ;;  %v2191_v59 = vrot.slane %v7948_v32, 5  ;;  %v2194_v56 = vrot.slane %v7950_v10, 5  ;;  %v2697_v24 = vrot.slane %v2695_v7, 4  ;;  %3869 = vrot.lane.b32.xlu1 %v3686_v30, %s6542_s7 }
 0x204   : > { %v2058_v2 = vld [vmem:[#allocation2 + $0x60] sm:$0xe]  ;;  %v3170_v9 = vsel %vm6756_vm12, %v3168_v12, %v3169_v50  ;;  %v2700_v0 = vrot.slane %v2698_v15, 5  ;;  %v3664_v27 = vshrl.u32 %v3426_v25, 16  ;;  %v3028_v17 = vld [vmem:[#allocation2 + $0x84] sm:$0xe]  ;;  %1961 = vrot.lane.b32.xlu0 %v1870_v37, %s6542_s7 }
 0x205   : > { %v7984_v42 = vld [vmem:[#allocation2 + $0x94] sm:$0xf]  ;;  %v1424_v18 = vld [vmem:[#allocation2 + $0x6c] sm:$0xf]  ;;  %v2693_v31 = vsel %vm6809_vm15, %v2688_v1, %v2692_v47  ;;  %v2193_v32 = vrot.slane %v2191_v59, 4  ;;  %v3667_v10 = vshll.u32 %v3426_v25, 16 }
 0x206   : > { %v4255_v38 = vld [vmem:[#allocation3 + $0xa0] sm:$0xff]  ;;  %v3697_v53 = vshll.u32 %v3430_v40, 16  ;;  %3936 = vst.msk [vmem:[#allocation3 + $0xc0] sm:$0xf] %vm2001_vm0, %v3850_v5  ;;  %v3350_v26 = vld [vmem:[#allocation2 + $0x70] sm:$0xf]  ;;  %v2701_v50 = vor.u32 %v2700_v0, %v2697_v24  ;;  %v8002_v5 = vpop.permute.xlu1 %3240 }
 0x207   : > { %1456 = vst.msk [vmem:[#allocation3 + $0x168] sm:$0xf] %vm1265_vm6, %v1424_v18  ;;  %2977 = vst.msk [vmem:[#allocation3 + $0xe4] sm:$0xf] %vm1265_vm6, %v2693_v31  ;;  %v3666_v58 = vrot.slane %v3664_v27, 4  ;;  %v3701_v37 = vshrl.u32 %v3430_v40, 16  ;;  %v2195_v25 = vsel %vm6756_vm12, %v2193_v32, %v2194_v56  ;;  %3248 = vrot.lane.b32.xlu1 %v3170_v9, %s6542_s7 }
 0x208   : > { %v3707_v12 = vshll.u32 %v3431_v62, 16  ;;  %v3033_v7 = vld [vmem:[#allocation2 + $0x98] sm:$0x1]  ;;  %2014 = vst.msk [vmem:[#allocation3 + $0xf0] sm:$0xf] %vm2001_vm0, %v1930_v28  ;;  %v3669_v47 = vrot.slane %v3667_v10, 5  ;;  %3242 = vrot.lane.b32.xlu0 %v3160_v22, %s6542_s7  ;;  %v3848_v10 = vpop.permute.xlu0 %3847 }
 0x209   : > { %3382 = vst.msk [vmem:[#allocation3 + $0x138] sm:$0xf] %vm1265_vm6, %v3350_v26  ;;  %v4258_v15 = vld [vmem:[#allocation3 + $0xb4] sm:$0xff]  ;;  %v7999_v30 = vrot.slane %v3697_v53, 5  ;;  %v5774_v1 = vrot.slane %v2058_v2, 9  ;;  %v2702_v0 = vrot.slane %v2701_v50, 4 }
 0x20a   : > { %3313 = vst.msk [vmem:[#allocation3 + $0xe4] sm:$0xf] %vm2001_vm0, %v7864_v44  ;;  %v3429_v24 = vld [vmem:[#allocation2 + $0x90] sm:$0xf]  ;;  %v3703_v40 = vrot.slane %v3701_v37, 4  ;;  %v3709_v62 = vrot.slane %v3707_v12, 5  ;;  %v5835_v27 = vcombine.low %v4255_v38, %v4258_v15  ;;  %v3670_v44 = vor.u32 %v3669_v47, %v3666_v58  ;;  %v8032_v15 = vpop.permute.xlu1 %3236 }
 0x20b   : > { %2294 = vst.msk [vmem:[#allocation3 + $0x158] sm:$0xf] %vm1265_vm6, %v2195_v25  ;;  %v2192_v56 = vsel %vm6756_vm12, %v5774_v1, %v2191_v59  ;;  %v6433_v2 = vld [vmem:[#allocation3 + $0xcc] ss:$20 sps:$4 sm:$0xff]   ;;  %v5792_v18 = vrot.slane %v3028_v17, 9  ;;  %v3173_v31 = vrot.slane %v7984_v42, 5  ;;  %v2707_v38 = vsel %vm6809_vm15, %v2702_v0, %v7929_v19 }
 0x20c   : > { %2487 = vst.msk [vmem:[#allocation3 + $0x158] sm:$0xf] %vm2001_vm0, %v7876_v33  ;;  %v3433_v32 = vld [vmem:[#allocation2 + $0xa0] sm:$0xf]  ;;  %v3704_v22 = vor.u32 %v3703_v40, %v7999_v30  ;;  %5136 = vmatmul.mubr.bf16.gmra.mxu1 %v5835_v27  ;;  %v3176_v33 = vrot.slane %v3033_v7, 5  ;;  %v3688_v9 = vshrl.u32 %v3429_v24, 16 }
 0x20d   : > { %2293 = vst.msk [vmem:[#allocation3 + $0x144] sm:$0xf] %vm1265_vm6, %v2192_v56  ;;  %v3434_v53 = vld [vmem:[#allocation2 + $0xa4] sm:$0x1]  ;;  %v2517_v28 = vld [vmem:[#allocation2 + $0x48] sm:$0xf]  ;;  %5143 = vmatprep.mubr.bf16.mxu1 %v6433_v2  ;;  %v3167_v19 = vsel %vm6756_vm12, %v5792_v18, %v3166_v8 }
 0x20e   : > { %3935 = vst.msk [vmem:[#allocation3 + $0xac] sm:$0xf] %vm2001_vm0, %v3848_v10  ;;  %v3671_v59 = vrot.slane %v3670_v44, 4  ;;  %2486 = vst.msk [vmem:[#allocation3 + $0x144] sm:$0xf] %vm2001_vm0, %v7883_v20  ;;  %v3175_v17 = vrot.slane %v3173_v31, 4 }
 0x20f   : > { %2978 = vst.msk [vmem:[#allocation3 + $0xf8] sm:$0xf] %vm1265_vm6, %v2707_v38  ;;  %v3691_v26 = vshll.u32 %v3429_v24, 16  ;;  %v8026_v50 = vld [vmem:[#allocation2 + $0x58] sm:$0xf]  ;;  %v3705_v12 = vrot.slane %v3704_v22, 4 }
 0x210   : > { %v8028_v58 = vld [vmem:[#allocation2 + $0x5c] sm:$0x1]  ;;  %v3349_v37 = vld [vmem:[#allocation2 + $0x6c] sm:$0xf]  ;;  %3314 = vst.msk [vmem:[#allocation3 + $0xf8] sm:$0xf] %vm2001_vm0, %v7866_v34  ;;  %v3676_v8 = vsel %vm6809_vm15, %v3671_v59, %v7946_v57  ;;  %v3177_v1 = vsel %vm6756_vm12, %v3175_v17, %v3176_v33  ;;  %v8049_v57 = vpop.permute.xlu0 %3238 }
 0x211   : > { %v4261_v20 = vld [vmem:[#allocation3 + $0xc8] sm:$0xff]  ;;  %v3690_v7 = vrot.slane %v3688_v9, 4  ;;  %v3721_v25 = vshll.u32 %v3433_v32, 16  ;;  %v3725_v48 = vshrl.u32 %v3433_v32, 16  ;;  %v3031_v47 = vld [vmem:[#allocation2 + $0x90] sm:$0xe]  ;;  %3867 = vrot.lane.b32.xlu0 %v3676_v8, %s6542_s7  ;;  %v3710_v27 = vsel %vm6809_vm15, %v3705_v12, %v3709_v62 }
 0x212   : > { %3381 = vst.msk [vmem:[#allocation3 + $0x124] sm:$0xf] %vm1265_vm6, %v3349_v37  ;;  %v3693_v24 = vrot.slane %v3691_v26, 5  ;;  %v3731_v0 = vshll.u32 %v3434_v53, 16  ;;  %v8040_v34 = vld [vmem:[#allocation2 + $0xa0] sm:$0xf]  ;;  %3873 = vrot.lane.b32.xlu1 %v3710_v27, %s6542_s7 }
 0x213   : > { %v8042_v40 = vld [vmem:[#allocation2 + $0xa4] sm:$0x1]  ;;  %v4264_v44 = vld [vmem:[#allocation3 + $0xdc] sm:$0xff]  ;;  %v8047_v56 = vrot.slane %v3721_v25, 5  ;;  %v3727_v2 = vrot.slane %v3725_v48, 4  ;;  %v2671_v18 = vshrl.u32 %v2517_v28, 16  ;;  %v8058_v25 = vpop.permute.xlu1 %2416 }
 0x214   : > { %v1423_v32 = vld [vmem:[#allocation2 + $0x64] sm:$0xf]  ;;  %v4250_v10 = vld [vmem:[#allocation3 + $0x80] sm:$0xff]  ;;  %v3694_v38 = vor.u32 %v3693_v24, %v3690_v7  ;;  %v8052_v22 = vrot.slane %v3731_v0, 5  ;;  %v2674_v33 = vshll.u32 %v2517_v28, 16  ;;  %v5840_v9 = vcombine.low %v4261_v20, %v4264_v44  ;;  %v4253_v7 = vld [vmem:[#allocation3 + $0x94] sm:$0xff] }
 0x215   : > { %v3432_v53 = vld [vmem:[#allocation2 + $0x9c] sm:$0xf]  ;;  %v6441_v59 = vld [vmem:[#allocation3 + $0xf4] ss:$20 sps:$4 sm:$0xff]   ;;  %1455 = vst.msk [vmem:[#allocation3 + $0x154] sm:$0xf] %vm1265_vm6, %v1423_v32  ;;  %v3728_v62 = vor.u32 %v3727_v2, %v8047_v56  ;;  %3246 = vrot.lane.b32.xlu0 %v3167_v19, %s6542_s7 }
 0x216   : > { %v2673_v17 = vrot.slane %v2671_v18, 4  ;;  %v2184_v26 = vrot.slane %v8026_v50, 5  ;;  %v2187_v37 = vrot.slane %v8028_v58, 5  ;;  %v3436_v12 = vld [vmem:[#allocation2 + $0xac] sm:$0xf]  ;;  %v3695_v8 = vrot.slane %v3694_v38, 4  ;;  %5144 = vmatmul.mubr.bf16.gmra.mxu1 %v5840_v9  ;;  %3252 = vrot.lane.b32.xlu1 %v3177_v1, %s6542_s7 }
 0x217   : > { %v3348_v48 = vld [vmem:[#allocation2 + $0x64] sm:$0xf]  ;;  %v2676_v24 = vrot.slane %v2674_v33, 5  ;;  %v5793_v28 = vrot.slane %v3031_v47, 9  ;;  %v3180_v20 = vrot.slane %v8040_v34, 5  ;;  %v3729_v44 = vrot.slane %v3728_v62, 4  ;;  %5151 = vmatprep.mubr.bf16.mxu1 %v6441_v59 }
 0x218   : > { %v3437_v0 = vld [vmem:[#allocation2 + $0xb0] sm:$0x1]  ;;  %v2055_v27 = vld [vmem:[#allocation2 + $0x54] sm:$0xe]  ;;  %3380 = vst.msk [vmem:[#allocation3 + $0x110] sm:$0xf] %vm1265_vm6, %v3348_v48  ;;  %v5832_v18 = vcombine.low %v4250_v10, %v4253_v7  ;;  %v3700_v47 = vsel %vm6809_vm15, %v3695_v8, %v7999_v30  ;;  %v8087_v48 = vpop.permute.xlu0 %2414  ;;  %v1944_v7 = vpop.permute.xlu1 %1943 }
 0x219   : > { %v2186_v58 = vrot.slane %v2184_v26, 4  ;;  %v3183_v2 = vrot.slane %v8042_v40, 5  ;;  %v3034_v32 = vld [vmem:[#allocation2 + $0x9c] sm:$0xe]  ;;  %v6445_v38 = vld [vmem:[#allocation3 + $0xac] ss:$20 sps:$4 sm:$0xff]   ;;  %v2677_v33 = vor.u32 %v2676_v24, %v2673_v17  ;;  %v3174_v19 = vsel %vm6756_vm12, %v5793_v28, %v3173_v31  ;;  %3871 = vrot.lane.b32.xlu0 %v3700_v47, %s6542_s7 }
 0x21a   : > { %v3182_v9 = vrot.slane %v3180_v20, 4  ;;  %v8076_v62 = vld [vmem:[#allocation2 + $0xac] sm:$0xf]  ;;  %v1422_v40 = vld [vmem:[#allocation2 + $0x60] sm:$0xf]  ;;  %v3734_v1 = vsel %vm6809_vm15, %v3729_v44, %v8052_v22  ;;  %5289 = vmatmul.mubr.bf16.gmra.mxu0 %v5832_v18  ;;  %v3712_v10 = vshrl.u32 %v3432_v53, 16 }
 0x21b   : > { %v2188_v30 = vsel %vm6756_vm12, %v2186_v58, %v2187_v37  ;;  %v3715_v42 = vshll.u32 %v3432_v53, 16  ;;  %v8083_v17 = vld [vmem:[#allocation2 + $0xb0] sm:$0x1]  ;;  %1454 = vst.msk [vmem:[#allocation3 + $0x140] sm:$0xf] %vm1265_vm6, %v1422_v40  ;;  %v2678_v59 = vrot.slane %v2677_v33, 4  ;;  %5296 = vmatprep.mubr.bf16.mxu0 %v6445_v38  ;;  %3877 = vrot.lane.b32.xlu1 %v3734_v1, %s6542_s7 }
 0x21c   : > { %v8085_v31 = vld [vmem:[#allocation2 + $0x70] sm:$0xf]  ;;  %2292 = vst.msk [vmem:[#allocation3 + $0x130] sm:$0xf] %vm1265_vm6, %v2188_v30  ;;  %v3184_v22 = vsel %vm6756_vm12, %v3182_v9, %v3183_v2  ;;  %v3745_v8 = vshll.u32 %v3436_v12, 16  ;;  %v3749_v37 = vshrl.u32 %v3436_v12, 16 }
 0x21d   : > { %v2528_v24 = vld [vmem:[#allocation2 + $0x74] sm:$0x1]  ;;  %2021 = vst.msk [vmem:[#allocation3 + $0x17c] sm:$0xf] %vm2001_vm0, %v1944_v7  ;;  %v3347_v53 = vld [vmem:[#allocation2 + $0x60] sm:$0xf]  ;;  %v2683_v12 = vsel %vm6809_vm15, %v2678_v59, %v7954_v6  ;;  %3250 = vrot.lane.b32.xlu0 %v3174_v19, %s6542_s7 }
 0x21e   : > { %2485 = vst.msk [vmem:[#allocation3 + $0x130] sm:$0xf] %vm2001_vm0, %v7942_v45  ;;  %v3714_v28 = vrot.slane %v3712_v10, 4  ;;  %v3717_v44 = vrot.slane %v3715_v42, 5  ;;  %v3755_v58 = vshll.u32 %v3437_v0, 16  ;;  %v5773_v18 = vrot.slane %v2055_v27, 9 }
 0x21f   : > { %3379 = vst.msk [vmem:[#allocation3 + $0xfc] sm:$0xf] %vm1265_vm6, %v3347_v53  ;;  %v1429_v33 = vld [vmem:[#allocation2 + $0x88] sm:$0xf]  ;;  %v8102_v2 = vrot.slane %v3745_v8, 5  ;;  %v3751_v38 = vrot.slane %v3749_v37, 4  ;;  %v1942_v37 = vpop.permute.xlu0 %1941  ;;  %3256 = vrot.lane.b32.xlu1 %v3184_v22, %s6542_s7 }
 0x220   : > { %v5794_v47 = vrot.slane %v3034_v32, 9  ;;  %v3435_v9 = vld [vmem:[#allocation2 + $0xa8] sm:$0xf]  ;;  %1461 = vst.msk [vmem:[#allocation3 + $0x1cc] sm:$0xf] %vm1265_vm6, %v1429_v33  ;;  %v3718_v45 = vor.u32 %v3717_v44, %v3714_v28  ;;  %v3757_v0 = vrot.slane %v3755_v58, 5  ;;  %v2185_v27 = vsel %vm6756_vm12, %v5773_v18, %v2184_v26 }
 0x221   : > { %2976 = vst.msk [vmem:[#allocation3 + $0xd0] sm:$0xf] %vm1265_vm6, %v2683_v12  ;;  %v3187_v40 = vrot.slane %v8076_v62, 5  ;;  %v3439_v1 = vld [vmem:[#allocation2 + $0xb8] sm:$0xf]  ;;  %v3752_v32 = vor.u32 %v3751_v38, %v8102_v2  ;;  %v3190_v50 = vrot.slane %v8083_v17, 5 }
 0x222   : > { %v6448_v6 = vld [vmem:[#allocation3 + $0xa8] ss:$20 sps:$4 sm:$0xff]   ;;  %3312 = vst.msk [vmem:[#allocation3 + $0xd0] sm:$0xf] %vm2001_vm0, %v7932_v61  ;;  %v3181_v30 = vsel %vm6756_vm12, %v5794_v47, %v3180_v20  ;;  %v2752_v26 = vshll.u32 %v8085_v31, 16  ;;  %v3719_v59 = vrot.slane %v3718_v45, 4 }
 0x223   : > { %2291 = vst.msk [vmem:[#allocation3 + $0x11c] sm:$0xf] %vm1265_vm6, %v2185_v27  ;;  %v3440_v10 = vld [vmem:[#allocation2 + $0xbc] sm:$0x1]  ;;  %v1428_v42 = vld [vmem:[#allocation2 + $0x84] sm:$0xf]  ;;  %5297 = vmatmul.mubr.bf16.gmra.mxu0 %v6448_v6  ;;  %v3862_v27 = vpop.permute.xlu1 %3861 }
 0x224   : > { %v1427_v7 = vld [vmem:[#allocation2 + $0x7c] sm:$0xf]  ;;  %2484 = vst.msk [vmem:[#allocation3 + $0x11c] sm:$0xf] %vm2001_vm0, %v7968_v46  ;;  %v3189_v61 = vrot.slane %v3187_v40, 4  ;;  %v2756_v34 = vshrl.u32 %v8085_v31, 16  ;;  %v3724_v31 = vsel %vm6809_vm15, %v3719_v59, %v8047_v56 }
 0x225   : > { %v2762_v8 = vshll.u32 %v2528_v24, 16  ;;  %v2524_v20 = vld [vmem:[#allocation2 + $0x64] sm:$0xf]  ;;  %1460 = vst.msk [vmem:[#allocation3 + $0x1b8] sm:$0xf] %vm1265_vm6, %v1428_v42  ;;  %v3753_v17 = vrot.slane %v3752_v32, 4  ;;  %3875 = vrot.lane.b32.xlu0 %v3724_v31, %s6542_s7 }
 0x226   : > { %1459 = vst.msk [vmem:[#allocation3 + $0x1a4] sm:$0xf] %vm1265_vm6, %v1427_v7  ;;  %v8130_v19 = vrot.slane %v2752_v26, 5  ;;  %v3736_v53 = vshrl.u32 %v3435_v9, 16  ;;  %v3739_v28 = vshll.u32 %v3435_v9, 16  ;;  %v3191_v24 = vsel %vm6756_vm12, %v3189_v61, %v3190_v50 }
 0x227   : > { %v2525_v46 = vld [vmem:[#allocation2 + $0x68] sm:$0x1]  ;;  %2020 = vst.msk [vmem:[#allocation3 + $0x168] sm:$0xf] %vm2001_vm0, %v1942_v37  ;;  %v2758_v44 = vrot.slane %v2756_v34, 4  ;;  %v2764_v58 = vrot.slane %v2762_v8, 5  ;;  %v3758_v33 = vsel %vm6809_vm15, %v3753_v17, %v3757_v0 }
 0x228   : > { %v3037_v18 = vld [vmem:[#allocation2 + $0xa8] sm:$0xe]  ;;  %v1426_v22 = vld [vmem:[#allocation2 + $0x78] sm:$0xf]  ;;  %v3738_v12 = vrot.slane %v3736_v53, 4  ;;  %v3741_v38 = vrot.slane %v3739_v28, 5  ;;  %3881 = vrot.lane.b32.xlu1 %v3758_v33, %s6542_s7 }
 0x229   : > { %v3769_v47 = vshll.u32 %v3439_v1, 16  ;;  %v8140_v9 = vld [vmem:[#allocation2 + $0xb8] sm:$0xf]  ;;  %v8142_v45 = vld [vmem:[#allocation2 + $0xbc] sm:$0x1]  ;;  %v2759_v32 = vor.u32 %v2758_v44, %v8130_v19  ;;  %v3773_v6 = vshrl.u32 %v3439_v1, 16  ;;  %3254 = vrot.lane.b32.xlu0 %v3181_v30, %s6542_s7 }
 0x22a   : > { %1458 = vst.msk [vmem:[#allocation3 + $0x190] sm:$0xf] %vm1265_vm6, %v1426_v22  ;;  %v1433_v56 = vld [vmem:[#allocation2 + $0xa0] sm:$0xf]  ;;  %v3779_v50 = vshll.u32 %v3440_v10, 16  ;;  %v2728_v26 = vshll.u32 %v2524_v20, 16  ;;  %v3742_v0 = vor.u32 %v3741_v38, %v3738_v12 }
 0x22b   : > { %v2526_v42 = vld [vmem:[#allocation2 + $0x6c] sm:$0xf]  ;;  %3942 = vst.msk [vmem:[#allocation3 + $0x138] sm:$0xf] %vm2001_vm0, %v3862_v27  ;;  %v8150_v7 = vrot.slane %v3769_v47, 5  ;;  %v2732_v59 = vshrl.u32 %v2524_v20, 16 }
 0x22c   : > { %1465 = vst.msk [vmem:[#allocation3 + $0x21c] sm:$0xf] %vm1265_vm6, %v1433_v56  ;;  %v2738_v61 = vshll.u32 %v2525_v46, 16  ;;  %v8152_v34 = vld [vmem:[#allocation2 + $0x7c] sm:$0xf]  ;;  %v2760_v8 = vrot.slane %v2759_v32, 4  ;;  %3260 = vrot.lane.b32.xlu1 %v3191_v24, %s6542_s7 }
 0x22d   : > { %v3775_v37 = vrot.slane %v3773_v6, 4  ;;  %v3781_v17 = vrot.slane %v3779_v50, 5  ;;  %v8154_v1 = vrot.slane %v2728_v26, 5  ;;  %v2066_v10 = vld [vmem:[#allocation2 + $0x80] sm:$0x1]  ;;  %v3743_v53 = vrot.slane %v3742_v0, 4 }
 0x22e   : > { %v2734_v28 = vrot.slane %v2732_v59, 4  ;;  %v2740_v31 = vrot.slane %v2738_v61, 5  ;;  %v5795_v44 = vrot.slane %v3037_v18, 9  ;;  %v3438_v22 = vld [vmem:[#allocation2 + $0xb4] sm:$0xf]  ;;  %v2765_v33 = vsel %vm6809_vm15, %v2760_v8, %v2764_v58  ;;  %v4267_v61 = vld [vmem:[#allocation3 + $0xf0] sm:$0xff] }
 0x22f   : > { %v3776_v20 = vor.u32 %v3775_v37, %v8150_v7  ;;  %v3194_v46 = vrot.slane %v8140_v9, 5  ;;  %v3197_v12 = vrot.slane %v8142_v45, 5  ;;  %v8162_v38 = vld [vmem:[#allocation2 + $0xc4] sm:$0xf]  ;;  %v6449_v47 = vld [vmem:[#allocation3 + $0xd4] ss:$20 sps:$4 sm:$0xff]   ;;  %v3748_v30 = vsel %vm6809_vm15, %v3743_v53, %v8102_v2 }
 0x230   : > { %2983 = vst.msk [vmem:[#allocation3 + $0x15c] sm:$0xf] %vm1265_vm6, %v2765_v33  ;;  %v2735_v18 = vor.u32 %v2734_v28, %v8154_v1  ;;  %v3188_v58 = vsel %vm6756_vm12, %v5795_v44, %v3187_v40  ;;  %v2743_v27 = vshrl.u32 %v2526_v42, 16  ;;  %v3443_v45 = vld [vmem:[#allocation2 + $0xc8] sm:$0x1]  ;;  %v2746_v6 = vshll.u32 %v2526_v42, 16  ;;  %5304 = vmatprep.mubr.bf16.mxu0 %v6449_v47  ;;  %3879 = vrot.lane.b32.xlu0 %v3748_v30, %s6542_s7 }
 0x231   : > { %v1432_v56 = vld [vmem:[#allocation2 + $0x9c] sm:$0xf]  ;;  %3319 = vst.msk [vmem:[#allocation3 + $0x15c] sm:$0xf] %vm2001_vm0, %v8002_v5  ;;  %v3777_v24 = vrot.slane %v3776_v20, 4  ;;  %v3196_v32 = vrot.slane %v3194_v46, 4 }
 0x232   : > { %v2205_v2 = vrot.slane %v8152_v34, 5  ;;  %v2064_v50 = vld [vmem:[#allocation2 + $0x78] sm:$0xe]  ;;  %1464 = vst.msk [vmem:[#allocation3 + $0x208] sm:$0xf] %vm1265_vm6, %v1432_v56  ;;  %v2736_v26 = vrot.slane %v2735_v18, 4 }
 0x233   : > { %v1431_v62 = vld [vmem:[#allocation2 + $0x94] sm:$0xf]  ;;  %v2745_v40 = vrot.slane %v2743_v27, 4  ;;  %v2208_v0 = vrot.slane %v2066_v10, 5  ;;  %v3760_v59 = vshrl.u32 %v3438_v22, 16  ;;  %v3782_v5 = vsel %vm6809_vm15, %v3777_v24, %v3781_v17  ;;  %v4270_v56 = vld [vmem:[#allocation3 + $0x104] sm:$0xff] }
 0x234   : > { %v3040_v8 = vld [vmem:[#allocation2 + $0xb4] sm:$0xe]  ;;  %1463 = vst.msk [vmem:[#allocation3 + $0x1f4] sm:$0xf] %vm1265_vm6, %v1431_v62  ;;  %v3198_v42 = vsel %vm6756_vm12, %v3196_v32, %v3197_v12  ;;  %v2748_v34 = vrot.slane %v2746_v6, 5  ;;  %v2207_v37 = vrot.slane %v2205_v2, 4  ;;  %3885 = vrot.lane.b32.xlu1 %v3782_v5, %s6542_s7  ;;  %v2741_v33 = vsel %vm6809_vm15, %v2736_v26, %v2740_v31  ;;  %v8204_v32 = vpop.permute.xlu0 %3234  ;;  %3258 = vrot.lane.b32.xlu0 %v3188_v58, %s6542_s7 }
 0x235   : > { %v8186_v53 = vld [vmem:[#allocation2 + $0xc4] sm:$0xf]  ;;  %v8188_v28 = vld [vmem:[#allocation2 + $0xc8] sm:$0x1]  ;;  %v3352_v10 = vld [vmem:[#allocation2 + $0x7c] sm:$0xf] }
 0x236   : > { %v1430_v44 = vld [vmem:[#allocation2 + $0x90] sm:$0xf]  ;;  %v3762_v20 = vrot.slane %v3760_v59, 4  ;;  %v3763_v47 = vshll.u32 %v3438_v22, 16  ;;  %v3793_v17 = vshll.u32 %v8162_v38, 16  ;;  %v2749_v18 = vor.u32 %v2748_v34, %v2745_v40 }
 0x237   : > { %v8194_v30 = vld [vmem:[#allocation2 + $0xc0] sm:$0xf]  ;;  %3384 = vst.msk [vmem:[#allocation3 + $0x160] sm:$0xf] %vm1265_vm6, %v3352_v10  ;;  %1462 = vst.msk [vmem:[#allocation3 + $0x1e0] sm:$0xf] %vm1265_vm6, %v1430_v44  ;;  %v2209_v27 = vsel %vm6756_vm12, %v2207_v37, %v2208_v0  ;;  %v5845_v0 = vcombine.low %v4267_v61, %v4270_v56 }
 0x238   : > { %v1437_v12 = vld [vmem:[#allocation2 + $0xb8] sm:$0xf]  ;;  %2981 = vst.msk [vmem:[#allocation3 + $0x134] sm:$0xf] %vm1265_vm6, %v2741_v33  ;;  %v3797_v31 = vshrl.u32 %v8162_v38, 16  ;;  %v3803_v24 = vshll.u32 %v3443_v45, 16  ;;  %3264 = vrot.lane.b32.xlu1 %v3198_v42, %s6542_s7 }
 0x239   : > { %v8202_v22 = vld [vmem:[#allocation2 + $0xd0] sm:$0xf]  ;;  %1469 = vst.msk [vmem:[#allocation3 + $0x26c] sm:$0xf] %vm1265_vm6, %v1437_v12  ;;  %v3351_v6 = vld [vmem:[#allocation2 + $0x78] sm:$0xf]  ;;  %5152 = vmatmul.mubr.bf16.gmra.mxu1 %v5845_v0 }
 0x23a   : > { %3317 = vst.msk [vmem:[#allocation3 + $0x134] sm:$0xf] %vm2001_vm0, %v8032_v15  ;;  %v3765_v62 = vrot.slane %v3763_v47, 5  ;;  %v8210_v26 = vrot.slane %v3793_v17, 5  ;;  %v5776_v40 = vrot.slane %v2064_v50, 9  ;;  %v2750_v38 = vrot.slane %v2749_v18, 4  ;;  %v8216_v15 = vpop.permute.xlu1 %2412 }
 0x23b   : > { %2298 = vst.msk [vmem:[#allocation3 + $0x1a8] sm:$0xf] %vm1265_vm6, %v2209_v27  ;;  %v6443_v59 = vld [vmem:[#allocation3 + $0x11c] ss:$20 sps:$4 sm:$0xff]   ;;  %3383 = vst.msk [vmem:[#allocation3 + $0x14c] sm:$0xf] %vm1265_vm6, %v3351_v6  ;;  %v3860_v6 = vpop.permute.xlu0 %3859 }
 0x23c   : > { %2491 = vst.msk [vmem:[#allocation3 + $0x1a8] sm:$0xf] %vm2001_vm0, %v8058_v25  ;;  %v3799_v45 = vrot.slane %v3797_v31, 4  ;;  %v3805_v5 = vrot.slane %v3803_v24, 5  ;;  %v5796_v34 = vrot.slane %v3040_v8, 9  ;;  %v3766_v10 = vor.u32 %v3765_v62, %v3762_v20  ;;  %v4273_v42 = vld [vmem:[#allocation3 + $0x118] sm:$0xff]  ;;  %5159 = vmatprep.mubr.bf16.mxu1 %v6443_v59 }
 0x23d   : > { %v1436_v37 = vld [vmem:[#allocation2 + $0xb4] sm:$0xf]  ;;  %v2206_v50 = vsel %vm6756_vm12, %v5776_v40, %v2205_v2  ;;  %v3201_v61 = vrot.slane %v8186_v53, 5  ;;  %v3204_v58 = vrot.slane %v8188_v28, 5  ;;  %v1435_v25 = vld [vmem:[#allocation2 + $0xac] sm:$0xf]  ;;  %v2755_v8 = vsel %vm6809_vm15, %v2750_v38, %v8130_v19 }
 0x23e   : > { %v3446_v44 = vld [vmem:[#allocation2 + $0xd4] sm:$0x1]  ;;  %1468 = vst.msk [vmem:[#allocation3 + $0x258] sm:$0xf] %vm1265_vm6, %v1436_v37  ;;  %v3800_v33 = vor.u32 %v3799_v45, %v8210_v26  ;;  %2297 = vst.msk [vmem:[#allocation3 + $0x194] sm:$0xf] %vm1265_vm6, %v2206_v50  ;;  %v3195_v2 = vsel %vm6756_vm12, %v5796_v34, %v3194_v46 }
 0x23f   : > { %v3784_v28 = vshrl.u32 %v8194_v30, 16  ;;  %v2523_v20 = vld [vmem:[#allocation2 + $0x60] sm:$0xf]  ;;  %v8234_v47 = vld [vmem:[#allocation2 + $0x70] sm:$0xf]  ;;  %v3767_v19 = vrot.slane %v3766_v10, 4  ;;  %v1940_v10 = vpop.permute.xlu1 %1939 }
 0x240   : > { %1467 = vst.msk [vmem:[#allocation3 + $0x244] sm:$0xf] %vm1265_vm6, %v1435_v25  ;;  %2982 = vst.msk [vmem:[#allocation3 + $0x148] sm:$0xf] %vm1265_vm6, %v2755_v8  ;;  %v3203_v17 = vrot.slane %v3201_v61, 4  ;;  %v3787_v9 = vshll.u32 %v8194_v30, 16 }
 0x241   : > { %2490 = vst.msk [vmem:[#allocation3 + $0x194] sm:$0xf] %vm2001_vm0, %v8087_v48  ;;  %v3817_v46 = vshll.u32 %v8202_v22, 16  ;;  %v8244_v12 = vld [vmem:[#allocation2 + $0x74] sm:$0x1]  ;;  %v3801_v27 = vrot.slane %v3800_v33, 4  ;;  %v3772_v30 = vsel %vm6809_vm15, %v3767_v19, %v8150_v7 }
 0x242   : > { %v1434_v18 = vld [vmem:[#allocation2 + $0xa8] sm:$0xf]  ;;  %3318 = vst.msk [vmem:[#allocation3 + $0x148] sm:$0xf] %vm2001_vm0, %v8049_v57  ;;  %v3786_v56 = vrot.slane %v3784_v28, 4  ;;  %v3821_v31 = vshrl.u32 %v8202_v22, 16  ;;  %v3205_v62 = vsel %vm6756_vm12, %v3203_v17, %v3204_v58  ;;  %3883 = vrot.lane.b32.xlu0 %v3772_v30, %s6542_s7 }
 0x243   : > { %v3827_v24 = vshll.u32 %v3446_v44, 16  ;;  %1466 = vst.msk [vmem:[#allocation3 + $0x230] sm:$0xf] %vm1265_vm6, %v1434_v18  ;;  %v3354_v48 = vld [vmem:[#allocation2 + $0x88] sm:$0xf]  ;;  %v3789_v40 = vrot.slane %v3787_v9, 5  ;;  %v3806_v22 = vsel %vm6809_vm15, %v3801_v27, %v3805_v5 }
 0x244   : > { %v8255_v0 = vrot.slane %v3817_v46, 5  ;;  %v3043_v57 = vld [vmem:[#allocation2 + $0xc0] sm:$0xe]  ;;  %3941 = vst.msk [vmem:[#allocation3 + $0x124] sm:$0xf] %vm2001_vm0, %v3860_v6  ;;  %v4276_v38 = vld [vmem:[#allocation3 + $0x12c] sm:$0xff]  ;;  %3889 = vrot.lane.b32.xlu1 %v3806_v22, %s6542_s7 }
 0x245   : > { %v3444_v59 = vld [vmem:[#allocation2 + $0xcc] sm:$0xf]  ;;  %3386 = vst.msk [vmem:[#allocation3 + $0x188] sm:$0xf] %vm1265_vm6, %v3354_v48  ;;  %v3823_v7 = vrot.slane %v3821_v31, 4  ;;  %v8262_v34 = vrot.slane %v3827_v24, 5  ;;  %v3790_v58 = vor.u32 %v3789_v40, %v3786_v56  ;;  %v5850_v25 = vcombine.low %v4273_v42, %v4276_v38 }
 0x246   : > { %v4262_v45 = vld [vmem:[#allocation3 + $0xd0] sm:$0xff]  ;;  %v2719_v37 = vshrl.u32 %v2523_v20, 16  ;;  %v2722_v44 = vshll.u32 %v2523_v20, 16  ;;  %v2198_v8 = vrot.slane %v8234_v47, 5  ;;  %2019 = vst.msk [vmem:[#allocation3 + $0x154] sm:$0xf] %vm2001_vm0, %v1940_v10  ;;  %3262 = vrot.lane.b32.xlu0 %v3195_v2, %s6542_s7 }
 0x247   : > { %v2061_v50 = vld [vmem:[#allocation2 + $0x6c] sm:$0xe]  ;;  %v8267_v33 = vld [vmem:[#allocation2 + $0x94] sm:$0xf]  ;;  %v3353_v5 = vld [vmem:[#allocation2 + $0x84] sm:$0xf]  ;;  %v3824_v17 = vor.u32 %v3823_v7, %v8255_v0  ;;  %5160 = vmatmul.mubr.bf16.gmra.mxu1 %v5850_v25 }
 0x248   : > { %v3356_v28 = vld [vmem:[#allocation2 + $0x94] sm:$0xf]  ;;  %v4265_v19 = vld [vmem:[#allocation3 + $0xe4] sm:$0xff]  ;;  %v2721_v9 = vrot.slane %v2719_v37, 4  ;;  %v2201_v46 = vrot.slane %v8244_v12, 5  ;;  %v5797_v18 = vrot.slane %v3043_v57, 9  ;;  %v2411_v57 = vpop.permute.xlu0 %2410  ;;  %3268 = vrot.lane.b32.xlu1 %v3205_v62, %s6542_s7 }
 0x249   : > { %v8271_v27 = vld [vmem:[#allocation2 + $0x98] sm:$0x1]  ;;  %v2070_v56 = vld [vmem:[#allocation2 + $0x90] sm:$0xe]  ;;  %3385 = vst.msk [vmem:[#allocation3 + $0x174] sm:$0xf] %vm1265_vm6, %v3353_v5  ;;  %v5842_v31 = vcombine.low %v4262_v45, %v4265_v19 }
 0x24a   : > { %3388 = vst.msk [vmem:[#allocation3 + $0x1b0] sm:$0xf] %vm1265_vm6, %v3356_v28  ;;  %v3791_v42 = vrot.slane %v3790_v58, 4  ;;  %v2724_v20 = vrot.slane %v2722_v44, 5  ;;  %v2200_v47 = vrot.slane %v2198_v8, 4  ;;  %v3825_v12 = vrot.slane %v3824_v17, 4 }
 0x24b   : > { %v8275_v24 = vld [vmem:[#allocation2 + $0x88] sm:$0xf]  ;;  %v8277_v6 = vld [vmem:[#allocation2 + $0x8c] sm:$0x1]  ;;  %v8284_v48 = vsel %vm6756_vm12, %v5797_v18, %v3201_v61  ;;  %v3808_v30 = vshrl.u32 %v3444_v59, 16  ;;  %v3811_v40 = vshll.u32 %v3444_v59, 16  ;;  %5305 = vmatmul.mubr.bf16.gmra.mxu0 %v5842_v31  ;;  %v3858_v61 = vpop.permute.xlu1 %3857 }
 0x24c   : > { %v2067_v22 = vld [vmem:[#allocation2 + $0x84] sm:$0xe]  ;;  %v8286_v38 = vld [vmem:[#allocation2 + $0xac] sm:$0xf]  ;;  %v3796_v45 = vsel %vm6809_vm15, %v3791_v42, %v8210_v26  ;;  %v2725_v2 = vor.u32 %v2724_v20, %v2721_v9  ;;  %v2202_v53 = vsel %vm6756_vm12, %v2200_v47, %v2201_v46  ;;  %v5775_v7 = vrot.slane %v2061_v50, 9 }
 0x24d   : > { %v8294_v37 = vld [vmem:[#allocation2 + $0xb0] sm:$0x1]  ;;  %v3358_v10 = vld [vmem:[#allocation2 + $0xa0] sm:$0xf]  ;;  %v3830_v58 = vsel %vm6809_vm15, %v3825_v12, %v8262_v34  ;;  %2296 = vst.msk [vmem:[#allocation3 + $0x180] sm:$0xf] %vm1265_vm6, %v2202_v53  ;;  %3887 = vrot.lane.b32.xlu0 %v3796_v45, %s6542_s7 }
 0x24e   : > { %v3355_v59 = vld [vmem:[#allocation2 + $0x90] sm:$0xf]  ;;  %v3810_v62 = vrot.slane %v3808_v30, 4  ;;  %v3813_v44 = vrot.slane %v3811_v40, 5  ;;  %3940 = vst.msk [vmem:[#allocation3 + $0x110] sm:$0xf] %vm2001_vm0, %v3858_v61  ;;  %v2199_v34 = vsel %vm6756_vm12, %v5775_v7, %v2198_v8  ;;  %3893 = vrot.lane.b32.xlu1 %v3830_v58, %s6542_s7  ;;  %v1938_v40 = vpop.permute.xlu0 %1937 }
 0x24f   : > { %v2219_v26 = vrot.slane %v8267_v33, 5  ;;  %v2076_v25 = vld [vmem:[#allocation2 + $0xa8] sm:$0xe]  ;;  %v8302_v5 = vld [vmem:[#allocation2 + $0xa0] sm:$0xf]  ;;  %v2726_v50 = vrot.slane %v2725_v2, 4 }
 0x250   : > { %3387 = vst.msk [vmem:[#allocation3 + $0x19c] sm:$0xf] %vm1265_vm6, %v3355_v59  ;;  %3390 = vst.msk [vmem:[#allocation3 + $0x1d8] sm:$0xf] %vm1265_vm6, %v3358_v10  ;;  %v2222_v28 = vrot.slane %v8271_v27, 5  ;;  %v5778_v19 = vrot.slane %v2070_v56, 9  ;;  %v3814_v9 = vor.u32 %v3813_v44, %v3810_v62  ;;  %v2425_v27 = vpop.permute.xlu1 %2424 }
 0x251   : > { %2489 = vst.msk [vmem:[#allocation3 + $0x180] sm:$0xf] %vm2001_vm0, %v8216_v15  ;;  %v8311_v17 = vld [vmem:[#allocation2 + $0xa4] sm:$0x1]  ;;  %v2073_v33 = vld [vmem:[#allocation2 + $0x9c] sm:$0xe]  ;;  %v2731_v8 = vsel %vm6809_vm15, %v2726_v50, %v8154_v1  ;;  %3266 = vrot.lane.b32.xlu0 %v8284_v48, %s6542_s7 }
 0x252   : > { %2295 = vst.msk [vmem:[#allocation3 + $0x16c] sm:$0xf] %vm1265_vm6, %v2199_v34  ;;  %v2221_v46 = vrot.slane %v2219_v26, 4  ;;  %v2212_v18 = vrot.slane %v8275_v24, 5  ;;  %v2215_v42 = vrot.slane %v8277_v6, 5  ;;  %v2220_v56 = vsel %vm6756_vm12, %v5778_v19, %v2219_v26 }
 0x253   : > { %v8317_v15 = vld [vmem:[#allocation2 + $0xb8] sm:$0xf]  ;;  %2488 = vst.msk [vmem:[#allocation3 + $0x16c] sm:$0xf] %vm2001_vm0, %v2411_v57  ;;  %v5777_v20 = vrot.slane %v2067_v22, 9  ;;  %v2233_v47 = vrot.slane %v8286_v38, 5 }
 0x254   : > { %v8327_v31 = vld [vmem:[#allocation2 + $0xbc] sm:$0x1]  ;;  %v2079_v24 = vld [vmem:[#allocation2 + $0xb4] sm:$0xe]  ;;  %2980 = vst.msk [vmem:[#allocation3 + $0x120] sm:$0xf] %vm1265_vm6, %v2731_v8  ;;  %v2223_v1 = vsel %vm6756_vm12, %v2221_v46, %v2222_v28  ;;  %v1952_v62 = vpop.permute.xlu1 %1951 }
 0x255   : > { %v2530_v6 = vld [vmem:[#allocation2 + $0x7c] sm:$0xf]  ;;  %v3815_v30 = vrot.slane %v3814_v9, 4  ;;  %2301 = vst.msk [vmem:[#allocation3 + $0x1e4] sm:$0xf] %vm1265_vm6, %v2220_v56  ;;  %v2214_v57 = vrot.slane %v2212_v18, 4  ;;  %v2213_v38 = vsel %vm6756_vm12, %v5777_v20, %v2212_v18 }
 0x256   : > { %v3357_v12 = vld [vmem:[#allocation2 + $0x9c] sm:$0xf]  ;;  %v2236_v45 = vrot.slane %v8294_v37, 5  ;;  %v3360_v22 = vld [vmem:[#allocation2 + $0xac] sm:$0xf]  ;;  %v2235_v2 = vrot.slane %v2233_v47, 4 }
 0x257   : > { %3389 = vst.msk [vmem:[#allocation3 + $0x1c4] sm:$0xf] %vm1265_vm6, %v3357_v12  ;;  %2302 = vst.msk [vmem:[#allocation3 + $0x1f8] sm:$0xf] %vm1265_vm6, %v2223_v1  ;;  %v5780_v53 = vrot.slane %v2076_v25, 9  ;;  %v2226_v7 = vrot.slane %v8302_v5, 5  ;;  %v2216_v59 = vsel %vm6756_vm12, %v2214_v57, %v2215_v42  ;;  %v3856_v5 = vpop.permute.xlu0 %3855 }
 0x258   : > { %3316 = vst.msk [vmem:[#allocation3 + $0x120] sm:$0xf] %vm2001_vm0, %v8204_v32  ;;  %2018 = vst.msk [vmem:[#allocation3 + $0x140] sm:$0xf] %vm2001_vm0, %v1938_v40  ;;  %v2531_v61 = vld [vmem:[#allocation2 + $0x80] sm:$0x1]  ;;  %v3820_v32 = vsel %vm6809_vm15, %v3815_v30, %v8255_v0  ;;  %v2237_v48 = vsel %vm6756_vm12, %v2235_v2, %v2236_v45 }
 0x259   : > { %3392 = vst.msk [vmem:[#allocation3 + $0x200] sm:$0xf] %vm1265_vm6, %v3360_v22  ;;  %v8343_v37 = vld [vmem:[#allocation2 + $0xd0] sm:$0xf]  ;;  %2299 = vst.msk [vmem:[#allocation3 + $0x1bc] sm:$0xf] %vm1265_vm6, %v2213_v38  ;;  %v2234_v44 = vsel %vm6756_vm12, %v5780_v53, %v2233_v47  ;;  %3891 = vrot.lane.b32.xlu0 %v3820_v32, %s6542_s7 }
 0x25a   : > { %2495 = vst.msk [vmem:[#allocation3 + $0x1f8] sm:$0xf] %vm2001_vm0, %v2425_v27  ;;  %v2229_v10 = vrot.slane %v8311_v17, 5  ;;  %v5779_v58 = vrot.slane %v2073_v33, 9  ;;  %v2228_v0 = vrot.slane %v2226_v7, 4  ;;  %v2240_v26 = vrot.slane %v8317_v15, 5 }
 0x25b   : > { %2300 = vst.msk [vmem:[#allocation3 + $0x1d0] sm:$0xf] %vm1265_vm6, %v2216_v59  ;;  %v2529_v25 = vld [vmem:[#allocation2 + $0x78] sm:$0xf]  ;;  %2306 = vst.msk [vmem:[#allocation3 + $0x248] sm:$0xf] %vm1265_vm6, %v2237_v48  ;;  %v2423_v40 = vpop.permute.xlu0 %2422 }
 0x25c   : > { %2025 = vst.msk [vmem:[#allocation3 + $0x1cc] sm:$0xf] %vm2001_vm0, %v1952_v62  ;;  %v2227_v50 = vsel %vm6756_vm12, %v5779_v58, %v2226_v7  ;;  %v2243_v34 = vrot.slane %v8327_v31, 5  ;;  %v5781_v28 = vrot.slane %v2079_v24, 9  ;;  %v2776_v19 = vshll.u32 %v2530_v6, 16  ;;  %v2421_v31 = vpop.permute.xlu1 %2420  ;;  %v4282_v57 = vld [vmem:[#allocation3 + $0x154] sm:$0xff] }
 0x25d   : > { %2305 = vst.msk [vmem:[#allocation3 + $0x234] sm:$0xf] %vm1265_vm6, %v2234_v44  ;;  %v8367_v17 = vld [vmem:[#allocation2 + $0x88] sm:$0xf]  ;;  %v2230_v33 = vsel %vm6756_vm12, %v2228_v0, %v2229_v10  ;;  %2303 = vst.msk [vmem:[#allocation3 + $0x20c] sm:$0xf] %vm1265_vm6, %v2227_v50 }
 0x25e   : > { %3939 = vst.msk [vmem:[#allocation3 + $0xfc] sm:$0xf] %vm2001_vm0, %v3856_v5  ;;  %v2242_v9 = vrot.slane %v2240_v26, 4  ;;  %v2780_v46 = vshrl.u32 %v2530_v6, 16  ;;  %v2786_v18 = vshll.u32 %v2531_v61, 16  ;;  %v2241_v15 = vsel %vm6756_vm12, %v5781_v28, %v2240_v26  ;;  %v8389_v53 = vld [vmem:[#allocation3 + $0x168] sm:$0xff] }
 0x25f   : > { %v2534_v42 = vld [vmem:[#allocation2 + $0x8c] sm:$0x1]  ;;  %2304 = vst.msk [vmem:[#allocation3 + $0x220] sm:$0xf] %vm1265_vm6, %v2230_v33  ;;  %v8377_v8 = vrot.slane %v2776_v19, 5  ;;  %v2767_v27 = vshrl.u32 %v2529_v25, 16  ;;  %v1950_v33 = vpop.permute.xlu0 %1949 }
 0x260   : > { %v2770_v56 = vshll.u32 %v2529_v25, 16  ;;  %v2532_v20 = vld [vmem:[#allocation2 + $0x84] sm:$0xf]  ;;  %v4162_v47 = vrot.slane %v8343_v37, 5  ;;  %v2244_v24 = vsel %vm6756_vm12, %v2242_v9, %v2243_v34  ;;  %2307 = vst.msk [vmem:[#allocation3 + $0x25c] sm:$0xf] %vm1265_vm6, %v2241_v15 }
 0x261   : > { %v2782_v6 = vrot.slane %v2780_v46, 4  ;;  %v8383_v12 = vld [vmem:[#allocation2 + $0x94] sm:$0xf]  ;;  %v3359_v30 = vld [vmem:[#allocation2 + $0xa8] sm:$0xf]  ;;  %v4279_v1 = vld [vmem:[#allocation3 + $0x140] sm:$0xff] }
 0x262   : > { %2493 = vst.msk [vmem:[#allocation3 + $0x1d0] sm:$0xf] %vm2001_vm0, %v2421_v31  ;;  %v6451_v45 = vld [vmem:[#allocation3 + $0x144] ss:$20 sps:$4 sm:$0xff]   ;;  %v2769_v22 = vrot.slane %v2767_v27, 4  ;;  %v2772_v38 = vrot.slane %v2770_v56, 5  ;;  %v5855_v2 = vcombine.low %v4279_v1, %v4282_v57 }
 0x263   : > { %2308 = vst.msk [vmem:[#allocation3 + $0x270] sm:$0xf] %vm1265_vm6, %v2244_v24  ;;  %3391 = vst.msk [vmem:[#allocation3 + $0x1ec] sm:$0xf] %vm1265_vm6, %v3359_v30  ;;  %v2783_v7 = vor.u32 %v2782_v6, %v8377_v8  ;;  %v2788_v61 = vrot.slane %v2786_v18, 5  ;;  %v2800_v32 = vshll.u32 %v8367_v17, 16  ;;  %5167 = vmatprep.mubr.bf16.mxu1 %v6451_v45  ;;  %v1948_v24 = vpop.permute.xlu1 %1947 }
 0x264   : > { %2494 = vst.msk [vmem:[#allocation3 + $0x1e4] sm:$0xf] %vm2001_vm0, %v2423_v40  ;;  %v3362_v59 = vld [vmem:[#allocation2 + $0xb8] sm:$0xf]  ;;  %v2773_v58 = vor.u32 %v2772_v38, %v2769_v22  ;;  %v2804_v62 = vshrl.u32 %v8367_v17, 16  ;;  %v2810_v48 = vshll.u32 %v2534_v42, 16  ;;  %5168 = vmatmul.mubr.bf16.gmra.mxu1 %v5855_v2 }
 0x265   : > { %v6453_v10 = vld [vmem:[#allocation3 + $0x16c] ss:$20 sps:$4 sm:$0xff]   ;;  %v2791_v44 = vshrl.u32 %v2532_v20, 16  ;;  %v2535_v26 = vld [vmem:[#allocation2 + $0x90] sm:$0xf]  ;;  %v2784_v50 = vrot.slane %v2783_v7, 4 }
 0x266   : > { %v2537_v0 = vld [vmem:[#allocation2 + $0x98] sm:$0x1]  ;;  %3394 = vst.msk [vmem:[#allocation3 + $0x228] sm:$0xf] %vm1265_vm6, %v3362_v59  ;;  %v3965_v25 = vld [vmem:[#allocation2 + $0x30] sm:$0xe]  ;;  %5175 = vmatprep.mubr.bf16.mxu1 %v6453_v10 }
 0x267   : > { %v4288_v5 = vld [vmem:[#allocation3 + $0x17c] sm:$0xff]  ;;  %v8395_v34 = vrot.slane %v2800_v32, 5  ;;  %v2794_v28 = vshll.u32 %v2532_v20, 16  ;;  %v2824_v19 = vshll.u32 %v8383_v12, 16  ;;  %v6458_v46 = vld [vmem:[#allocation3 + $0xf8] ss:$20 sps:$4 sm:$0xff]   ;;  %v2789_v42 = vsel %vm6809_vm15, %v2784_v50, %v2788_v61 }
 0x268   : > { %v6455_v9 = vld [vmem:[#allocation3 + $0xfc] ss:$20 sps:$4 sm:$0xff]   ;;  %v5860_v17 = vcombine.low %v8389_v53, %v4288_v5  ;;  %v2774_v18 = vrot.slane %v2773_v58, 4  ;;  %2024 = vst.msk [vmem:[#allocation3 + $0x1b8] sm:$0xf] %vm2001_vm0, %v1950_v33  ;;  %v2806_v15 = vrot.slane %v2804_v62, 4  ;;  %v2419_v53 = vpop.permute.xlu0 %2418 }
 0x269   : > { %v2812_v27 = vrot.slane %v2810_v48, 5  ;;  %v2793_v56 = vrot.slane %v2791_v44, 4  ;;  %v3967_v31 = vld [vmem:[#allocation2 + $0x38] sm:$0x1]  ;;  %5312 = vmatprep.mubr.bf16.mxu0 %v6455_v9  ;;  %v6459_v20 = vld [vmem:[#allocation3 + $0x124] ss:$20 sps:$4 sm:$0xff]  }
 0x26a   : > { %2985 = vst.msk [vmem:[#allocation3 + $0x184] sm:$0xf] %vm1265_vm6, %v2789_v42  ;;  %v2779_v6 = vsel %vm6809_vm15, %v2774_v18, %v8377_v8  ;;  %v2796_v30 = vrot.slane %v2794_v28, 5  ;;  %v8406_v40 = vrot.slane %v2824_v19, 5  ;;  %v2828_v1 = vshrl.u32 %v8383_v12, 16  ;;  %5313 = vmatmul.mubr.bf16.gmra.mxu0 %v6458_v46  ;;  %v4274_v7 = vld [vmem:[#allocation3 + $0x120] sm:$0xff] }
 0x26b   : > { %2023 = vst.msk [vmem:[#allocation3 + $0x1a4] sm:$0xf] %vm2001_vm0, %v1948_v24  ;;  %v2807_v57 = vor.u32 %v2806_v15, %v8395_v34  ;;  %v2834_v45 = vshll.u32 %v2537_v0, 16  ;;  %v2815_v22 = vshrl.u32 %v2535_v26, 16  ;;  %v2818_v38 = vshll.u32 %v2535_v26, 16  ;;  %5320 = vmatprep.mubr.bf16.mxu0 %v6459_v20  ;;  %v4277_v5 = vld [vmem:[#allocation3 + $0x134] sm:$0xff]  ;;  %v2433_v0 = vpop.permute.xlu1 %2432 }
 0x26c   : > { %2984 = vst.msk [vmem:[#allocation3 + $0x170] sm:$0xf] %vm1265_vm6, %v2779_v6  ;;  %v2539_v2 = vld [vmem:[#allocation2 + $0xa0] sm:$0xf]  ;;  %v2797_v8 = vor.u32 %v2796_v30, %v2793_v56  ;;  %v2830_v61 = vrot.slane %v2828_v1, 4  ;;  %v5800_v32 = vrot.slane %v3965_v25, 9  ;;  %5176 = vmatmul.mubr.bf16.gmra.mxu1 %v5860_v17  ;;  %v5852_v18 = vcombine.low %v4274_v7, %v4277_v5 }
 0x26d   : > { %v4074_v59 = vrot.slane %v3967_v31, 5  ;;  %v2540_v10 = vld [vmem:[#allocation2 + $0xa4] sm:$0x1]  ;;  %2492 = vst.msk [vmem:[#allocation3 + $0x1bc] sm:$0xf] %vm2001_vm0, %v2419_v53  ;;  %v2808_v12 = vrot.slane %v2807_v57, 4 }
 0x26e   : > { %v2836_v58 = vrot.slane %v2834_v45, 5  ;;  %v2817_v62 = vrot.slane %v2815_v22, 4  ;;  %v2820_v48 = vrot.slane %v2818_v38, 5  ;;  %v3361_v44 = vld [vmem:[#allocation2 + $0xb4] sm:$0xf]  ;;  %v2798_v50 = vrot.slane %v2797_v8, 4 }
 0x26f   : > { %v2831_v26 = vor.u32 %v2830_v61, %v8406_v40  ;;  %v9068_v28 = vrot.slane %v6923_v60, 5  ;;  %v4075_v25 = vsel %vm6756_vm12, %v6985_v11, %v4074_v59  ;;  %v2538_v33 = vld [vmem:[#allocation2 + $0x9c] sm:$0xf]  ;;  %3393 = vst.msk [vmem:[#allocation3 + $0x214] sm:$0xf] %vm1265_vm6, %v3361_v44  ;;  %v2813_v42 = vsel %vm6809_vm15, %v2808_v12, %v2812_v27  ;;  %v1946_v59 = vpop.permute.xlu0 %1945  ;;  %v1960_v44 = vpop.permute.xlu1 %1959 }
 0x270   : > { %v3364_v9 = vld [vmem:[#allocation2 + $0xc4] sm:$0xf]  ;;  %v3971_v46 = vld [vmem:[#allocation2 + $0x48] sm:$0xe]  ;;  %2499 = vst.msk [vmem:[#allocation3 + $0x248] sm:$0xf] %vm2001_vm0, %v2433_v0  ;;  %v2821_v60 = vor.u32 %v2820_v48, %v2817_v62  ;;  %v2803_v11 = vsel %vm6809_vm15, %v2798_v50, %v8395_v34 }
 0x271   : > { %v4072_v19 = vsel %vm6756_vm12, %v5800_v32, %v9068_v28  ;;  %4204 = vst.msk [vmem:[#allocation3 + $0x74] sm:$0xf] %vm1265_vm6, %v4075_v25  ;;  %v2848_v15 = vshll.u32 %v2539_v2, 16  ;;  %3396 = vst.msk [vmem:[#allocation3 + $0x250] sm:$0xf] %vm1265_vm6, %v3364_v9  ;;  %v2832_v56 = vrot.slane %v2831_v26, 4 }
 0x272   : > { %4203 = vst.msk [vmem:[#allocation3 + $0x60] sm:$0xf] %vm1265_vm6, %v4072_v19  ;;  %2987 = vst.msk [vmem:[#allocation3 + $0x1ac] sm:$0xf] %vm1265_vm6, %v2813_v42  ;;  %v2852_v17 = vshrl.u32 %v2539_v2, 16  ;;  %v2858_v31 = vshll.u32 %v2540_v10, 16  ;;  %5321 = vmatmul.mubr.bf16.gmra.mxu0 %v5852_v18 }
 0x273   : > { %v3973_v24 = vld [vmem:[#allocation2 + $0x50] sm:$0x1]  ;;  %2986 = vst.msk [vmem:[#allocation3 + $0x198] sm:$0xf] %vm1265_vm6, %v2803_v11  ;;  %v2822_v27 = vrot.slane %v2821_v60, 4  ;;  %v2850_v20 = vrot.slane %v2848_v15, 5  ;;  %v2837_v57 = vsel %vm6809_vm15, %v2832_v56, %v2836_v58  ;;  %v2431_v42 = vpop.permute.xlu0 %2430 }
 0x274   : > { %v2839_v6 = vshrl.u32 %v2538_v33, 16  ;;  %v2842_v30 = vshll.u32 %v2538_v33, 16  ;;  %v2542_v1 = vld [vmem:[#allocation2 + $0xac] sm:$0xf]  ;;  %v2854_v45 = vrot.slane %v2852_v17, 4  ;;  %v5802_v22 = vrot.slane %v3971_v46, 9  ;;  %v2429_v17 = vpop.permute.xlu1 %2428 }
 0x275   : > { %v2543_v38 = vld [vmem:[#allocation2 + $0xb0] sm:$0x1]  ;;  %v3363_v53 = vld [vmem:[#allocation2 + $0xc0] sm:$0xf]  ;;  %2989 = vst.msk [vmem:[#allocation3 + $0x1d4] sm:$0xf] %vm1265_vm6, %v2837_v57  ;;  %v2827_v34 = vsel %vm6809_vm15, %v2822_v27, %v8406_v40 }
 0x276   : > { %v2841_v2 = vrot.slane %v2839_v6, 4  ;;  %v2844_v7 = vrot.slane %v2842_v30, 5  ;;  %v4088_v8 = vrot.slane %v3973_v24, 5  ;;  %3395 = vst.msk [vmem:[#allocation3 + $0x23c] sm:$0xf] %vm1265_vm6, %v3363_v53  ;;  %v2855_v10 = vor.u32 %v2854_v45, %v2850_v20 }
 0x277   : > { %v3366_v61 = vld [vmem:[#allocation2 + $0xd0] sm:$0xf]  ;;  %v3974_v32 = vld [vmem:[#allocation2 + $0x54] sm:$0xe]  ;;  %2988 = vst.msk [vmem:[#allocation3 + $0x1c0] sm:$0xf] %vm1265_vm6, %v2827_v34 }
 0x278   : > { %v9069_v12 = vrot.slane %v6974_v3, 5  ;;  %v2872_v62 = vshll.u32 %v2542_v1, 16  ;;  %v2876_v48 = vshrl.u32 %v2542_v1, 16  ;;  %3398 = vst.msk [vmem:[#allocation3 + $0x278] sm:$0xf] %vm1265_vm6, %v3366_v61  ;;  %v2860_v5 = vrot.slane %v2858_v31, 5 }
 0x279   : > { %v3977_v40 = vld [vmem:[#allocation2 + $0x60] sm:$0xe]  ;;  %2022 = vst.msk [vmem:[#allocation3 + $0x190] sm:$0xf] %vm2001_vm0, %v1946_v59  ;;  %v2845_v0 = vor.u32 %v2844_v7, %v2841_v2  ;;  %v4089_v50 = vsel %vm6756_vm12, %v7137_v23, %v4088_v8  ;;  %v2882_v3 = vshll.u32 %v2543_v38, 16  ;;  %v2856_v25 = vrot.slane %v2855_v10, 4 }
 0x27a   : > { %v4086_v58 = vsel %vm6756_vm12, %v5802_v22, %v9069_v12  ;;  %v2541_v26 = vld [vmem:[#allocation2 + $0xa8] sm:$0xf]  ;;  %v3976_v28 = vld [vmem:[#allocation2 + $0x5c] sm:$0x1]  ;;  %2029 = vst.msk [vmem:[#allocation3 + $0x21c] sm:$0xf] %vm2001_vm0, %v1960_v44 }
 0x27b   : > { %4207 = vst.msk [vmem:[#allocation3 + $0xb0] sm:$0xf] %vm1265_vm6, %v4086_v58  ;;  %4208 = vst.msk [vmem:[#allocation3 + $0xc4] sm:$0xf] %vm1265_vm6, %v4089_v50  ;;  %v3979_v19 = vld [vmem:[#allocation2 + $0x68] sm:$0x1]  ;;  %v2861_v31 = vsel %vm6809_vm15, %v2856_v25, %v2860_v5 }
 0x27c   : > { %v2846_v33 = vrot.slane %v2845_v0, 4  ;;  %v8453_v9 = vrot.slane %v2872_v62, 5  ;;  %v2878_v46 = vrot.slane %v2876_v48, 4  ;;  %v2545_v18 = vld [vmem:[#allocation2 + $0xb8] sm:$0xf]  ;;  %v2884_v60 = vrot.slane %v2882_v3, 5 }
 0x27d   : > { %v2863_v15 = vshrl.u32 %v2541_v26, 16  ;;  %v2866_v23 = vshll.u32 %v2541_v26, 16  ;;  %v5803_v11 = vrot.slane %v3974_v32, 9  ;;  %v3365_v56 = vld [vmem:[#allocation2 + $0xcc] sm:$0xf]  ;;  %v4095_v6 = vrot.slane %v3976_v28, 5 }
 0x27e   : > { %2498 = vst.msk [vmem:[#allocation3 + $0x234] sm:$0xf] %vm2001_vm0, %v2431_v42  ;;  %v2851_v24 = vsel %vm6809_vm15, %v2846_v33, %v2850_v20  ;;  %v2879_v27 = vor.u32 %v2878_v46, %v8453_v9  ;;  %v2546_v30 = vld [vmem:[#allocation2 + $0xbc] sm:$0x1]  ;;  %v3980_v1 = vld [vmem:[#allocation2 + $0x6c] sm:$0xe]  ;;  %v1958_v33 = vpop.permute.xlu0 %1957 }
 0x27f   : > { %3397 = vst.msk [vmem:[#allocation3 + $0x264] sm:$0xf] %vm1265_vm6, %v3365_v56  ;;  %v3983_v57 = vld [vmem:[#allocation2 + $0x78] sm:$0xe]  ;;  %2991 = vst.msk [vmem:[#allocation3 + $0x1fc] sm:$0xf] %vm1265_vm6, %v2861_v31  ;;  %v4096_v8 = vsel %vm6756_vm12, %v7133_v41, %v4095_v6 }
 0x280   : > { %2497 = vst.msk [vmem:[#allocation3 + $0x220] sm:$0xf] %vm2001_vm0, %v2429_v17  ;;  %v2865_v45 = vrot.slane %v2863_v15, 4  ;;  %v2868_v22 = vrot.slane %v2866_v23, 5  ;;  %v9070_v38 = vrot.slane %v6965_v52, 5  ;;  %v5804_v53 = vrot.slane %v3977_v40, 9 }
 0x281   : > { %2990 = vst.msk [vmem:[#allocation3 + $0x1e8] sm:$0xf] %vm1265_vm6, %v2851_v24  ;;  %v2544_v34 = vld [vmem:[#allocation2 + $0xb4] sm:$0xf]  ;;  %v4294_v2 = vld [vmem:[#allocation3 + $0x1a4] sm:$0xff]  ;;  %v2880_v7 = vrot.slane %v2879_v27, 4 }
 0x282   : > { %v4093_v20 = vsel %vm6756_vm12, %v5803_v11, %v9070_v38  ;;  %v4102_v61 = vrot.slane %v3979_v19, 5  ;;  %v2896_v32 = vshll.u32 %v2545_v18, 16  ;;  %v3982_v59 = vld [vmem:[#allocation2 + $0x74] sm:$0x1]  ;;  %v4291_v10 = vld [vmem:[#allocation3 + $0x190] sm:$0xff]  ;;  %v2869_v58 = vor.u32 %v2868_v22, %v2865_v45 }
 0x283   : > { %4209 = vst.msk [vmem:[#allocation3 + $0xd8] sm:$0xf] %vm1265_vm6, %v4093_v20  ;;  %v6461_v12 = vld [vmem:[#allocation3 + $0x194] ss:$20 sps:$4 sm:$0xff]   ;;  %4210 = vst.msk [vmem:[#allocation3 + $0xec] sm:$0xf] %vm1265_vm6, %v4096_v8  ;;  %v5865_v40 = vcombine.low %v4291_v10, %v4294_v2  ;;  %v2885_v41 = vsel %vm6809_vm15, %v2880_v7, %v2884_v60  ;;  %v1956_v60 = vpop.permute.xlu1 %1955  ;;  %v2427_v7 = vpop.permute.xlu0 %2426 }
 0x284   : > { %v9071_v52 = vrot.slane %v7139_v43, 5  ;;  %v2900_v48 = vshrl.u32 %v2545_v18, 16  ;;  %v4103_v44 = vsel %vm6756_vm12, %v7179_v13, %v4102_v61  ;;  %v8484_v5 = vrot.slane %v2896_v32, 5  ;;  %v3985_v0 = vld [vmem:[#allocation2 + $0x80] sm:$0x1]  ;;  %5183 = vmatprep.mubr.bf16.mxu1 %v6461_v12  ;;  %v4297_v27 = vld [vmem:[#allocation3 + $0x1b8] sm:$0xff] }
 0x285   : > { %v2548_v50 = vld [vmem:[#allocation2 + $0xc4] sm:$0xf]  ;;  %v6463_v43 = vld [vmem:[#allocation3 + $0x1bc] ss:$20 sps:$4 sm:$0xff]   ;;  %2993 = vst.msk [vmem:[#allocation3 + $0x224] sm:$0xf] %vm1265_vm6, %v2885_v41  ;;  %5184 = vmatmul.mubr.bf16.gmra.mxu1 %v5865_v40 }
 0x286   : > { %v4100_v62 = vsel %vm6756_vm12, %v5804_v53, %v9071_v52  ;;  %v2870_v3 = vrot.slane %v2869_v58, 4  ;;  %4212 = vst.msk [vmem:[#allocation3 + $0x114] sm:$0xf] %vm1265_vm6, %v4103_v44  ;;  %v2902_v26 = vrot.slane %v2900_v48, 4  ;;  %v2906_v28 = vshll.u32 %v2546_v30, 16  ;;  %5191 = vmatprep.mubr.bf16.mxu1 %v6463_v43  ;;  %v4300_v38 = vld [vmem:[#allocation3 + $0x1cc] sm:$0xff] }
 0x287   : > { %4211 = vst.msk [vmem:[#allocation3 + $0x100] sm:$0xf] %vm1265_vm6, %v4100_v62  ;;  %v2887_v19 = vshrl.u32 %v2544_v34, 16  ;;  %v2549_v25 = vld [vmem:[#allocation2 + $0xc8] sm:$0x1]  ;;  %v2890_v13 = vshll.u32 %v2544_v34, 16  ;;  %v3866_v32 = vpop.permute.xlu1 %3865  ;;  %v5870_v48 = vcombine.low %v4297_v27, %v4300_v38 }
 0x288   : > { %v5805_v46 = vrot.slane %v3980_v1, 9  ;;  %v4109_v18 = vrot.slane %v3982_v59, 5  ;;  %v5806_v42 = vrot.slane %v3983_v57, 9  ;;  %2028 = vst.msk [vmem:[#allocation3 + $0x208] sm:$0xf] %vm2001_vm0, %v1958_v33  ;;  %v2875_v15 = vsel %vm6809_vm15, %v2870_v3, %v8453_v9 }
 0x289   : > { %v2903_v23 = vor.u32 %v2902_v26, %v8484_v5  ;;  %v2908_v11 = vrot.slane %v2906_v28, 5  ;;  %v2889_v56 = vrot.slane %v2887_v19, 4  ;;  %v2547_v17 = vld [vmem:[#allocation2 + $0xc0] sm:$0xf]  ;;  %v3986_v31 = vld [vmem:[#allocation2 + $0x84] sm:$0xe]  ;;  %v1954_v26 = vpop.permute.xlu0 %1953 }
 0x28a   : > { %v8493_v24 = vld [vmem:[#allocation2 + $0xc4] sm:$0xf]  ;;  %2027 = vst.msk [vmem:[#allocation3 + $0x1f4] sm:$0xf] %vm2001_vm0, %v1956_v60  ;;  %v2892_v6 = vrot.slane %v2890_v13, 5  ;;  %v9072_v30 = vrot.slane %v7120_v14, 5  ;;  %v4110_v9 = vsel %vm6756_vm12, %v7151_v51, %v4109_v18 }
 0x28b   : > { %2992 = vst.msk [vmem:[#allocation3 + $0x210] sm:$0xf] %vm1265_vm6, %v2875_v15  ;;  %v9073_v57 = vrot.slane %v7433_v29, 5  ;;  %v3989_v22 = vld [vmem:[#allocation2 + $0x90] sm:$0xe]  ;;  %v2904_v20 = vrot.slane %v2903_v23, 4 }
 0x28c   : > { %v4107_v1 = vsel %vm6756_vm12, %v5805_v46, %v9072_v30  ;;  %4214 = vst.msk [vmem:[#allocation3 + $0x13c] sm:$0xf] %vm1265_vm6, %v4110_v9  ;;  %v4116_v14 = vrot.slane %v3985_v0, 5  ;;  %v2920_v53 = vshll.u32 %v2548_v50, 16  ;;  %v2924_v34 = vshrl.u32 %v2548_v50, 16  ;;  %v1968_v46 = vpop.permute.xlu1 %1967 }
 0x28d   : > { %v4114_v45 = vsel %vm6756_vm12, %v5806_v42, %v9073_v57  ;;  %4213 = vst.msk [vmem:[#allocation3 + $0x128] sm:$0xf] %vm1265_vm6, %v4107_v1  ;;  %v3992_v2 = vld [vmem:[#allocation2 + $0x9c] sm:$0xe]  ;;  %v2893_v51 = vor.u32 %v2892_v6, %v2889_v56  ;;  %v2930_v8 = vshll.u32 %v2549_v25, 16  ;;  %v2911_v29 = vshrl.u32 %v2547_v17, 16  ;;  %5192 = vmatmul.mubr.bf16.gmra.mxu1 %v5870_v48 }
 0x28e   : > { %4215 = vst.msk [vmem:[#allocation3 + $0x150] sm:$0xf] %vm1265_vm6, %v4114_v45  ;;  %v3988_v61 = vld [vmem:[#allocation2 + $0x8c] sm:$0x1]  ;;  %v2909_v59 = vsel %vm6809_vm15, %v2904_v20, %v2908_v11  ;;  %v4117_v10 = vsel %vm6756_vm12, %v7475_v21, %v4116_v14  ;;  %v8517_v12 = vrot.slane %v2920_v53, 5  ;;  %v2926_v58 = vrot.slane %v2924_v34, 4 }
 0x28f   : > { %2496 = vst.msk [vmem:[#allocation3 + $0x20c] sm:$0xf] %vm2001_vm0, %v2427_v7  ;;  %v3991_v52 = vld [vmem:[#allocation2 + $0x98] sm:$0x1]  ;;  %v4155_v62 = vrot.slane %v8493_v24, 5  ;;  %v2894_v40 = vrot.slane %v2893_v51, 4 }
 0x290   : > { %3944 = vst.msk [vmem:[#allocation3 + $0x160] sm:$0xf] %vm2001_vm0, %v3866_v32  ;;  %v2932_v41 = vrot.slane %v2930_v8, 5  ;;  %v3998_v44 = vld [vmem:[#allocation2 + $0xb4] sm:$0xe]  ;;  %v2927_v50 = vor.u32 %v2926_v58, %v8517_v12  ;;  %v2913_v21 = vrot.slane %v2911_v29, 4  ;;  %v2437_v51 = vpop.permute.xlu1 %2436 }
 0x291   : > { %2995 = vst.msk [vmem:[#allocation3 + $0x24c] sm:$0xf] %vm1265_vm6, %v2909_v59  ;;  %4216 = vst.msk [vmem:[#allocation3 + $0x164] sm:$0xf] %vm1265_vm6, %v4117_v10  ;;  %v3995_v0 = vld [vmem:[#allocation2 + $0xa8] sm:$0xe]  ;;  %v2899_v28 = vsel %vm6809_vm15, %v2894_v40, %v8484_v5  ;;  %v3864_v59 = vpop.permute.xlu0 %3863 }
 0x292   : > { %v2914_v43 = vshll.u32 %v2547_v17, 16  ;;  %v5807_v3 = vrot.slane %v3986_v31, 9  ;;  %v4123_v19 = vrot.slane %v3988_v61, 5  ;;  %v5808_v25 = vrot.slane %v3989_v22, 9  ;;  %v3994_v13 = vld [vmem:[#allocation2 + $0xa4] sm:$0x1] }
 0x293   : > { %v4130_v33 = vrot.slane %v3991_v52, 5  ;;  %2026 = vst.msk [vmem:[#allocation3 + $0x1e0] sm:$0xf] %vm2001_vm0, %v1954_v26  ;;  %v2928_v18 = vrot.slane %v2927_v50, 4  ;;  %v9074_v60 = vrot.slane %v7302_v39, 5  ;;  %v5809_v23 = vrot.slane %v3992_v2, 9 }
 0x294   : > { %2994 = vst.msk [vmem:[#allocation3 + $0x238] sm:$0xf] %vm1265_vm6, %v2899_v28  ;;  %v2916_v42 = vrot.slane %v2914_v43, 5  ;;  %v3997_v11 = vld [vmem:[#allocation2 + $0xb0] sm:$0x1]  ;;  %v4124_v17 = vsel %vm6756_vm12, %v7457_v55, %v4123_v19  ;;  %v9077_v6 = vld [vmem:[#allocation9_spill] sm:$0xff] }
 0x295   : > { %v4121_v15 = vsel %vm6756_vm12, %v5807_v3, %v9074_v60  ;;  %v3959_v56 = vld [vmem:[#allocation2 + $0x18] sm:$0xe]  ;;  %v4001_v5 = vld [vmem:[#allocation2 + $0xc0] sm:$0xe]  ;;  %2033 = vst.msk [vmem:[#allocation3 + $0x26c] sm:$0xf] %vm2001_vm0, %v1968_v46  ;;  %v4131_v30 = vsel %vm6756_vm12, %v9077_v6, %v4130_v33  ;;  %v2933_v9 = vsel %vm6809_vm15, %v2928_v18, %v2932_v41  ;;  %v1964_v46 = vpop.permute.xlu1 %1963 }
 0x296   : > { %4217 = vst.msk [vmem:[#allocation3 + $0x178] sm:$0xf] %vm1265_vm6, %v4121_v15  ;;  %v9075_v31 = vld [vmem:[#allocation7_spill] sm:$0xff]  ;;  %v4000_v1 = vld [vmem:[#allocation2 + $0xbc] sm:$0x1]  ;;  %v2917_v57 = vor.u32 %v2916_v42, %v2913_v21  ;;  %v9078_v55 = vld [vmem:[#allocation6_spill] sm:$0xff] }
 0x297   : > { %v9076_v27 = vrot.slane %v9075_v31, 5  ;;  %4218 = vst.msk [vmem:[#allocation3 + $0x18c] sm:$0xf] %vm1265_vm6, %v4124_v17  ;;  %4220 = vst.msk [vmem:[#allocation3 + $0x1b4] sm:$0xf] %vm1265_vm6, %v4131_v30  ;;  %v9079_v45 = vrot.slane %v9078_v55, 5 }
 0x298   : > { %v4137_v38 = vrot.slane %v3994_v13, 5  ;;  %v3961_v20 = vld [vmem:[#allocation2 + $0x20] sm:$0x1]  ;;  %v4157_v14 = vrot.slane %v4155_v62, 4  ;;  %2997 = vst.msk [vmem:[#allocation3 + $0x274] sm:$0xf] %vm1265_vm6, %v2933_v9  ;;  %v1966_v13 = vpop.permute.xlu0 %1965 }
 0x299   : > { %v4128_v39 = vsel %vm6756_vm12, %v5808_v25, %v9076_v27  ;;  %v4135_v22 = vsel %vm6756_vm12, %v5809_v23, %v9079_v45  ;;  %v5810_v53 = vrot.slane %v3995_v0, 9  ;;  %v4144_v34 = vrot.slane %v3997_v11, 5  ;;  %v4003_v7 = vld [vmem:[#allocation2 + $0xc8] sm:$0x1]  ;;  %v9080_v29 = vld [vmem:[#allocation8_spill] sm:$0xff]  ;;  %v9084_v19 = vld [vmem:[#allocation5_spill] sm:$0xff]  ;;  %v3245_v23 = vpop.permute.xlu1 %3244  ;;  %v6022_v27 = vpop.f32.mrf.mxu1 }
 0x29a   : > { %4219 = vst.msk [vmem:[#allocation3 + $0x1a0] sm:$0xf] %vm1265_vm6, %v4128_v39  ;;  %4221 = vst.msk [vmem:[#allocation3 + $0x1c8] sm:$0xf] %vm1265_vm6, %v4135_v22  ;;  %v5811_v2 = vrot.slane %v3998_v44, 9  ;;  %v2918_v8 = vrot.slane %v2917_v57, 4  ;;  %v4138_v61 = vsel %vm6756_vm12, %v9080_v29, %v4137_v38 }
 0x29b   : > { %v4004_v32 = vld [vmem:[#allocation2 + $0xcc] sm:$0xe]  ;;  %2501 = vst.msk [vmem:[#allocation3 + $0x270] sm:$0xf] %vm2001_vm0, %v2437_v51  ;;  %v4142_v10 = vsel %vm6756_vm12, %v5810_v53, %v4141_v63  ;;  %v4145_v58 = vsel %vm6756_vm12, %v7840_v35, %v4144_v34  ;;  %v9081_v52 = vrot.slane %v7620_v54, 5  ;;  %v4151_v40 = vrot.slane %v4000_v1, 5  ;;  %v6023_v6 = vpop.f32.mrf.mxu1 }
 0x29c   : > { %4222 = vst.msk [vmem:[#allocation3 + $0x1dc] sm:$0xf] %vm1265_vm6, %v4138_v61  ;;  %v2923_v41 = vsel %vm6809_vm15, %v2918_v8, %v8517_v12  ;;  %4223 = vst.msk [vmem:[#allocation3 + $0x1f0] sm:$0xf] %vm1265_vm6, %v4142_v10  ;;  %v5798_v36 = vrot.slane %v3959_v56, 9  ;;  %v4060_v63 = vrot.slane %v3961_v20, 5  ;;  %v2435_v15 = vpop.permute.xlu0 %2434  ;;  %v8621_v30 = vadd.f32 %v6023_v6, %v6022_v27 }
 0x29d   : > { %v4149_v48 = vsel %vm6756_vm12, %v5811_v2, %v9081_v52  ;;  %3943 = vst.msk [vmem:[#allocation3 + $0x14c] sm:$0xf] %vm2001_vm0, %v3864_v59  ;;  %v5812_v35 = vrot.slane %v4001_v5, 9  ;;  %v4303_v54 = vld [vmem:[#allocation3 + $0x1e0] sm:$0xff]  ;;  %v4306_v44 = vld [vmem:[#allocation3 + $0x1f4] sm:$0xff]  ;;  %v4152_v50 = vsel %vm6756_vm12, %v7829_v16, %v4151_v40  ;;  %v4158_v4 = vrot.slane %v4003_v7, 5  ;;  %v3870_v31 = vpop.permute.xlu1 %3869  ;;  %v6025_v9 = vpop.f32.mrf.mxu1 }
 0x29e   : > { %4224 = vst.msk [vmem:[#allocation3 + $0x204] sm:$0xf] %vm1265_vm6, %v4145_v58  ;;  %4225 = vst.msk [vmem:[#allocation3 + $0x218] sm:$0xf] %vm1265_vm6, %v4149_v48  ;;  %v6465_v0 = vld [vmem:[#allocation3 + $0x1e4] ss:$20 sps:$4 sm:$0xff]   ;;  %v5875_v21 = vcombine.low %v4303_v54, %v4306_v44  ;;  %v4061_v25 = vsel %vm6756_vm12, %v9084_v19, %v4060_v63 }
 0x29f   : > { %2996 = vst.msk [vmem:[#allocation3 + $0x260] sm:$0xf] %vm1265_vm6, %v2923_v41  ;;  %v5813_v12 = vrot.slane %v4004_v32, 9  ;;  %v6468_v43 = vld [vmem:[#allocation3 + $0x20c] ss:$20 sps:$4 sm:$0xff]   ;;  %v4156_v16 = vsel %vm6756_vm12, %v5812_v35, %v4155_v62  ;;  %5199 = vmatprep.mubr.bf16.mxu1 %v6465_v0  ;;  %v4159_v18 = vsel %vm6756_vm12, %v4157_v14, %v4158_v4  ;;  %v4164_v62 = vrot.slane %v4162_v47, 4  ;;  %v6026_v38 = vpop.f32.mrf.mxu1 }
 0x2a0   : > { %4226 = vst.msk [vmem:[#allocation3 + $0x22c] sm:$0xf] %vm1265_vm6, %v4152_v50  ;;  %v9082_v3 = vld [vmem:[#allocation4_spill] sm:$0xff]  ;;  %v4006_v33 = vld [vmem:[#allocation2 + $0xd4] sm:$0x1]  ;;  %5200 = vmatmul.mubr.bf16.gmra.mxu1 %v5875_v21  ;;  %v4309_v60 = vld [vmem:[#allocation3 + $0x208] sm:$0xff]  ;;  %v1962_v17 = vpop.permute.xlu0 %1961  ;;  %v8624_v53 = vadd.f32 %v6026_v38, %v6025_v9  ;;  %v6134_v50 = vpop.f32.mrf.mxu0 }
 0x2a1   : > { %v9083_v26 = vrot.slane %v9082_v3, 5  ;;  %4200 = vst.msk [vmem:[#allocation3 + $0x24] sm:$0xf] %vm1265_vm6, %v4061_v25  ;;  %4227 = vst.msk [vmem:[#allocation3 + $0x240] sm:$0xf] %vm1265_vm6, %v4156_v16  ;;  %v4163_v24 = vsel %vm6756_vm12, %v5813_v12, %v4162_v47  ;;  %5207 = vmatprep.mubr.bf16.mxu1 %v6468_v43  ;;  %v4165_v42 = vrot.slane %v4006_v33, 5  ;;  %v3249_v39 = vpop.permute.xlu1 %3248  ;;  %v6028_v0 = vpop.f32.mrf.mxu1 }
 0x2a2   : > { %2032 = vst.msk [vmem:[#allocation3 + $0x258] sm:$0xf] %vm2001_vm0, %v1966_v13  ;;  %2031 = vst.msk [vmem:[#allocation3 + $0x244] sm:$0xf] %vm2001_vm0, %v1964_v46  ;;  %v6472_v56 = vld [vmem:[#allocation3 + $0x148] ss:$20 sps:$4 sm:$0xff]  }
 0x2a3   : > { %v4058_v28 = vsel %vm6756_vm12, %v5798_v36, %v9083_v26  ;;  %4228 = vst.msk [vmem:[#allocation3 + $0x254] sm:$0xf] %vm1265_vm6, %v4159_v18  ;;  %4229 = vst.msk [vmem:[#allocation3 + $0x268] sm:$0xf] %vm1265_vm6, %v4163_v24  ;;  %v4166_v37 = vsel %vm6756_vm12, %v4164_v62, %v4165_v42  ;;  %v4312_v47 = vld [vmem:[#allocation3 + $0x21c] sm:$0xff]  ;;  %v4324_v51 = vld [vmem:[#allocation3 + $0x26c] sm:$0xff]  ;;  %v6029_v12 = vpop.f32.mrf.mxu1 }
 0x2a4   : > { %4199 = vst.msk [vmem:[#allocation3 + $0x10] sm:$0xf] %vm1265_vm6, %v4058_v28  ;;  %v6470_v11 = vld [vmem:[#allocation3 + $0x14c] ss:$20 sps:$4 sm:$0xff]   ;;  %4230 = vst.msk [vmem:[#allocation3 + $0x27c] sm:$0xf] %vm1265_vm6, %v4166_v37  ;;  %v5880_v5 = vcombine.low %v4309_v60, %v4312_v47  ;;  %v3243_v49 = vpop.permute.xlu0 %3242  ;;  %v8640_v26 = vadd.f32 %v6029_v12, %v6028_v0  ;;  %v6135_v28 = vpop.f32.mrf.mxu0 }
 0x2a5   : > { %2500 = vst.msk [vmem:[#allocation3 + $0x25c] sm:$0xf] %vm2001_vm0, %v2435_v15  ;;  %3321 = vst.msk [vmem:[#allocation3 + $0x184] sm:$0xf] %vm2001_vm0, %v3245_v23  ;;  %5328 = vmatprep.mubr.bf16.mxu0 %v6470_v11  ;;  %v6473_v55 = vld [vmem:[#allocation3 + $0x234] ss:$20 sps:$4 sm:$0xff]   ;;  %v3874_v20 = vpop.permute.xlu1 %3873  ;;  %v6031_v16 = vpop.f32.mrf.mxu1  ;;  %v8643_v33 = vadd.f32 %v6135_v28, %v6134_v50 }
 0x2a6   : > { %5329 = vmatmul.mubr.bf16.gmra.mxu0 %v6472_v56  ;;  %2030 = vst.msk [vmem:[#allocation3 + $0x230] sm:$0xf] %vm2001_vm0, %v1962_v17  ;;  %3946 = vst.msk [vmem:[#allocation3 + $0x188] sm:$0xf] %vm2001_vm0, %v3870_v31  ;;  %vm5022_vm1 = vcmask 523264   ;;  %v6137_v13 = vpop.f32.mrf.mxu0 }
 0x2a7   : > { %3320 = vst.msk [vmem:[#allocation3 + $0x170] sm:$0xf] %vm2001_vm0, %v3243_v49  ;;  %3323 = vst.msk [vmem:[#allocation3 + $0x1ac] sm:$0xf] %vm2001_vm0, %v3249_v39  ;;  %v6480_v10 = vld [vmem:[#allocation3 + $0x60] ss:$20 sps:$4 sm:$0xff]   ;;  %v6032_v46 = vpop.f32.mrf.mxu1 }
 0x2a8   : > { %5208 = vmatmul.mubr.bf16.gmra.mxu1 %v5880_v5  ;;  %v3868_v45 = vpop.permute.xlu0 %3867  ;;  %3948 = vst.msk [vmem:[#allocation3 + $0x1b0] sm:$0xf] %vm2001_vm0, %v3874_v20  ;;  %v6484_v48 = vld [vmem:[#allocation3 + $0x88] ss:$20 sps:$4 sm:$0xff]   ;;  %v6485_v35 = vld [vmem:[#allocation3 + $0xb0] ss:$20 sps:$4 sm:$0xff]   ;;  %v8648_v24 = vadd.f32 %v6032_v46, %v6031_v16  ;;  %v6138_v62 = vpop.f32.mrf.mxu0 }
 0x2a9   : > { %v4318_v1 = vld [vmem:[#allocation3 + $0x244] sm:$0xff]  ;;  %3945 = vst.msk [vmem:[#allocation3 + $0x174] sm:$0xf] %vm2001_vm0, %v3868_v45  ;;  %5215 = vmatprep.mubr.bf16.mxu1 %v6473_v55  ;;  %v3253_v7 = vpop.permute.xlu1 %3252  ;;  %v6489_v4 = vld [vmem:[#allocation3 + $0xd8] ss:$20 sps:$4 sm:$0xff]   ;;  %v8651_v60 = vadd.f32 %v6138_v62, %v6137_v13  ;;  %v6034_v15 = vpop.f32.mrf.mxu1 }
 0x2aa   : > { %3325 = vst.msk [vmem:[#allocation3 + $0x1d4] sm:$0xf] %vm2001_vm0, %v3253_v7  ;;  %v6490_v25 = vld [vmem:[#allocation3 + $0x100] ss:$20 sps:$4 sm:$0xff]   ;;  %v6494_v23 = vld [vmem:[#allocation3 + $0x128] ss:$20 sps:$4 sm:$0xff]  }
 0x2ab   : > { %v6035_v37 = vpop.f32.mrf.mxu1  ;;  %v6495_v47 = vld [vmem:[#allocation3 + $0x150] ss:$20 sps:$4 sm:$0xff]   ;;  %v6499_v9 = vld [vmem:[#allocation3 + $0x178] ss:$20 sps:$4 sm:$0xff]   ;;  %v6513_v50 = vld [vmem:[#allocation3 + $0x268] ss:$20 sps:$4 sm:$0xff]  }
 0x2ac   : > { %v6475_v14 = vld [vmem:[#allocation3 + $0x25c] ss:$20 sps:$4 sm:$0xff]   ;;  %v3247_v34 = vpop.permute.xlu0 %3246  ;;  %v8654_v5 = vadd.f32 %v6035_v37, %v6034_v15 }
 0x2ad   : > { %v4315_v57 = vld [vmem:[#allocation3 + $0x230] sm:$0xff]  ;;  %3322 = vst.msk [vmem:[#allocation3 + $0x198] sm:$0xf] %vm2001_vm0, %v3247_v34  ;;  %v4321_v2 = vld [vmem:[#allocation3 + $0x258] sm:$0xff]  ;;  %v3878_v59 = vpop.permute.xlu1 %3877  ;;  %v6037_v31 = vpop.f32.mrf.mxu1 }
 0x2ae   : > { %v5885_v22 = vcombine.low %v4315_v57, %v4318_v1  ;;  %v6479_v61 = vld [vmem:[#allocation3 + $0x170] ss:$20 sps:$4 sm:$0xff]   ;;  %v5890_v32 = vcombine.low %v4321_v2, %v4324_v51  ;;  %3950 = vst.msk [vmem:[#allocation3 + $0x1d8] sm:$0xf] %vm2001_vm0, %v3878_v59  ;;  %v6500_v57 = vld [vmem:[#allocation3 + $0x1a0] ss:$20 sps:$4 sm:$0xff]   ;;  %v6140_v59 = vpop.f32.mrf.mxu0 }
 0x2af   : > { %v6038_v49 = vpop.f32.mrf.mxu1  ;;  %v6504_v34 = vld [vmem:[#allocation3 + $0x1c8] ss:$20 sps:$4 sm:$0xff]   ;;  %v6505_v2 = vld [vmem:[#allocation3 + $0x1f0] ss:$20 sps:$4 sm:$0xff]  }
 0x2b0   : > { %5216 = vmatmul.mubr.bf16.gmra.mxu1 %v5885_v22  ;;  %v3872_v8 = vpop.permute.xlu0 %3871  ;;  %v6477_v29 = vld [vmem:[#allocation3 + $0x174] ss:$20 sps:$4 sm:$0xff]   ;;  %v8660_v39 = vadd.f32 %v6038_v49, %v6037_v31  ;;  %v6510_v0 = vld [vmem:[#allocation3 + $0x10] ss:$20 sps:$4 sm:$0xff]  }
 0x2b1   : > { %5223 = vmatprep.mubr.bf16.mxu1 %v6475_v14  ;;  %3947 = vst.msk [vmem:[#allocation3 + $0x19c] sm:$0xf] %vm2001_vm0, %v3872_v8  ;;  %5336 = vmatprep.mubr.bf16.mxu0 %v6477_v29  ;;  %v3257_v52 = vpop.permute.xlu1 %3256  ;;  %v6040_v14 = vpop.f32.mrf.mxu1 }
 0x2b2   : > { %5337 = vmatmul.mubr.bf16.gmra.mxu0 %v6479_v61  ;;  %3327 = vst.msk [vmem:[#allocation3 + $0x1fc] sm:$0xf] %vm2001_vm0, %v3257_v52 }
 0x2b3   : > { %v6041_v7 = vpop.f32.mrf.mxu1 }
 0x2b4   : > { %v3251_v58 = vpop.permute.xlu0 %3250  ;;  %v6483_v36 = vld [vmem:[#allocation3 + $0x198] ss:$20 sps:$4 sm:$0xff]   ;;  %v8670_v61 = vadd.f32 %v6041_v7, %v6040_v14  ;;  %v8716_v14 = vld [vmem:[%s9027_s4] ss:$0 sm:$0xff] }
 0x2b5   : > { %3324 = vst.msk [vmem:[#allocation3 + $0x1c0] sm:$0xf] %vm2001_vm0, %v3251_v58  ;;  %v3882_v63 = vpop.permute.xlu1 %3881  ;;  %v6141_v58 = vpop.f32.mrf.mxu0 }
 0x2b6   : > { %3952 = vst.msk [vmem:[#allocation3 + $0x200] sm:$0xf] %vm2001_vm0, %v3882_v63 }
 0x2b8   : > { %5224 = vmatmul.mubr.bf16.gmra.mxu1 %v5890_v32  ;;  %v3876_v40 = vpop.permute.xlu0 %3875  ;;  %v6481_v41 = vld [vmem:[#allocation3 + $0x19c] ss:$20 sps:$4 sm:$0xff]   ;;  %v6043_v32 = vpop.f32.mrf.mxu1 }
 0x2b9   : > { %6302 = vmatprep.mubr.msk.bf16.mxu1 %vm5022_vm1, %v6480_v10  ;;  %3949 = vst.msk [vmem:[#allocation3 + $0x1c4] sm:$0xf] %vm2001_vm0, %v3876_v40  ;;  %5344 = vmatprep.mubr.bf16.mxu0 %v6481_v41  ;;  %v3261_v44 = vpop.permute.xlu1 %3260  ;;  %v6143_v40 = vpop.f32.mrf.mxu0  ;;  %v6509_v41 = vld [vmem:[#allocation3 + $0x218] ss:$20 sps:$4 sm:$0xff]  }
 0x2ba   : > { %5345 = vmatmul.mubr.bf16.gmra.mxu0 %v6483_v36  ;;  %3329 = vst.msk [vmem:[#allocation3 + $0x224] sm:$0xf] %vm2001_vm0, %v3261_v44  ;;  %v6044_v10 = vpop.f32.mrf.mxu1  ;;  %v6511_v36 = vld [vmem:[#allocation3 + $0x240] ss:$20 sps:$4 sm:$0xff]  }
 0x2bb   : > { %v8674_v52 = vadd.f32 %v6044_v10, %v6043_v32  ;;  %v6144_v63 = vpop.f32.mrf.mxu0 }
 0x2bc   : > { %v3255_v54 = vpop.permute.xlu0 %3254  ;;  %v6488_v3 = vld [vmem:[#allocation3 + $0x1c0] ss:$20 sps:$4 sm:$0xff]   ;;  %v6145_v44 = vadd.f32 %v6144_v63, %v6143_v40 }
 0x2bd   : > { %3326 = vst.msk [vmem:[#allocation3 + $0x1e8] sm:$0xf] %vm2001_vm0, %v3255_v54  ;;  %v3886_v19 = vpop.permute.xlu1 %3885 }
 0x2be   : > { %3954 = vst.msk [vmem:[#allocation3 + $0x228] sm:$0xf] %vm2001_vm0, %v3886_v19 }
 0x2c0   : > { %6303 = vmatmul.mubr.msk.bf16.vlgmr.msra.gmra.mxu1 %vm5022_vm1, %v6484_v48  ;;  %v3880_v21 = vpop.permute.xlu0 %3879  ;;  %v6486_v43 = vld [vmem:[#allocation3 + $0x1c4] ss:$20 sps:$4 sm:$0xff]   ;;  %v6142_v48 = vadd.f32 %v6141_v58, %v6140_v59  ;;  %v5117_v59 = vadd.f32 %v8648_v24, %v8716_v14 }
 0x2c1   : > { %6306 = vmatprep.mubr.msk.bf16.mxu1 %vm5022_vm1, %v6485_v35  ;;  %3951 = vst.msk [vmem:[#allocation3 + $0x1ec] sm:$0xf] %vm2001_vm0, %v3880_v21  ;;  %5352 = vmatprep.mubr.bf16.mxu0 %v6486_v43  ;;  %v3265_v42 = vpop.permute.xlu1 %3264 }
 0x2c2   : > { %5353 = vmatmul.mubr.bf16.gmra.mxu0 %v6488_v3  ;;  %3331 = vst.msk [vmem:[#allocation3 + $0x24c] sm:$0xf] %vm2001_vm0, %v3265_v42  ;;  %v8689_v42 = vpop.f32.mrf.mxu0 }
 0x2c4   : > { %v3259_v18 = vpop.permute.xlu0 %3258  ;;  %v6493_v56 = vld [vmem:[#allocation3 + $0x1e8] ss:$20 sps:$4 sm:$0xff]   ;;  %v8691_v15 = vpop.f32.mrf.mxu0 }
 0x2c5   : > { %3328 = vst.msk [vmem:[#allocation3 + $0x210] sm:$0xf] %vm2001_vm0, %v3259_v18  ;;  %v3890_v27 = vpop.permute.xlu1 %3889 }
 0x2c6   : > { %3956 = vst.msk [vmem:[#allocation3 + $0x250] sm:$0xf] %vm2001_vm0, %v3890_v27 }
 0x2c8   : > { %6307 = vmatmul.mubr.msk.bf16.gmra.mxu1 %vm5022_vm1, %v6489_v4  ;;  %v6491_v11 = vld [vmem:[#allocation3 + $0x1ec] ss:$20 sps:$4 sm:$0xff]   ;;  %v3884_v17 = vpop.permute.xlu0 %3883 }
 0x2c9   : > { %6310 = vmatprep.mubr.msk.bf16.mxu1 %vm5022_vm1, %v6490_v25  ;;  %5360 = vmatprep.mubr.bf16.mxu0 %v6491_v11  ;;  %3953 = vst.msk [vmem:[#allocation3 + $0x214] sm:$0xf] %vm2001_vm0, %v3884_v17  ;;  %v3269_v1 = vpop.permute.xlu1 %3268  ;;  %v6512_v4 = vld [vmem:[#allocation3 + $0x38] ss:$20 sps:$4 sm:$0xff]  }
 0x2ca   : > { %5361 = vmatmul.mubr.bf16.gmra.mxu0 %v6493_v56  ;;  %3333 = vst.msk [vmem:[#allocation3 + $0x274] sm:$0xf] %vm2001_vm0, %v3269_v1 }
 0x2cc   : > { %v3263_v6 = vpop.permute.xlu0 %3262  ;;  %v6498_v22 = vld [vmem:[#allocation3 + $0x210] ss:$20 sps:$4 sm:$0xff]   ;;  %v6046_v12 = vpop.f32.mrf.mxu1 }
 0x2cd   : > { %3330 = vst.msk [vmem:[#allocation3 + $0x238] sm:$0xf] %vm2001_vm0, %v3263_v6  ;;  %v3894_v38 = vpop.permute.xlu1 %3893 }
 0x2ce   : > { %3958 = vst.msk [vmem:[#allocation3 + $0x278] sm:$0xf] %vm2001_vm0, %v3894_v38  ;;  %v6047_v21 = vpop.f32.mrf.mxu1 }
 0x2cf   : > { %v8681_v43 = vadd.f32 %v6047_v21, %v6046_v12 }
 0x2d0   : > { %6311 = vmatmul.mubr.msk.bf16.gmra.mxu1 %vm5022_vm1, %v6494_v23  ;;  %v3888_v55 = vpop.permute.xlu0 %3887  ;;  %v6496_v45 = vld [vmem:[#allocation3 + $0x214] ss:$20 sps:$4 sm:$0xff]   ;;  %v6049_v3 = vpop.f32.mrf.mxu1 }
 0x2d1   : > { %6314 = vmatprep.mubr.msk.bf16.mxu1 %vm5022_vm1, %v6495_v47  ;;  %3955 = vst.msk [vmem:[#allocation3 + $0x23c] sm:$0xf] %vm2001_vm0, %v3888_v55  ;;  %5368 = vmatprep.mubr.bf16.mxu0 %v6496_v45  ;;  %v8693_v23 = vpop.f32.mrf.mxu0 }
 0x2d2   : > { %5369 = vmatmul.mubr.bf16.gmra.mxu0 %v6498_v22  ;;  %v6050_v28 = vpop.f32.mrf.mxu1 }
 0x2d3   : > { %v8683_v19 = vadd.f32 %v6050_v28, %v6049_v3  ;;  %v8697_v47 = vpop.f32.mrf.mxu0 }
 0x2d4   : > { %v3267_v20 = vpop.permute.xlu0 %3266  ;;  %v6503_v29 = vld [vmem:[#allocation3 + $0x238] ss:$20 sps:$4 sm:$0xff]  }
 0x2d5   : > { %3332 = vst.msk [vmem:[#allocation3 + $0x260] sm:$0xf] %vm2001_vm0, %v3267_v20 }
 0x2d6   : > { %v6052_v25 = vpop.f32.mrf.mxu1 }
 0x2d8   : > { %6315 = vmatmul.mubr.msk.bf16.gmra.mxu1 %vm5022_vm1, %v6499_v9  ;;  %v3892_v51 = vpop.permute.xlu0 %3891  ;;  %v6501_v8 = vld [vmem:[#allocation3 + $0x23c] ss:$20 sps:$4 sm:$0xff]   ;;  %v6053_v16 = vpop.f32.mrf.mxu1 }
 0x2d9   : > { %6318 = vmatprep.mubr.msk.bf16.mxu1 %vm5022_vm1, %v6500_v57  ;;  %3957 = vst.msk [vmem:[#allocation3 + $0x264] sm:$0xf] %vm2001_vm0, %v3892_v51  ;;  %5376 = vmatprep.mubr.bf16.mxu0 %v6501_v8  ;;  %v8685_v13 = vadd.f32 %v6053_v16, %v6052_v25 }
 0x2da   : > { %5377 = vmatmul.mubr.bf16.gmra.mxu0 %v6503_v29  ;;  %v6055_v46 = vpop.f32.mrf.mxu1  ;;  %v8701_v49 = vpop.f32.mrf.mxu0  ;;  %v5106_v29 = vadd.f32 %v8621_v30, %v8716_v14 }
 0x2dc   : > { %v6508_v54 = vld [vmem:[#allocation3 + $0x260] ss:$20 sps:$4 sm:$0xff]   ;;  %v6056_v18 = vpop.f32.mrf.mxu1  ;;  %v8705_v57 = vpop.f32.mrf.mxu0  ;;  %v8733_v58 = vadd.f32 %v8643_v33, %v5106_v29 }
 0x2dd   : > { %v8687_v62 = vadd.f32 %v6056_v18, %v6055_v46 }
 0x2de   : > { %v8709_v38 = vpop.f32.mrf.mxu0  ;;  %9086 = vst [vmem:[#allocation9_spill] sm:$0xff] %v8733_v58  ;;  %v6154_v58 = vadd.f32 %v8705_v57, %v8701_v49 }
 0x2e0   : > { %6319 = vmatmul.mubr.msk.bf16.gmra.mxu1 %vm5022_vm1, %v6504_v34  ;;  %v6506_v35 = vld [vmem:[#allocation3 + $0x264] ss:$20 sps:$4 sm:$0xff]   ;;  %v8711_v20 = vpop.f32.mrf.mxu0 }
 0x2e1   : > { %6322 = vmatprep.mubr.msk.bf16.mxu1 %vm5022_vm1, %v6505_v2  ;;  %5384 = vmatprep.mubr.bf16.mxu0 %v6506_v35  ;;  %v5114_v2 = vadd.f32 %v8640_v26, %v8716_v14  ;;  %v6157_v49 = vadd.f32 %v8711_v20, %v8709_v38 }
 0x2e2   : > { %5385 = vmatmul.mubr.bf16.gmra.mxu0 %v6508_v54 }
 0x2e3   : > { %6298 = vmatprep.mubr.msk.bf16.mxu0 %vm5022_vm1, %v6510_v0  ;;  %v8718_v34 = vpop.f32.mrf.mxu0  ;;  %v8722_v7 = vadd.f32 %v6142_v48, %v5114_v2  ;;  %v5109_v48 = vadd.f32 %v8624_v53, %v8716_v14 }
 0x2e5   : > { %9085 = vst [vmem:[#allocation7_spill] sm:$0xff] %v8722_v7  ;;  %v8724_v51 = vpop.f32.mrf.mxu0  ;;  %v8744_v30 = vadd.f32 %v8651_v60, %v5109_v48 }
 0x2e7   : > { %v8735_v40 = vpop.f32.mrf.mxu0  ;;  %9088 = vst [vmem:[#allocation8_spill] sm:$0xff] %v8744_v30 }
 0x2e8   : > { %6323 = vmatmul.mubr.msk.bf16.gmra.mxu1 %vm5022_vm1, %v6509_v41  ;;  %v8739_v41 = vadd.f32 %v6145_v44, %v5117_v59 }
 0x2e9   : > { %6326 = vmatprep.mubr.msk.bf16.mxu1 %vm5022_vm1, %v6511_v36  ;;  %v8746_v24 = vpop.f32.mrf.mxu0 }
 0x2ea   : > { %6299 = vmatmul.mubr.msk.bf16.vlgmr.msra.gmra.mxu0 %vm5022_vm1, %v6512_v4  ;;  %9087 = vst [vmem:[#allocation6_spill] sm:$0xff] %v8739_v41 }
 0x2f0   : > { %6327 = vmatmul.mubr.msk.bf16.gmra.mxu1 %vm5022_vm1, %v6513_v50 }
 0x2f9   : > { %v6058_v11 = vpop.f32.mrf.mxu1 }
 0x2fb   : > { %v6059_v56 = vpop.f32.mrf.mxu1 }
 0x2fc   : > { %v8695_v37 = vadd.f32 %v6059_v56, %v6058_v11 }
 0x2fd   : > { %v6061_v17 = vpop.f32.mrf.mxu1 }
 0x2ff   : > { %v6062_v31 = vpop.f32.mrf.mxu1 }
 0x300   : > { %v8699_v27 = vadd.f32 %v6062_v31, %v6061_v17 }
 0x307   : > { %v6064_v6 = vpop.f32.mrf.mxu1 }
 0x309   : > { %v6065_v1 = vpop.f32.mrf.mxu1 }
 0x30a   : > { %v8703_v9 = vadd.f32 %v6065_v1, %v6064_v6 }
 0x30b   : > { %v6067_v55 = vpop.f32.mrf.mxu1  ;;  %v8750_v0 = vpop.f32.mrf.mxu0 }
 0x30d   : > { %v6068_v45 = vpop.f32.mrf.mxu1  ;;  %v8754_v53 = vpop.f32.mrf.mxu0 }
 0x30e   : > { %v8707_v22 = vadd.f32 %v6068_v45, %v6067_v55 }
 0x30f   : > { %v8756_v44 = vpop.f32.mrf.mxu0 }
 0x311   : > { %v8758_v21 = vpop.f32.mrf.mxu0 }
 0x324   : > { %v6070_v8 = vpop.f32.mrf.mxu1 }
 0x326   : > { %v6071_v32 = vpop.f32.mrf.mxu1 }
 0x327   : > { %v8730_v10 = vadd.f32 %v6071_v32, %v6070_v8 }
 0x328   : > { %v6073_v26 = vpop.f32.mrf.mxu1 }
 0x32a   : > { %v6074_v36 = vpop.f32.mrf.mxu1  ;;  %v8760_v3 = vpop.f32.mrf.mxu0 }
 0x32b   : > { %v8741_v63 = vadd.f32 %v6074_v36, %v6073_v26 }
 0x32c   : > { %v6076_v35 = vpop.f32.mrf.mxu1  ;;  %v8764_v46 = vpop.f32.mrf.mxu0 }
 0x32e   : > { %v6077_v54 = vpop.f32.mrf.mxu1  ;;  %v8768_v17 = vpop.f32.mrf.mxu0 }
 0x32f   : > { %v8748_v33 = vadd.f32 %v6077_v54, %v6076_v35 }
 0x330   : > { %v6079_v50 = vpop.f32.mrf.mxu1  ;;  %v8772_v55 = vpop.f32.mrf.mxu0 }
 0x332   : > { %v6080_v4 = vpop.f32.mrf.mxu1  ;;  %v8776_v8 = vpop.f32.mrf.mxu0 }
 0x333   : > { %v8752_v12 = vadd.f32 %v6080_v4, %v6079_v50 }
 0x334   : > { %v8778_v59 = vpop.f32.mrf.mxu0 }
 0x336   : > { %v8782_v35 = vpop.f32.mrf.mxu0 }
 0x345   : > { %v6082_v60 = vpop.f32.mrf.mxu1 }
 0x347   : > { %v6083_v28 = vpop.f32.mrf.mxu1 }
 0x348   : > { %v8762_v25 = vadd.f32 %v6083_v28, %v6082_v60  ;;  %v8790_v60 = vpop.f32.mrf.mxu0 }
 0x349   : > { %v6085_v16 = vpop.f32.mrf.mxu1 }
 0x34b   : > { %v6086_v18 = vpop.f32.mrf.mxu1 }
 0x34c   : > { %v8766_v11 = vadd.f32 %v6086_v18, %v6085_v16 }
 0x34d   : > { %v6088_v56 = vpop.f32.mrf.mxu1 }
 0x34f   : > { %v6089_v31 = vpop.f32.mrf.mxu1 }
 0x350   : > { %v8770_v6 = vadd.f32 %v6089_v31, %v6088_v56 }
 0x351   : > { %v6091_v1 = vpop.f32.mrf.mxu1 }
 0x353   : > { %v6092_v45 = vpop.f32.mrf.mxu1 }
 0x354   : > { %v8774_v2 = vadd.f32 %v6092_v45, %v6091_v1 }
 0x360   : > { %v6094_v29 = vpop.f32.mrf.mxu1 }
 0x362   : > { %v6095_v32 = vpop.f32.mrf.mxu1 }
 0x363   : > { %v8780_v26 = vadd.f32 %v6095_v32, %v6094_v29 }
 0x364   : > { %v6097_v48 = vpop.f32.mrf.mxu1 }
 0x365   : > { %9089 = vst [vmem:[#allocation4_spill] sm:$0xff] %v8780_v26 }
 0x366   : > { %v6098_v36 = vpop.f32.mrf.mxu1  ;;  %v8794_v16 = vpop.f32.mrf.mxu0 }
 0x367   : > { %v8784_v54 = vadd.f32 %v6098_v36, %v6097_v48 }
 0x368   : > { %v8786_v50 = vpop.f32.mrf.mxu1  ;;  %v8798_v56 = vpop.f32.mrf.mxu0 }
 0x369   : > { %9090 = vst [vmem:[#allocation5_spill] sm:$0xff] %v8784_v54 }
 0x36a   : > { %v8788_v4 = vpop.f32.mrf.mxu1  ;;  %v8804_v45 = vpop.f32.mrf.mxu0 }
 0x36c   : > { %v8792_v28 = vpop.f32.mrf.mxu1  ;;  %v8810_v48 = vpop.f32.mrf.mxu0 }
 0x36e   : > { %v8796_v18 = vpop.f32.mrf.mxu1 }
 0x36f   : > { %9091 = vst [vmem:[#allocation10_spill] sm:$0xff] %v8796_v18 }
 0x370   : > { %v8800_v31 = vpop.f32.mrf.mxu1 }
 0x371   : > { %9092 = vst [vmem:[#allocation11_spill] sm:$0xff] %v8800_v31 }
 0x372   : > { %v8802_v1 = vpop.f32.mrf.mxu1  ;;  %v8814_v30 = vpop.f32.mrf.mxu0 }
 0x373   : > { %9093 = vst [vmem:[#allocation12_spill] sm:$0xff] %v8802_v1 }
 0x374   : > { %v8806_v29 = vpop.f32.mrf.mxu1  ;;  %v8820_v7 = vpop.f32.mrf.mxu0 }
 0x375   : > { %9094 = vst [vmem:[#allocation13_spill] sm:$0xff] %v8806_v29  ;;  %v5130_v29 = vadd.f32 %v8670_v61, %v8716_v14 }
 0x376   : > { %v8808_v32 = vpop.f32.mrf.mxu1  ;;  %v8828_v31 = vpop.f32.mrf.mxu0 }
 0x377   : > { %9095 = vst [vmem:[#allocation14_spill] sm:$0xff] %v8808_v32  ;;  %v6148_v32 = vadd.f32 %v8691_v15, %v8689_v42  ;;  %v5133_v42 = vadd.f32 %v8674_v52, %v8716_v14 }
 0x378   : > { %v8812_v36 = vpop.f32.mrf.mxu1  ;;  %v8837_v57 = vpop.f32.mrf.mxu0 }
 0x379   : > { %9096 = vst [vmem:[#allocation15_spill] sm:$0xff] %v8812_v36  ;;  %v5294_v26 = vadd.f32 %v6157_v49, %v5133_v42 }
 0x37a   : > { %v8816_v41 = vpop.f32.mrf.mxu1  ;;  %v8848_v15 = vpop.f32.mrf.mxu0 }
 0x37b   : > { %9097 = vst [vmem:[#allocation16_spill] sm:$0xff] %v8816_v41  ;;  %v5122_v41 = vadd.f32 %v8654_v5, %v8716_v14  ;;  %v6151_v5 = vadd.f32 %v8697_v47, %v8693_v23  ;;  %v5146_v23 = vadd.f32 %v8685_v13, %v8716_v14  ;;  %v6160_v47 = vadd.f32 %v8724_v51, %v8718_v34 }
 0x37c   : > { %v8822_v1 = vpop.f32.mrf.mxu1  ;;  %v8856_v36 = vpop.f32.mrf.mxu0 }
 0x37d   : > { %9098 = vst [vmem:[#allocation17_spill] sm:$0xff] %v8822_v1  ;;  %v5291_v1 = vadd.f32 %v6154_v58, %v5130_v29  ;;  %v5283_v20 = vadd.f32 %v6148_v32, %v5122_v41  ;;  %v5125_v29 = vadd.f32 %v8660_v39, %v8716_v14  ;;  %v6169_v32 = vadd.f32 %v8758_v21, %v8756_v44 }
 0x37e   : > { %v8831_v54 = vpop.f32.mrf.mxu1  ;;  %v8864_v39 = vpop.f32.mrf.mxu0  ;;  %v5141_v21 = vadd.f32 %v8683_v19, %v8716_v14 }
 0x37f   : > { %9099 = vst [vmem:[#allocation18_spill] sm:$0xff] %v8831_v54  ;;  %v6166_v54 = vadd.f32 %v8754_v53, %v8750_v0  ;;  %v5286_v0 = vadd.f32 %v6151_v5, %v5125_v29 }
 0x380   : > { %v6304_v61 = vpop.f32.mrf.mxu1  ;;  %v8872_v13 = vpop.f32.mrf.mxu0 }
 0x381   : > { %v5452_v38 = vadd.f32 %v6304_v61, %v5291_v1  ;;  %v5138_v1 = vadd.f32 %v8681_v43, %v8716_v14  ;;  %v5307_v34 = vadd.f32 %v6166_v54, %v5146_v23  ;;  %v5149_v61 = vadd.f32 %v8687_v62, %v8716_v14 }
 0x382   : > { %v5443_v58 = vpop.f32.mrf.mxu1  ;;  %v6200_v43 = vpop.f32.mrf.mxu0  ;;  %v6178_v54 = vadd.f32 %v8778_v59, %v8776_v8  ;;  %v5154_v8 = vadd.f32 %v8695_v37, %v8716_v14  ;;  %v6181_v59 = vadd.f32 %v8790_v60, %v8782_v35  ;;  %v5157_v60 = vadd.f32 %v8699_v27, %v8716_v14 }
 0x383   : > { %5561 = vst.msk [vmem:[%s8842_s10 + $0x30] sm:$0xff] %vm5554_vm2, %v5452_v38  ;;  %v5444_v52 = vadd.f32 %v5443_v58, %v5283_v20  ;;  %v5299_v42 = vadd.f32 %v6160_v47, %v5138_v1  ;;  %v5310_v38 = vadd.f32 %v6169_v32, %v5149_v61  ;;  %v6190_v1 = vadd.f32 %v8820_v7, %v8814_v30 }
 0x384   : > { %v6305_v18 = vpop.f32.mrf.mxu1  ;;  %v6201_v62 = vpop.f32.mrf.mxu0  ;;  %v5170_v30 = vadd.f32 %v8730_v10, %v8716_v14 }
 0x385   : > { %5559 = vst.msk [vmem:[%s8842_s10 + $0x20] sm:$0xff] %vm5554_vm2, %v5444_v52  ;;  %v5455_v41 = vadd.f32 %v6305_v18, %v5294_v26  ;;  %v6163_v26 = vadd.f32 %v8746_v24, %v8735_v40  ;;  %v5162_v40 = vadd.f32 %v8703_v9, %v8716_v14  ;;  %v6172_v24 = vadd.f32 %v8764_v46, %v8760_v3 }
 0x386   : > { %v5446_v53 = vpop.f32.mrf.mxu1  ;;  %v6203_v19 = vpop.f32.mrf.mxu0  ;;  %v5165_v3 = vadd.f32 %v8707_v22, %v8716_v14  ;;  %v6175_v46 = vadd.f32 %v8772_v55, %v8768_v17  ;;  %v5178_v55 = vadd.f32 %v8748_v33, %v8716_v14 }
 0x387   : > { %5562 = vst.msk [vmem:[%s8842_s10 + $0x38] sm:$0xff] %vm5554_vm2, %v5455_v41  ;;  %v5447_v49 = vadd.f32 %v5446_v53, %v5286_v0  ;;  %v5302_v29 = vadd.f32 %v6163_v26, %v5141_v21  ;;  %v5323_v47 = vadd.f32 %v6178_v54, %v5162_v40  ;;  %v5315_v53 = vadd.f32 %v6172_v24, %v5154_v8 }
 0x388   : > { %v6308_v51 = vpop.f32.mrf.mxu1  ;;  %v6204_v9 = vpop.f32.mrf.mxu0  ;;  %v5318_v61 = vadd.f32 %v6175_v46, %v5157_v60  ;;  %v6193_v26 = vadd.f32 %v8837_v57, %v8828_v31  ;;  %v5173_v31 = vadd.f32 %v8741_v63, %v8716_v14  ;;  %v6202_v57 = vadd.f32 %v6201_v62, %v6200_v43 }
 0x389   : > { %5560 = vst.msk [vmem:[%s8842_s10 + $0x28] sm:$0xff] %vm5554_vm2, %v5447_v49  ;;  %v5468_v18 = vadd.f32 %v6308_v51, %v5307_v34  ;;  %v5326_v49 = vadd.f32 %v6181_v59, %v5165_v3  ;;  %v6184_v34 = vadd.f32 %v8798_v56, %v8794_v16  ;;  %v5181_v56 = vadd.f32 %v8752_v12, %v8716_v14 }
 0x38a   : > { %v5459_v44 = vpop.f32.mrf.mxu1  ;;  %v8904_v37 = vpop.f32.mrf.mxu0  ;;  %v5194_v40 = vadd.f32 %v8770_v6, %v8716_v14  ;;  %v5186_v62 = vadd.f32 %v8762_v25, %v8716_v14  ;;  %v5197_v8 = vadd.f32 %v8774_v2, %v8716_v14  ;;  %v6199_v59 = vadd.f32 %v8872_v13, %v8864_v39  ;;  %v9100_v13 = vld [vmem:[#allocation10_spill] sm:$0xff] }
 0x38b   : > { %5565 = vst.msk [vmem:[%s8842_s10 + $0x50] sm:$0xff] %vm5554_vm2, %v5468_v18  ;;  %v5460_v5 = vadd.f32 %v5459_v44, %v5299_v42  ;;  %v5339_v42 = vadd.f32 %v6190_v1, %v5178_v55  ;;  %v6187_v44 = vadd.f32 %v8810_v48, %v8804_v45  ;;  %v5331_v21 = vadd.f32 %v6184_v34, %v5170_v30  ;;  %v9101_v1 = vld [vmem:[#allocation4_spill] sm:$0xff]  ;;  %v9102_v30 = vld [vmem:[#allocation15_spill] sm:$0xff] }
 0x38c   : > { %v6309_v20 = vpop.f32.mrf.mxu1  ;;  %v6207_v22 = vpop.f32.mrf.mxu0  ;;  %v6196_v45 = vadd.f32 %v8856_v36, %v8848_v15  ;;  %v5355_v6 = vadd.f32 %v6202_v57, %v5194_v40  ;;  %v6102_v36 = vadd.f32 %v8788_v4, %v8786_v50  ;;  %v6105_v46 = vadd.f32 %v9100_v13, %v8792_v28  ;;  %v9107_v40 = vld [vmem:[#allocation17_spill] sm:$0xff] }
 0x38d   : > { %5563 = vst.msk [vmem:[%s8842_s10 + $0x40] sm:$0xff] %vm5554_vm2, %v5460_v5  ;;  %v5471_v58 = vadd.f32 %v6309_v20, %v5310_v38  ;;  %v5342_v20 = vadd.f32 %v6193_v26, %v5181_v56  ;;  %v5334_v63 = vadd.f32 %v6187_v44, %v5173_v31  ;;  %v9103_v26 = vld [vmem:[#allocation16_spill] sm:$0xff]  ;;  %v9105_v44 = vld [vmem:[#allocation11_spill] sm:$0xff] }
 0x38e   : > { %v5462_v52 = vpop.f32.mrf.mxu1  ;;  %v8918_v27 = vpop.f32.mrf.mxu0  ;;  %v5210_v4 = vadd.f32 %v6102_v36, %v8716_v14 }
 0x38f   : > { %5566 = vst.msk [vmem:[%s8842_s10 + $0x58] sm:$0xff] %vm5554_vm2, %v5471_v58  ;;  %v5463_v23 = vadd.f32 %v5462_v52, %v5302_v29  ;;  %v6205_v58 = vadd.f32 %v6204_v9, %v6203_v19  ;;  %v5347_v19 = vadd.f32 %v6196_v45, %v5186_v62  ;;  %v9108_v45 = vld [vmem:[#allocation18_spill] sm:$0xff]  ;;  %v9109_v62 = vld [vmem:[#allocation13_spill] sm:$0xff] }
 0x390   : > { %v6312_v41 = vpop.f32.mrf.mxu1  ;;  %v6210_v33 = vpop.f32.mrf.mxu0 }
 0x391   : > { %5564 = vst.msk [vmem:[%s8842_s10 + $0x48] sm:$0xff] %vm5554_vm2, %v5463_v23  ;;  %v5484_v0 = vadd.f32 %v6312_v41, %v5323_v47  ;;  %v5189_v47 = vadd.f32 %v8766_v11, %v8716_v14  ;;  %v5358_v2 = vadd.f32 %v6205_v58, %v5197_v8  ;;  %v9110_v58 = vld [vmem:[#allocation14_spill] sm:$0xff] }
 0x392   : > { %v5475_v35 = vpop.f32.mrf.mxu1  ;;  %v6212_v5 = vpop.f32.mrf.mxu0 }
 0x393   : > { %5569 = vst.msk [vmem:[%s8842_s10 + $0x70] sm:$0xff] %vm5554_vm2, %v5484_v0  ;;  %v5476_v32 = vadd.f32 %v5475_v35, %v5315_v53  ;;  %v6208_v0 = vadd.f32 %v6207_v22, %v8904_v37  ;;  %v5350_v35 = vadd.f32 %v6199_v59, %v5189_v47  ;;  %v5213_v37 = vadd.f32 %v6105_v46, %v8716_v14 }
 0x394   : > { %v6313_v17 = vpop.f32.mrf.mxu1  ;;  %v6213_v48 = vpop.f32.mrf.mxu0  ;;  %v6211_v22 = vadd.f32 %v6210_v33, %v8918_v27 }
 0x395   : > { %5567 = vst.msk [vmem:[%s8842_s10 + $0x60] sm:$0xff] %vm5554_vm2, %v5476_v32  ;;  %v5487_v51 = vadd.f32 %v6313_v17, %v5326_v49  ;;  %v6214_v41 = vadd.f32 %v6213_v48, %v6212_v5  ;;  %v5202_v32 = vadd.f32 %v9101_v1, %v8716_v14  ;;  %v6117_v48 = vadd.f32 %v9108_v45, %v9107_v40 }
 0x396   : > { %v5478_v7 = vpop.f32.mrf.mxu1  ;;  %v6215_v29 = vpop.f32.mrf.mxu0 }
 0x397   : > { %5570 = vst.msk [vmem:[%s8842_s10 + $0x78] sm:$0xff] %vm5554_vm2, %v5487_v51  ;;  %v5479_v18 = vadd.f32 %v5478_v7, %v5318_v61  ;;  %v5371_v34 = vadd.f32 %v6214_v41, %v5210_v4  ;;  %v5363_v7 = vadd.f32 %v6208_v0, %v5202_v32  ;;  %v9113_v32 = vld [vmem:[#allocation6_spill] sm:$0xff] }
 0x398   : > { %v6316_v16 = vpop.f32.mrf.mxu1  ;;  %v6216_v23 = vpop.f32.mrf.mxu0 }
 0x399   : > { %5568 = vst.msk [vmem:[%s8842_s10 + $0x68] sm:$0xff] %vm5554_vm2, %v5479_v18  ;;  %v5500_v10 = vadd.f32 %v6316_v16, %v5339_v42  ;;  %v6217_v49 = vadd.f32 %v6216_v23, %v6215_v29  ;;  %v6114_v18 = vadd.f32 %v9103_v26, %v9102_v30  ;;  %v9104_v16 = vld [vmem:[#allocation5_spill] sm:$0xff]  ;;  %v6111_v29 = vadd.f32 %v9110_v58, %v9109_v62 }
 0x39a   : > { %v5491_v54 = vpop.f32.mrf.mxu1  ;;  %v6218_v3 = vpop.f32.mrf.mxu0  ;;  %v5205_v56 = vadd.f32 %v9104_v16, %v8716_v14 }
 0x39b   : > { %5573 = vst.msk [vmem:[%s8842_s10 + $0x90] sm:$0xff] %vm5554_vm2, %v5500_v10  ;;  %v5492_v38 = vadd.f32 %v5491_v54, %v5331_v21  ;;  %v9106_v10 = vld [vmem:[#allocation12_spill] sm:$0xff]  ;;  %v5374_v33 = vadd.f32 %v6217_v49, %v5213_v37  ;;  %v5221_v41 = vadd.f32 %v6111_v29, %v8716_v14 }
 0x39c   : > { %v6317_v12 = vpop.f32.mrf.mxu1  ;;  %v6219_v53 = vpop.f32.mrf.mxu0  ;;  %v6108_v21 = vadd.f32 %v9106_v10, %v9105_v44 }
 0x39d   : > { %5571 = vst.msk [vmem:[%s8842_s10 + $0x80] sm:$0xff] %vm5554_vm2, %v5492_v38  ;;  %v5503_v24 = vadd.f32 %v6317_v12, %v5342_v20  ;;  %v6220_v57 = vadd.f32 %v6219_v53, %v6218_v3  ;;  %v5366_v20 = vadd.f32 %v6211_v22, %v5205_v56  ;;  %v5226_v12 = vadd.f32 %v6114_v18, %v8716_v14 }
 0x39e   : > { %v5494_v43 = vpop.f32.mrf.mxu1  ;;  %v6221_v17 = vpop.f32.mrf.mxu0 }
 0x39f   : > { %5574 = vst.msk [vmem:[%s8842_s10 + $0x98] sm:$0xff] %vm5554_vm2, %v5503_v24  ;;  %v5495_v52 = vadd.f32 %v5494_v43, %v5334_v63  ;;  %v5218_v43 = vadd.f32 %v6108_v21, %v8716_v14 }
 0x3a0   : > { %v6320_v15 = vpop.f32.mrf.mxu1  ;;  %v6222_v51 = vpop.f32.mrf.mxu0 }
 0x3a1   : > { %5572 = vst.msk [vmem:[%s8842_s10 + $0x88] sm:$0xff] %vm5554_vm2, %v5495_v52  ;;  %v5516_v25 = vadd.f32 %v6320_v15, %v5355_v6  ;;  %v6223_v8 = vadd.f32 %v6222_v51, %v6221_v17  ;;  %v5379_v23 = vadd.f32 %v6220_v57, %v5218_v43 }
 0x3a2   : > { %v5507_v9 = vpop.f32.mrf.mxu1  ;;  %v6224_v54 = vpop.f32.mrf.mxu0 }
 0x3a3   : > { %5577 = vst.msk [vmem:[%s8842_s10 + $0xb0] sm:$0xff] %vm5554_vm2, %v5516_v25  ;;  %v5508_v50 = vadd.f32 %v5507_v9, %v5347_v19  ;;  %v5229_v25 = vadd.f32 %v6117_v48, %v8716_v14  ;;  %v5382_v0 = vadd.f32 %v6223_v8, %v5221_v41  ;;  %v9112_v14 = vld [vmem:[#allocation9_spill] sm:$0xff] }
 0x3a4   : > { %v6321_v39 = vpop.f32.mrf.mxu1  ;;  %v6225_v5 = vpop.f32.mrf.mxu0 }
 0x3a5   : > { %5575 = vst.msk [vmem:[%s8842_s10 + $0xa0] sm:$0xff] %vm5554_vm2, %v5508_v50  ;;  %v5519_v11 = vadd.f32 %v6321_v39, %v5358_v2  ;;  %v6226_v24 = vadd.f32 %v6225_v5, %v6224_v54  ;;  %v9111_v2 = vld [vmem:[#allocation7_spill] sm:$0xff] }
 0x3a6   : > { %v5510_v60 = vpop.f32.mrf.mxu1  ;;  %v6227_v52 = vpop.f32.mrf.mxu0 }
 0x3a7   : > { %5578 = vst.msk [vmem:[%s8842_s10 + $0xb8] sm:$0xff] %vm5554_vm2, %v5519_v11  ;;  %v5511_v55 = vadd.f32 %v5510_v60, %v5350_v35  ;;  %v5387_v36 = vadd.f32 %v6226_v24, %v5226_v12 }
 0x3a8   : > { %v6324_v28 = vpop.f32.mrf.mxu1  ;;  %v6228_v59 = vpop.f32.mrf.mxu0 }
 0x3a9   : > { %5576 = vst.msk [vmem:[%s8842_s10 + $0xa8] sm:$0xff] %vm5554_vm2, %v5511_v55  ;;  %v5532_v61 = vadd.f32 %v6324_v28, %v5371_v34  ;;  %v6229_v19 = vadd.f32 %v6228_v59, %v6227_v52  ;;  %v9114_v55 = vld [vmem:[#allocation8_spill] sm:$0xff] }
 0x3aa   : > { %v5523_v42 = vpop.f32.mrf.mxu1  ;;  %v6300_v3 = vpop.f32.mrf.mxu0 }
 0x3ab   : > { %5581 = vst.msk [vmem:[%s8842_s10 + $0xd0] sm:$0xff] %vm5554_vm2, %v5532_v61  ;;  %v5524_v27 = vadd.f32 %v5523_v42, %v5363_v7  ;;  %v5436_v4 = vadd.f32 %v6300_v3, %v9111_v2  ;;  %v5390_v39 = vadd.f32 %v6229_v19, %v5229_v25 }
 0x3ac   : > { %v6325_v31 = vpop.f32.mrf.mxu1  ;;  %v5427_v46 = vpop.f32.mrf.mxu0 }
 0x3ad   : > { %5579 = vst.msk [vmem:[%s8842_s10 + $0xc0] sm:$0xff] %vm5554_vm2, %v5524_v27  ;;  %v5535_v38 = vadd.f32 %v6325_v31, %v5374_v33  ;;  %5557 = vst.msk [vmem:[%s8842_s10 + $0x10] sm:$0xff] %vm5554_vm2, %v5436_v4  ;;  %v5428_v53 = vadd.f32 %v5427_v46, %v9112_v14 }
 0x3ae   : > { %v5526_v63 = vpop.f32.mrf.mxu1  ;;  %v6301_v60 = vpop.f32.mrf.mxu0 }
 0x3af   : > { %5582 = vst.msk [vmem:[%s8842_s10 + $0xd8] sm:$0xff] %vm5554_vm2, %v5535_v38  ;;  %v5527_v6 = vadd.f32 %v5526_v63, %v5366_v20  ;;  %5555 = vst.msk [vmem:[%s8842_s10] sm:$0xff] %vm5554_vm2, %v5428_v53  ;;  %v5439_v49 = vadd.f32 %v6301_v60, %v9113_v32 }
 0x3b0   : > { %v6328_v15 = vpop.f32.mrf.mxu1  ;;  %v5430_v17 = vpop.f32.mrf.mxu0 }
 0x3b1   : > { %5580 = vst.msk [vmem:[%s8842_s10 + $0xc8] sm:$0xff] %vm5554_vm2, %v5527_v6  ;;  %v5548_v9 = vadd.f32 %v6328_v15, %v5387_v36  ;;  %5558 = vst.msk [vmem:[%s8842_s10 + $0x18] sm:$0xff] %vm5554_vm2, %v5439_v49  ;;  %v5431_v34 = vadd.f32 %v5430_v17, %v9114_v55 }
 0x3b2   : > { %v5539_v47 = vpop.f32.mrf.mxu1 }
 0x3b3   : > { %v5540_v50 = vadd.f32 %v5539_v47, %v5379_v23  ;;  %5585 = vst.msk [vmem:[%s8842_s10 + $0xf0] sm:$0xff] %vm5554_vm2, %v5548_v9  ;;  %5556 = vst.msk [vmem:[%s8842_s10 + $0x8] sm:$0xff] %vm5554_vm2, %v5431_v34 }
 0x3b4   : > { %v6329_v13 = vpop.f32.mrf.mxu1 }
 0x3b5   : > { %5583 = vst.msk [vmem:[%s8842_s10 + $0xe0] sm:$0xff] %vm5554_vm2, %v5540_v50  ;;  %v5551_v11 = vadd.f32 %v6329_v13, %v5390_v39 }
 0x3b6   : > { %v5542_v35 = vpop.f32.mrf.mxu1 }
 0x3b7   : > { %v5543_v1 = vadd.f32 %v5542_v35, %v5382_v0  ;;  %5586 = vst.msk [vmem:[%s8842_s10 + $0xf8] sm:$0xff] %vm5554_vm2, %v5551_v11 }
 0x3b9   : > { %5584 = vst.msk [vmem:[%s8842_s10 + $0xe8] sm:$0xff] %vm5554_vm2, %v5543_v1 }
 0x3ba PF: > { %s15_s20 = sadd.s32 1, %s6539_s20   ;;  %s9115_s18 = smov %s6535_s19 }
 0x3bb   : > { %p12_p5 = scmp.ge.s32.totalorder %s15_s20, 4   ;;  %s9116_s19 = smov %s9118_s21 }
 0x3bd   :  { %14 = sbr.rel (!%p12_p5) target bundleno = 2 (0x2), region = 77 }

</bundles_post_ra>
